<compile_context>
chip_gen: v6e
topology: v6e:2x2x1
jax: 0.10.0
libtpu: 0.0.40
codegen_flags: <defaults>
</compile_context>

<pallas_src>
import functools
import math

import jax
import jax.numpy as jnp
import numpy as np
from jax.experimental import pallas as pl
from jax.experimental.pallas import tpu as pltpu

# ----------------------- small deterministic configuration -----------------------
B = 2            # batch
T = 8            # sequence length of embedded CSI tokens
T1 = T + 1       # + CLS token
D_LLM = 64       # hidden size of the (synthetic) LLM == d_llm == input channel C
N_HEADS = 4
E_HEAD = D_LLM // N_HEADS
VOCAB = 128      # synthetic vocab size (word_embeddings rows)
NUM_TOKENS = 32  # reprogramming text-prototype count (1000 in the original)
LLM_LAYERS = 2   # synthetic LLM depth (12 in the original)
CLASS_NUM = 5
MAX_POS = 64
LN_EPS = 1e-5    # torch.nn.LayerNorm default
CLS_PAD = 128    # lane-dense padding for the classifier output
NEG_INF = -1e30


def _gelu(x):
    # TODO(synk): torch.nn.GELU() default is exact erf-GELU; the tanh approximation is
    # used here (identically in the plain-JAX reference below).
    c = math.sqrt(2.0 / math.pi)
    return 0.5 * x * (1.0 + jnp.tanh(c * (x + 0.044715 * x * x * x)))


def _ln(x, g, b):
    mu = jnp.mean(x, axis=-1, keepdims=True)
    xc = x - mu
    var = jnp.mean(xc * xc, axis=-1, keepdims=True)       # biased var, like torch
    return xc * jax.lax.rsqrt(var + LN_EPS) * g + b


def _const_spec(shape):
    """Full-array block whose block index is constant across the (size-1) grid."""
    nd = len(shape)
    return pl.BlockSpec(tuple(shape), lambda *idx: (0,) * nd)


# ------------------------------ the single fused kernel ------------------------------
def _fused_forward_kernel(
    x_ref,                                    # (B*T, D)
    rp_tng_ref, rp_tnb_ref,                   # (1, D)   target LayerNorm
    rp_qw_ref, rp_qb_ref,                     # (D, D), (1, D)
    rp_kbd_ref,                               # (D, H*S)   block-diag prototype K, scale folded
    rp_seg_ref,                               # (H*S, H*S) ones-block segment-sum matrix
    rp_vwo_ref,                               # (H*S, D)   block-diag prototype V @ out_proj
    rp_ob_ref,                                # (1, D)
    addcls_ref,                               # (B*T1, D)  wpe rows (+ cls_token on CLS rows)
    bias_ref,                                 # (B*T1, B*T1) additive causal + same-batch mask
    ln1g_ref, ln1b_ref,                       # (L, 1, D)
    wqkv_ref, bqkv_ref,                       # (L, D, 3D), (L, 1, 3D)  (q-scale folded in)
    woh_ref, bo_ref,                          # (L, H, E, D), (L, 1, D)
    ln2g_ref, ln2b_ref,                       # (L, 1, D)
    fcw_ref, fcb_ref,                         # (L, D, 4D), (L, 1, 4D)
    pjw_ref, pjb_ref,                         # (L, 4D, D), (L, 1, D)
    lnfg_ref, lnfb_ref,                       # (1, D)
    fh1w_ref, fh1b_ref, fh2w_ref, fh2b_ref,   # feature head
    hd1w_ref, hd1b_ref, hd2w_ref, hd2b_ref, hd3w_ref, hd3b_ref,   # cls head (hd3 lane-padded)
    feats_ref,                                # out: (L*B, T, D)
    logits_ref,                               # out: (B, CLS_PAD)
    *, batch, seq, n_heads, n_layers):
    D = x_ref.shape[-1]
    E = D // n_heads
    t1 = seq + 1

    # ----------------- reprogramming layer (no head loop, no lane slicing) -----------------
    tn = _ln(x_ref[...], rp_tng_ref[...], rp_tnb_ref[...])                       # (B*T, D)
    q = jnp.dot(tn, rp_qw_ref[...], preferred_element_type=jnp.float32) + rp_qb_ref[...]
    s = jnp.dot(q, rp_kbd_ref[...], preferred_element_type=jnp.float32)          # (B*T, H*S)
    # global per-row shift: softmax within each head's 32-lane segment is shift-invariant
    s = s - jnp.max(s, axis=-1, keepdims=True)
    p = jnp.exp(s)
    den = jnp.dot(p, rp_seg_ref[...], preferred_element_type=jnp.float32)        # per-head sums
    p = p * pl.reciprocal(den, approx=True)
    x_text = jnp.dot(p, rp_vwo_ref[...], preferred_element_type=jnp.float32) + rp_ob_ref[...]

    # ----------------- append CLS row + learned position embeddings -----------------
    zrow = jnp.zeros((1, D), jnp.float32)
    parts = []
    for b in range(batch):
        parts.append(x_text[b * seq:(b + 1) * seq])
        parts.append(zrow)
    h = jnp.concatenate(parts, axis=0) + addcls_ref[...]                          # (B*T1, D)

    # ----------------- LLM transformer blocks (batch flattened into rows) -----------------
    bias = bias_ref[...]
    h_final = h
    for li in range(n_layers):
        # attention
        hs = _ln(h, ln1g_ref[li], ln1b_ref[li])
        qkv = jnp.dot(hs, wqkv_ref[li], preferred_element_type=jnp.float32) + bqkv_ref[li]
        acc = None
        for hd in range(n_heads):
            qh = qkv[:, hd * E:(hd + 1) * E]              # scale already folded into weights
            kh = qkv[:, D + hd * E:D + (hd + 1) * E]
            vh = qkv[:, 2 * D + hd * E:2 * D + (hd + 1) * E]
            sc = jax.lax.dot_general(qh, kh, (((1,), (1,)), ((), ())),
                                     preferred_element_type=jnp.float32) + bias
            sc = sc - jnp.max(sc, axis=-1, keepdims=True)
            pa = jnp.exp(sc)
            pa = pa * pl.reciprocal(jnp.sum(pa, axis=-1, keepdims=True), approx=True)
            av = jnp.dot(pa, vh, preferred_element_type=jnp.float32)              # (rows, E)
            term = jnp.dot(av, woh_ref[li, hd], preferred_element_type=jnp.float32)
            acc = term if acc is None else acc + term
        h = h + acc + bo_ref[li]
        # MLP
        ms = _ln(h, ln2g_ref[li], ln2b_ref[li])
        mlp = _gelu(jnp.dot(ms, fcw_ref[li], preferred_element_type=jnp.float32) + fcb_ref[li])
        h = h + jnp.dot(mlp, pjw_ref[li], preferred_element_type=jnp.float32) + pjb_ref[li]

        # hidden-state semantics match HF: intermediate layers pre-ln_f, last layer post-ln_f
        hid = h
        if li == n_layers - 1:
            hid = _ln(h, lnfg_ref[...], lnfb_ref[...])
            h_final = hid

        # feature head (computed on all rows; CLS rows dropped at store time)
        f = _gelu(jnp.dot(hid, fh1w_ref[...], preferred_element_type=jnp.float32) + fh1b_ref[...])
        f = _gelu(jnp.dot(f, fh2w_ref[...], preferred_element_type=jnp.float32) + fh2b_ref[...])
        for b in range(batch):
            feats_ref[li * batch + b] = f[b * t1:b * t1 + seq]

    # ----------------- classification head on the CLS rows (lane-dense output) -----------------
    xcls = jnp.concatenate(
        [h_final[b * t1 + seq:b * t1 + seq + 1] for b in range(batch)], axis=0)   # (B, D)
    g = _gelu(jnp.dot(xcls, hd1w_ref[...], preferred_element_type=jnp.float32) + hd1b_ref[...])
    g = _gelu(jnp.dot(g, hd2w_ref[...], preferred_element_type=jnp.float32) + hd2b_ref[...])
    logits_ref[...] = jnp.dot(g, hd3w_ref[...],
                              preferred_element_type=jnp.float32) + hd3b_ref[...]


# ------------------------- one-time parameter preprocessing -------------------------
def prep_params(p):
    """Hoist every weight-only computation / reshape out of the per-step forward."""
    H, E, D, S, L = N_HEADS, E_HEAD, D_LLM, NUM_TOKENS, LLM_LAYERS
    scale = 1.0 / math.sqrt(E)

    # source prototypes, their LayerNorm, and prototype K/V are weight-only (eval mode)
    we = p["word_embeddings"]
    src = (we.T @ p["map_w"] + p["map_b"]).T                                # (S, D)
    sn = _ln(src, p["rp_sn_g"], p["rp_sn_b"])
    k_all = sn @ p["rp_k_w"] + p["rp_k_b"]                                  # (S, H*E)
    v_all = sn @ p["rp_v_w"] + p["rp_v_b"]
    kbd = jnp.zeros((D, H * S), jnp.float32)
    vbd = jnp.zeros((H * S, D), jnp.float32)
    for h in range(H):
        kbd = kbd.at[h * E:(h + 1) * E, h * S:(h + 1) * S].set(k_all[:, h * E:(h + 1) * E].T)
        vbd = vbd.at[h * S:(h + 1) * S, h * E:(h + 1) * E].set(v_all[:, h * E:(h + 1) * E])
    rp_kbd = kbd * scale                         # fold 1/sqrt(E) into the prototype keys
    rp_vwo = vbd @ p["rp_o_w"]                   # fold the out-projection into the prototype values
    seg = jnp.arange(H * S) // S
    rp_seg = (seg[:, None] == seg[None, :]).astype(jnp.float32)             # segment-sum matrix

    # CLS token + position-embedding addend for the flattened (B*T1, D) stream
    addcls_one = p["wpe"][:T1].at[T].add(p["cls_token"].reshape(D))
    addcls = jnp.tile(addcls_one, (B, 1))

    # additive causal + same-batch mask over flattened rows
    idx = jnp.arange(B * T1)
    bsel, tpos = idx // T1, idx % T1
    allowed = (bsel[:, None] == bsel[None, :]) & (tpos[None, :] <= tpos[:, None])
    bias = jnp.where(allowed, 0.0, NEG_INF).astype(jnp.float32)

    layers = p["layers"]
    stack = lambda k: jnp.stack([l[k] for l in layers])
    wqkv = jnp.stack([jnp.concatenate([l["q_w"] * scale, l["k_w"], l["v_w"]], axis=1)
                      for l in layers])                                     # (L, D, 3D)
    bqkv = jnp.stack([jnp.concatenate([l["q_b"] * scale, l["k_b"], l["v_b"]])
                      for l in layers]).reshape(L, 1, 3 * D)
    woh = jnp.stack([l["o_w"].reshape(H, E, D) for l in layers])            # (L, H, E, D)

    hd3w = jnp.pad(p["hd3_w"], ((0, 0), (0, CLS_PAD - CLASS_NUM)))
    hd3b = jnp.pad(p["hd3_b"], (0, CLS_PAD - CLASS_NUM)).reshape(1, CLS_PAD)

    return (
        p["rp_tn_g"].reshape(1, D), p["rp_tn_b"].reshape(1, D),
        p["rp_q_w"], p["rp_q_b"].reshape(1, D),
        rp_kbd, rp_seg, rp_vwo, p["rp_o_b"].reshape(1, D),
        addcls, bias,
        stack("ln1_g").reshape(L, 1, D), stack("ln1_b").reshape(L, 1, D),
        wqkv, bqkv, woh, stack("o_b").reshape(L, 1, D),
        stack("ln2_g").reshape(L, 1, D), stack("ln2_b").reshape(L, 1, D),
        stack("fc_w"), stack("fc_b").reshape(L, 1, 4 * D),
        stack("proj_w"), stack("proj_b").reshape(L, 1, D),
        p["lnf_g"].reshape(1, D), p["lnf_b"].reshape(1, D),
        p["fh1_w"], p["fh1_b"].reshape(1, 4 * D), p["fh2_w"], p["fh2_b"].reshape(1, D),
        p["hd1_w"], p["hd1_b"].reshape(1, 4 * D), p["hd2_w"], p["hd2_b"].reshape(1, D),
        hd3w, hd3b,
    )


# ----------------------------------- Pallas forward -----------------------------------
def pallas_forward(prepped, x, return_feature=True):
    """LLM2Rec.forward with add_embed_layer=False, reprogramming=True (eval mode)."""
    B_, T_, D = x.shape
    args = (x.reshape(B_ * T_, D),) + tuple(prepped)
    kernel = functools.partial(_fused_forward_kernel, batch=B_, seq=T_,
                               n_heads=N_HEADS, n_layers=LLM_LAYERS)
    feats, logits_pad = pl.pallas_call(
        kernel,
        out_shape=(jax.ShapeDtypeStruct((LLM_LAYERS * B_, T_, D), jnp.float32),
                   jax.ShapeDtypeStruct((B_, CLS_PAD), jnp.float32)),
        grid=(1,),
        in_specs=[_const_spec(a.shape) for a in args],
        out_specs=(_const_spec((LLM_LAYERS * B_, T_, D)),
                   _const_spec((B_, CLS_PAD))),
        compiler_params=pltpu.CompilerParams(dimension_semantics=("arbitrary",)),
    )(*args)
    out = {"logits": logits_pad[:, :CLASS_NUM]}
    if return_feature:
        feats = feats.reshape(LLM_LAYERS, B_, T_, D)
        out["features"] = [feats[i] for i in range(LLM_LAYERS)]
    return out


# -------------------------- plain-JAX reference implementation --------------------------
def ref_forward(params, x, return_feature=True):
    B_, T_, D = x.shape
    H, E = N_HEADS, D // N_HEADS
    scale = 1.0 / math.sqrt(E)

    we = params["word_embeddings"]
    src = (we.T @ params["map_w"] + params["map_b"]).T                    # (S, D)
    tn = _ln(x, params["rp_tn_g"], params["rp_tn_b"])
    q = (tn @ params["rp_q_w"] + params["rp_q_b"]).reshape(B_, T_, H, E)
    sn = _ln(src, params["rp_sn_g"], params["rp_sn_b"])
    k = (sn @ params["rp_k_w"] + params["rp_k_b"]).reshape(-1, H, E)
    v = (sn @ params["rp_v_w"] + params["rp_v_b"]).reshape(-1, H, E)
    s = jnp.einsum("blhe,she->bhls", q, k) * scale
    a = jax.nn.softmax(s, axis=-1)
    o = jnp.einsum("bhls,she->blhe", a, v).reshape(B_, T_, D)
    x_text = o @ params["rp_o_w"] + params["rp_o_b"]

    cls = jnp.broadcast_to(params["cls_token"], (B_, 1, D))
    h = jnp.concatenate([x_text, cls], axis=1)
    t1 = T_ + 1
    h = h + params["wpe"][:t1][None]
    hiddens = [h]
    for lyr in params["layers"]:
        hs = _ln(h, lyr["ln1_g"], lyr["ln1_b"])
        qh = (hs @ lyr["q_w"] + lyr["q_b"]).reshape(B_, t1, H, E).transpose(0, 2, 1, 3)
        kh = (hs @ lyr["k_w"] + lyr["k_b"]).reshape(B_, t1, H, E).transpose(0, 2, 1, 3)
        vh = (hs @ lyr["v_w"] + lyr["v_b"]).reshape(B_, t1, H, E).transpose(0, 2, 1, 3)
        sc = jnp.einsum("bhle,bhse->bhls", qh, kh) * scale
        mask = jnp.tril(jnp.ones((t1, t1), dtype=bool))
        sc = jnp.where(mask, sc, -jnp.inf)
        pa = jax.nn.softmax(sc, axis=-1)
        at = jnp.einsum("bhls,bhse->bhle", pa, vh).transpose(0, 2, 1, 3).reshape(B_, t1, D)
        h = h + (at @ lyr["o_w"] + lyr["o_b"])
        ms = _ln(h, lyr["ln2_g"], lyr["ln2_b"])
        m = _gelu(ms @ lyr["fc_w"] + lyr["fc_b"]) @ lyr["proj_w"] + lyr["proj_b"]
        h = h + m
        hiddens.append(h)
    h_final = _ln(h, params["lnf_g"], params["lnf_b"])
    hiddens[-1] = h_final

    def fh(fea):
        y = _gelu(fea @ params["fh1_w"] + params["fh1_b"])
        return _gelu(y @ params["fh2_w"] + params["fh2_b"])

    x_features = [fh(fea[:, :-1]) for fea in hiddens[1:]]
    x_cls = h_final[:, -1]
    g = _gelu(x_cls @ params["hd1_w"] + params["hd1_b"])
    g = _gelu(g @ params["hd2_w"] + params["hd2_b"])
    logits = g @ params["hd3_w"] + params["hd3_b"]
    out = {"logits": logits}
    if return_feature:
        out["features"] = x_features
    return out


# --------------------------- deterministic parameter init ---------------------------
def init_params(key):
    keys = iter(jax.random.split(key, 64))

    def w_(shape, scale=0.02):
        return jax.random.normal(next(keys), shape, jnp.float32) * scale

    def lin_(din, dout):
        return w_((din, dout)), w_((dout,))

    ones = lambda: jnp.ones((D_LLM,), jnp.float32)
    zeros = lambda: jnp.zeros((D_LLM,), jnp.float32)

    p = {}
    p["word_embeddings"] = w_((VOCAB, D_LLM))
    p["map_w"], p["map_b"] = lin_(VOCAB, NUM_TOKENS)
    p["rp_tn_g"], p["rp_tn_b"] = ones(), zeros()
    p["rp_sn_g"], p["rp_sn_b"] = ones(), zeros()
    p["rp_q_w"], p["rp_q_b"] = lin_(D_LLM, D_LLM)
    p["rp_k_w"], p["rp_k_b"] = lin_(D_LLM, D_LLM)
    p["rp_v_w"], p["rp_v_b"] = lin_(D_LLM, D_LLM)
    p["rp_o_w"], p["rp_o_b"] = lin_(D_LLM, D_LLM)
    p["cls_token"] = jnp.zeros((1, 1, D_LLM), jnp.float32)   # nn.Parameter(torch.zeros(1,1,d_llm))
    p["wpe"] = w_((MAX_POS, D_LLM))
    layers = []
    for _ in range(LLM_LAYERS):
        l = {}
        l["ln1_g"], l["ln1_b"] = ones(), zeros()
        l["q_w"], l["q_b"] = lin_(D_LLM, D_LLM)
        l["k_w"], l["k_b"] = lin_(D_LLM, D_LLM)
        l["v_w"], l["v_b"] = lin_(D_LLM, D_LLM)
        l["o_w"], l["o_b"] = lin_(D_LLM, D_LLM)
        l["ln2_g"], l["ln2_b"] = ones(), zeros()
        l["fc_w"], l["fc_b"] = lin_(D_LLM, 4 * D_LLM)
        l["proj_w"], l["proj_b"] = lin_(4 * D_LLM, D_LLM)
        layers.append(l)
    p["layers"] = layers
    p["lnf_g"], p["lnf_b"] = ones(), zeros()
    p["fh1_w"], p["fh1_b"] = lin_(D_LLM, 4 * D_LLM)
    p["fh2_w"], p["fh2_b"] = lin_(4 * D_LLM, D_LLM)
    p["hd1_w"], p["hd1_b"] = lin_(D_LLM, 4 * D_LLM)
    p["hd2_w"], p["hd2_b"] = lin_(4 * D_LLM, D_LLM)
    p["hd3_w"], p["hd3_b"] = lin_(D_LLM, CLASS_NUM)
    return p


# -------------------------------------- main --------------------------------------
if __name__ == "__main__":
    key = jax.random.PRNGKey(0)
    pkey, xkey = jax.random.split(key)
    params = init_params(pkey)
    x = jax.random.normal(xkey, (B, T, D_LLM), jnp.float32)   # x: (B, T, C=d_llm)

    # one-time parameter preprocessing (hoisted out of the per-step forward)
    prepped = prep_params(params)

    pallas_fwd = jax.jit(functools.partial(pallas_forward, return_feature=True))
    out = pallas_fwd(prepped, x)
    jax.block_until_ready(out)

    ref_fwd = jax.jit(functools.partial(ref_forward, return_feature=True))
    out_ref = ref_fwd(params, x)
    jax.block_until_ready(out_ref)

    assert out["logits"].shape == (B, CLASS_NUM)
    assert len(out["features"]) == LLM_LAYERS
    # slightly relaxed tolerance to accommodate pl.reciprocal(..., approx=True) in softmax
    np.testing.assert_allclose(np.asarray(out["logits"]),
                               np.asarray(out_ref["logits"]), rtol=2e-3, atol=2e-3)
    for f, fr in zip(out["features"], out_ref["features"]):
        assert f.shape == (B, T, D_LLM)
        np.testing.assert_allclose(np.asarray(f), np.asarray(fr), rtol=2e-3, atol=2e-3)

    print("KERNEL_OK")
</pallas_src>

<mosaic_0001>
module attributes {stable_mosaic.version = 11 : i64} {
  func.func @_fused_forward_kernel(%arg0: i32, %arg1: memref<16x64xf32, #tpu.memory_space<vmem>>, %arg2: memref<1x64xf32, #tpu.memory_space<vmem>>, %arg3: memref<1x64xf32, #tpu.memory_space<vmem>>, %arg4: memref<64x64xf32, #tpu.memory_space<vmem>>, %arg5: memref<1x64xf32, #tpu.memory_space<vmem>>, %arg6: memref<64x128xf32, #tpu.memory_space<vmem>>, %arg7: memref<128x128xf32, #tpu.memory_space<vmem>>, %arg8: memref<128x64xf32, #tpu.memory_space<vmem>>, %arg9: memref<1x64xf32, #tpu.memory_space<vmem>>, %arg10: memref<18x64xf32, #tpu.memory_space<vmem>>, %arg11: memref<18x18xf32, #tpu.memory_space<vmem>>, %arg12: memref<2x1x64xf32, #tpu.memory_space<vmem>>, %arg13: memref<2x1x64xf32, #tpu.memory_space<vmem>>, %arg14: memref<2x64x192xf32, #tpu.memory_space<vmem>>, %arg15: memref<2x1x192xf32, #tpu.memory_space<vmem>>, %arg16: memref<2x4x16x64xf32, #tpu.memory_space<vmem>>, %arg17: memref<2x1x64xf32, #tpu.memory_space<vmem>>, %arg18: memref<2x1x64xf32, #tpu.memory_space<vmem>>, %arg19: memref<2x1x64xf32, #tpu.memory_space<vmem>>, %arg20: memref<2x64x256xf32, #tpu.memory_space<vmem>>, %arg21: memref<2x1x256xf32, #tpu.memory_space<vmem>>, %arg22: memref<2x256x64xf32, #tpu.memory_space<vmem>>, %arg23: memref<2x1x64xf32, #tpu.memory_space<vmem>>, %arg24: memref<1x64xf32, #tpu.memory_space<vmem>>, %arg25: memref<1x64xf32, #tpu.memory_space<vmem>>, %arg26: memref<64x256xf32, #tpu.memory_space<vmem>>, %arg27: memref<1x256xf32, #tpu.memory_space<vmem>>, %arg28: memref<256x64xf32, #tpu.memory_space<vmem>>, %arg29: memref<1x64xf32, #tpu.memory_space<vmem>>, %arg30: memref<64x256xf32, #tpu.memory_space<vmem>>, %arg31: memref<1x256xf32, #tpu.memory_space<vmem>>, %arg32: memref<256x64xf32, #tpu.memory_space<vmem>>, %arg33: memref<1x64xf32, #tpu.memory_space<vmem>>, %arg34: memref<64x128xf32, #tpu.memory_space<vmem>>, %arg35: memref<1x128xf32, #tpu.memory_space<vmem>>, %arg36: memref<4x8x64xf32, #tpu.memory_space<vmem>>, %arg37: memref<2x128xf32, #tpu.memory_space<vmem>>) attributes {dimension_semantics = [#tpu.dimension_semantics<arbitrary>], iteration_bounds = array<i64: 1>, scalar_prefetch = 0 : i64, scratch_operands = 0 : i64, tpu.core_type = #tpu.core_type<tc>, window_params = [{pipeline_mode = #tpu.pipeline_mode<synchronous>, transform_indices = @transform_0, window_bounds = array<i64: 16, 64>}, {pipeline_mode = #tpu.pipeline_mode<synchronous>, transform_indices = @transform_1, window_bounds = array<i64: 1, 64>}, {pipeline_mode = #tpu.pipeline_mode<synchronous>, transform_indices = @transform_2, window_bounds = array<i64: 1, 64>}, {pipeline_mode = #tpu.pipeline_mode<synchronous>, transform_indices = @transform_3, window_bounds = array<i64: 64, 64>}, {pipeline_mode = #tpu.pipeline_mode<synchronous>, transform_indices = @transform_4, window_bounds = array<i64: 1, 64>}, {pipeline_mode = #tpu.pipeline_mode<synchronous>, transform_indices = @transform_5, window_bounds = array<i64: 64, 128>}, {pipeline_mode = #tpu.pipeline_mode<synchronous>, transform_indices = @transform_6, window_bounds = array<i64: 128, 128>}, {pipeline_mode = #tpu.pipeline_mode<synchronous>, transform_indices = @transform_7, window_bounds = array<i64: 128, 64>}, {pipeline_mode = #tpu.pipeline_mode<synchronous>, transform_indices = @transform_8, window_bounds = array<i64: 1, 64>}, {pipeline_mode = #tpu.pipeline_mode<synchronous>, transform_indices = @transform_9, window_bounds = array<i64: 18, 64>}, {pipeline_mode = #tpu.pipeline_mode<synchronous>, transform_indices = @transform_10, window_bounds = array<i64: 18, 18>}, {pipeline_mode = #tpu.pipeline_mode<synchronous>, transform_indices = @transform_11, window_bounds = array<i64: 2, 1, 64>}, {pipeline_mode = #tpu.pipeline_mode<synchronous>, transform_indices = @transform_12, window_bounds = array<i64: 2, 1, 64>}, {pipeline_mode = #tpu.pipeline_mode<synchronous>, transform_indices = @transform_13, window_bounds = array<i64: 2, 64, 192>}, {pipeline_mode = #tpu.pipeline_mode<synchronous>, transform_indices = @transform_14, window_bounds = array<i64: 2, 1, 192>}, {pipeline_mode = #tpu.pipeline_mode<synchronous>, transform_indices = @transform_15, window_bounds = array<i64: 2, 4, 16, 64>}, {pipeline_mode = #tpu.pipeline_mode<synchronous>, transform_indices = @transform_16, window_bounds = array<i64: 2, 1, 64>}, {pipeline_mode = #tpu.pipeline_mode<synchronous>, transform_indices = @transform_17, window_bounds = array<i64: 2, 1, 64>}, {pipeline_mode = #tpu.pipeline_mode<synchronous>, transform_indices = @transform_18, window_bounds = array<i64: 2, 1, 64>}, {pipeline_mode = #tpu.pipeline_mode<synchronous>, transform_indices = @transform_19, window_bounds = array<i64: 2, 64, 256>}, {pipeline_mode = #tpu.pipeline_mode<synchronous>, transform_indices = @transform_20, window_bounds = array<i64: 2, 1, 256>}, {pipeline_mode = #tpu.pipeline_mode<synchronous>, transform_indices = @transform_21, window_bounds = array<i64: 2, 256, 64>}, {pipeline_mode = #tpu.pipeline_mode<synchronous>, transform_indices = @transform_22, window_bounds = array<i64: 2, 1, 64>}, {pipeline_mode = #tpu.pipeline_mode<synchronous>, transform_indices = @transform_23, window_bounds = array<i64: 1, 64>}, {pipeline_mode = #tpu.pipeline_mode<synchronous>, transform_indices = @transform_24, window_bounds = array<i64: 1, 64>}, {pipeline_mode = #tpu.pipeline_mode<synchronous>, transform_indices = @transform_25, window_bounds = array<i64: 64, 256>}, {pipeline_mode = #tpu.pipeline_mode<synchronous>, transform_indices = @transform_26, window_bounds = array<i64: 1, 256>}, {pipeline_mode = #tpu.pipeline_mode<synchronous>, transform_indices = @transform_27, window_bounds = array<i64: 256, 64>}, {pipeline_mode = #tpu.pipeline_mode<synchronous>, transform_indices = @transform_28, window_bounds = array<i64: 1, 64>}, {pipeline_mode = #tpu.pipeline_mode<synchronous>, transform_indices = @transform_29, window_bounds = array<i64: 64, 256>}, {pipeline_mode = #tpu.pipeline_mode<synchronous>, transform_indices = @transform_30, window_bounds = array<i64: 1, 256>}, {pipeline_mode = #tpu.pipeline_mode<synchronous>, transform_indices = @transform_31, window_bounds = array<i64: 256, 64>}, {pipeline_mode = #tpu.pipeline_mode<synchronous>, transform_indices = @transform_32, window_bounds = array<i64: 1, 64>}, {pipeline_mode = #tpu.pipeline_mode<synchronous>, transform_indices = @transform_33, window_bounds = array<i64: 64, 128>}, {pipeline_mode = #tpu.pipeline_mode<synchronous>, transform_indices = @transform_34, window_bounds = array<i64: 1, 128>}, {pipeline_mode = #tpu.pipeline_mode<synchronous>, transform_indices = @transform_35, window_bounds = array<i64: 4, 8, 64>}, {pipeline_mode = #tpu.pipeline_mode<synchronous>, transform_indices = @transform_36, window_bounds = array<i64: 2, 128>}]} {
    %c0 = arith.constant 0 : index
    %c0_0 = arith.constant 0 : index
    %0 = vector.load %arg1[%c0, %c0_0] : memref<16x64xf32, #tpu.memory_space<vmem>>, vector<16x64xf32>
    %c0_1 = arith.constant 0 : index
    %c0_2 = arith.constant 0 : index
    %1 = vector.load %arg2[%c0_1, %c0_2] : memref<1x64xf32, #tpu.memory_space<vmem>>, vector<1x64xf32>
    %c0_3 = arith.constant 0 : index
    %c0_4 = arith.constant 0 : index
    %2 = vector.load %arg3[%c0_3, %c0_4] : memref<1x64xf32, #tpu.memory_space<vmem>>, vector<1x64xf32>
    %cst = arith.constant dense<0.000000e+00> : vector<16xf32>
    %3 = vector.multi_reduction <add>, %0, %cst [1] : vector<16x64xf32> to vector<16xf32>
    %4 = vector.shape_cast %3 : vector<16xf32> to vector<16x1xf32>
    %cst_5 = arith.constant 6.400000e+01 : f32
    %5 = vector.broadcast %cst_5 : f32 to vector<16x1xf32>
    %6 = arith.divf %4, %5 : vector<16x1xf32>
    %7 = vector.broadcast %6 : vector<16x1xf32> to vector<16x64xf32>
    %8 = arith.subf %0, %7 : vector<16x64xf32>
    %9 = arith.mulf %8, %8 : vector<16x64xf32>
    %cst_6 = arith.constant dense<0.000000e+00> : vector<16xf32>
    %10 = vector.multi_reduction <add>, %9, %cst_6 [1] : vector<16x64xf32> to vector<16xf32>
    %11 = vector.shape_cast %10 : vector<16xf32> to vector<16x1xf32>
    %cst_7 = arith.constant 6.400000e+01 : f32
    %12 = vector.broadcast %cst_7 : f32 to vector<16x1xf32>
    %13 = arith.divf %11, %12 : vector<16x1xf32>
    %cst_8 = arith.constant 9.99999974E-6 : f32
    %14 = vector.broadcast %cst_8 : f32 to vector<16x1xf32>
    %15 = arith.addf %13, %14 : vector<16x1xf32>
    %16 = math.rsqrt %15 : vector<16x1xf32>
    %17 = vector.broadcast %16 : vector<16x1xf32> to vector<16x64xf32>
    %18 = arith.mulf %8, %17 : vector<16x64xf32>
    %19 = vector.broadcast %1 : vector<1x64xf32> to vector<16x64xf32>
    %20 = arith.mulf %18, %19 : vector<16x64xf32>
    %21 = vector.broadcast %2 : vector<1x64xf32> to vector<16x64xf32>
    %22 = arith.addf %20, %21 : vector<16x64xf32>
    %c0_9 = arith.constant 0 : index
    %c0_10 = arith.constant 0 : index
    %23 = vector.load %arg4[%c0_9, %c0_10] : memref<64x64xf32, #tpu.memory_space<vmem>>, vector<64x64xf32>
    %cst_11 = arith.constant dense<0.000000e+00> : vector<16x64xf32>
    %24 = tpu.matmul %22, %23, %cst_11 {dimension_numbers = #tpu.dot_dimension_numbers<[1], [0], [0], [1], [0, 0, 1, 1], [], []>} : vector<16x64xf32>, vector<64x64xf32>, vector<16x64xf32> -> vector<16x64xf32>
    %c0_12 = arith.constant 0 : index
    %c0_13 = arith.constant 0 : index
    %25 = vector.load %arg5[%c0_12, %c0_13] : memref<1x64xf32, #tpu.memory_space<vmem>>, vector<1x64xf32>
    %26 = vector.broadcast %25 : vector<1x64xf32> to vector<16x64xf32>
    %27 = arith.addf %24, %26 : vector<16x64xf32>
    %c0_14 = arith.constant 0 : index
    %c0_15 = arith.constant 0 : index
    %28 = vector.load %arg6[%c0_14, %c0_15] : memref<64x128xf32, #tpu.memory_space<vmem>>, vector<64x128xf32>
    %cst_16 = arith.constant dense<0.000000e+00> : vector<16x128xf32>
    %29 = tpu.matmul %27, %28, %cst_16 {dimension_numbers = #tpu.dot_dimension_numbers<[1], [0], [0], [1], [0, 0, 1, 1], [], []>} : vector<16x64xf32>, vector<64x128xf32>, vector<16x128xf32> -> vector<16x128xf32>
    %cst_17 = arith.constant dense<0xFF800000> : vector<16xf32>
    %30 = vector.multi_reduction <maximumf>, %29, %cst_17 [1] : vector<16x128xf32> to vector<16xf32>
    %31 = vector.shape_cast %30 : vector<16xf32> to vector<16x1xf32>
    %32 = vector.broadcast %31 : vector<16x1xf32> to vector<16x128xf32>
    %33 = arith.subf %29, %32 : vector<16x128xf32>
    %34 = math.exp %33 : vector<16x128xf32>
    %c0_18 = arith.constant 0 : index
    %c0_19 = arith.constant 0 : index
    %35 = vector.load %arg7[%c0_18, %c0_19] : memref<128x128xf32, #tpu.memory_space<vmem>>, vector<128x128xf32>
    %cst_20 = arith.constant dense<0.000000e+00> : vector<16x128xf32>
    %36 = tpu.matmul %34, %35, %cst_20 {dimension_numbers = #tpu.dot_dimension_numbers<[1], [0], [0], [1], [0, 0, 1, 1], [], []>} : vector<16x128xf32>, vector<128x128xf32>, vector<16x128xf32> -> vector<16x128xf32>
    %37 = tpu.reciprocal %36 {approx = true} : vector<16x128xf32> -> vector<16x128xf32>
    %38 = arith.mulf %34, %37 : vector<16x128xf32>
    %c0_21 = arith.constant 0 : index
    %c0_22 = arith.constant 0 : index
    %39 = vector.load %arg8[%c0_21, %c0_22] : memref<128x64xf32, #tpu.memory_space<vmem>>, vector<128x64xf32>
    %cst_23 = arith.constant dense<0.000000e+00> : vector<16x64xf32>
    %40 = tpu.matmul %38, %39, %cst_23 {dimension_numbers = #tpu.dot_dimension_numbers<[1], [0], [0], [1], [0, 0, 1, 1], [], []>} : vector<16x128xf32>, vector<128x64xf32>, vector<16x64xf32> -> vector<16x64xf32>
    %c0_24 = arith.constant 0 : index
    %c0_25 = arith.constant 0 : index
    %41 = vector.load %arg9[%c0_24, %c0_25] : memref<1x64xf32, #tpu.memory_space<vmem>>, vector<1x64xf32>
    %42 = vector.broadcast %41 : vector<1x64xf32> to vector<16x64xf32>
    %43 = arith.addf %40, %42 : vector<16x64xf32>
    %cst_26 = arith.constant 0.000000e+00 : f32
    %44 = vector.broadcast %cst_26 : f32 to vector<1x64xf32>
    %45 = vector.extract_strided_slice %43 {offsets = [0, 0], sizes = [8, 64], strides = [1, 1]} : vector<16x64xf32> to vector<8x64xf32>
    %46 = vector.extract_strided_slice %43 {offsets = [8, 0], sizes = [8, 64], strides = [1, 1]} : vector<16x64xf32> to vector<8x64xf32>
    %47 = tpu.concatenate %45, %44, %46, %44 in 0 : vector<8x64xf32>, vector<1x64xf32>, vector<8x64xf32>, vector<1x64xf32> -> vector<18x64xf32>
    %c0_27 = arith.constant 0 : index
    %c0_28 = arith.constant 0 : index
    %48 = vector.load %arg10[%c0_27, %c0_28] : memref<18x64xf32, #tpu.memory_space<vmem>>, vector<18x64xf32>
    %49 = arith.addf %47, %48 : vector<18x64xf32>
    %c0_29 = arith.constant 0 : index
    %c0_30 = arith.constant 0 : index
    %50 = vector.load %arg11[%c0_29, %c0_30] : memref<18x18xf32, #tpu.memory_space<vmem>>, vector<18x18xf32>
    %c0_31 = arith.constant 0 : index
    %c0_32 = arith.constant 0 : index
    %c0_33 = arith.constant 0 : index
    %51 = vector.load %arg12[%c0_31, %c0_32, %c0_33] : memref<2x1x64xf32, #tpu.memory_space<vmem>>, vector<1x1x64xf32>
    %52 = vector.shape_cast %51 : vector<1x1x64xf32> to vector<1x64xf32>
    %c0_34 = arith.constant 0 : index
    %c0_35 = arith.constant 0 : index
    %c0_36 = arith.constant 0 : index
    %53 = vector.load %arg13[%c0_34, %c0_35, %c0_36] : memref<2x1x64xf32, #tpu.memory_space<vmem>>, vector<1x1x64xf32>
    %54 = vector.shape_cast %53 : vector<1x1x64xf32> to vector<1x64xf32>
    %cst_37 = arith.constant dense<0.000000e+00> : vector<18xf32>
    %55 = vector.multi_reduction <add>, %49, %cst_37 [1] : vector<18x64xf32> to vector<18xf32>
    %56 = vector.shape_cast %55 : vector<18xf32> to vector<18x1xf32>
    %cst_38 = arith.constant 6.400000e+01 : f32
    %57 = vector.broadcast %cst_38 : f32 to vector<18x1xf32>
    %58 = arith.divf %56, %57 : vector<18x1xf32>
    %59 = vector.broadcast %58 : vector<18x1xf32> to vector<18x64xf32>
    %60 = arith.subf %49, %59 : vector<18x64xf32>
    %61 = arith.mulf %60, %60 : vector<18x64xf32>
    %cst_39 = arith.constant dense<0.000000e+00> : vector<18xf32>
    %62 = vector.multi_reduction <add>, %61, %cst_39 [1] : vector<18x64xf32> to vector<18xf32>
    %63 = vector.shape_cast %62 : vector<18xf32> to vector<18x1xf32>
    %cst_40 = arith.constant 6.400000e+01 : f32
    %64 = vector.broadcast %cst_40 : f32 to vector<18x1xf32>
    %65 = arith.divf %63, %64 : vector<18x1xf32>
    %cst_41 = arith.constant 9.99999974E-6 : f32
    %66 = vector.broadcast %cst_41 : f32 to vector<18x1xf32>
    %67 = arith.addf %65, %66 : vector<18x1xf32>
    %68 = math.rsqrt %67 : vector<18x1xf32>
    %69 = vector.broadcast %68 : vector<18x1xf32> to vector<18x64xf32>
    %70 = arith.mulf %60, %69 : vector<18x64xf32>
    %71 = vector.broadcast %52 : vector<1x64xf32> to vector<18x64xf32>
    %72 = arith.mulf %70, %71 : vector<18x64xf32>
    %73 = vector.broadcast %54 : vector<1x64xf32> to vector<18x64xf32>
    %74 = arith.addf %72, %73 : vector<18x64xf32>
    %c0_42 = arith.constant 0 : index
    %c0_43 = arith.constant 0 : index
    %c0_44 = arith.constant 0 : index
    %75 = vector.load %arg14[%c0_42, %c0_43, %c0_44] : memref<2x64x192xf32, #tpu.memory_space<vmem>>, vector<1x64x192xf32>
    %76 = vector.shape_cast %75 : vector<1x64x192xf32> to vector<64x192xf32>
    %cst_45 = arith.constant dense<0.000000e+00> : vector<18x192xf32>
    %77 = tpu.matmul %74, %76, %cst_45 {dimension_numbers = #tpu.dot_dimension_numbers<[1], [0], [0], [1], [0, 0, 1, 1], [], []>} : vector<18x64xf32>, vector<64x192xf32>, vector<18x192xf32> -> vector<18x192xf32>
    %c0_46 = arith.constant 0 : index
    %c0_47 = arith.constant 0 : index
    %c0_48 = arith.constant 0 : index
    %78 = vector.load %arg15[%c0_46, %c0_47, %c0_48] : memref<2x1x192xf32, #tpu.memory_space<vmem>>, vector<1x1x192xf32>
    %79 = vector.shape_cast %78 : vector<1x1x192xf32> to vector<1x192xf32>
    %80 = vector.broadcast %79 : vector<1x192xf32> to vector<18x192xf32>
    %81 = arith.addf %77, %80 : vector<18x192xf32>
    %82 = vector.extract_strided_slice %81 {offsets = [0, 0], sizes = [18, 16], strides = [1, 1]} : vector<18x192xf32> to vector<18x16xf32>
    %83 = vector.extract_strided_slice %81 {offsets = [0, 64], sizes = [18, 16], strides = [1, 1]} : vector<18x192xf32> to vector<18x16xf32>
    %84 = vector.extract_strided_slice %81 {offsets = [0, 128], sizes = [18, 16], strides = [1, 1]} : vector<18x192xf32> to vector<18x16xf32>
    %cst_49 = arith.constant dense<0.000000e+00> : vector<18x18xf32>
    %85 = tpu.matmul %82, %83, %cst_49 {dimension_numbers = #tpu.dot_dimension_numbers<[1], [1], [0], [0], [0, 0, 1, 0], [], []>} : vector<18x16xf32>, vector<18x16xf32>, vector<18x18xf32> -> vector<18x18xf32>
    %86 = arith.addf %85, %50 : vector<18x18xf32>
    %cst_50 = arith.constant dense<0xFF800000> : vector<18xf32>
    %87 = vector.multi_reduction <maximumf>, %86, %cst_50 [1] : vector<18x18xf32> to vector<18xf32>
    %88 = vector.shape_cast %87 : vector<18xf32> to vector<18x1xf32>
    %89 = vector.broadcast %88 : vector<18x1xf32> to vector<18x18xf32>
    %90 = arith.subf %86, %89 : vector<18x18xf32>
    %91 = math.exp %90 : vector<18x18xf32>
    %cst_51 = arith.constant dense<0.000000e+00> : vector<18xf32>
    %92 = vector.multi_reduction <add>, %91, %cst_51 [1] : vector<18x18xf32> to vector<18xf32>
    %93 = vector.shape_cast %92 : vector<18xf32> to vector<18x1xf32>
    %94 = tpu.reciprocal %93 {approx = true} : vector<18x1xf32> -> vector<18x1xf32>
    %95 = vector.broadcast %94 : vector<18x1xf32> to vector<18x18xf32>
    %96 = arith.mulf %91, %95 : vector<18x18xf32>
    %cst_52 = arith.constant dense<0.000000e+00> : vector<18x16xf32>
    %97 = tpu.matmul %96, %84, %cst_52 {dimension_numbers = #tpu.dot_dimension_numbers<[1], [0], [0], [1], [0, 0, 1, 1], [], []>} : vector<18x18xf32>, vector<18x16xf32>, vector<18x16xf32> -> vector<18x16xf32>
    %c0_53 = arith.constant 0 : index
    %c0_54 = arith.constant 0 : index
    %c0_55 = arith.constant 0 : index
    %c0_56 = arith.constant 0 : index
    %98 = vector.load %arg16[%c0_53, %c0_54, %c0_55, %c0_56] : memref<2x4x16x64xf32, #tpu.memory_space<vmem>>, vector<1x1x16x64xf32>
    %99 = vector.shape_cast %98 : vector<1x1x16x64xf32> to vector<16x64xf32>
    %cst_57 = arith.constant dense<0.000000e+00> : vector<18x64xf32>
    %100 = tpu.matmul %97, %99, %cst_57 {dimension_numbers = #tpu.dot_dimension_numbers<[1], [0], [0], [1], [0, 0, 1, 1], [], []>} : vector<18x16xf32>, vector<16x64xf32>, vector<18x64xf32> -> vector<18x64xf32>
    %101 = vector.extract_strided_slice %81 {offsets = [0, 16], sizes = [18, 16], strides = [1, 1]} : vector<18x192xf32> to vector<18x16xf32>
    %102 = vector.extract_strided_slice %81 {offsets = [0, 80], sizes = [18, 16], strides = [1, 1]} : vector<18x192xf32> to vector<18x16xf32>
    %103 = vector.extract_strided_slice %81 {offsets = [0, 144], sizes = [18, 16], strides = [1, 1]} : vector<18x192xf32> to vector<18x16xf32>
    %cst_58 = arith.constant dense<0.000000e+00> : vector<18x18xf32>
    %104 = tpu.matmul %101, %102, %cst_58 {dimension_numbers = #tpu.dot_dimension_numbers<[1], [1], [0], [0], [0, 0, 1, 0], [], []>} : vector<18x16xf32>, vector<18x16xf32>, vector<18x18xf32> -> vector<18x18xf32>
    %105 = arith.addf %104, %50 : vector<18x18xf32>
    %cst_59 = arith.constant dense<0xFF800000> : vector<18xf32>
    %106 = vector.multi_reduction <maximumf>, %105, %cst_59 [1] : vector<18x18xf32> to vector<18xf32>
    %107 = vector.shape_cast %106 : vector<18xf32> to vector<18x1xf32>
    %108 = vector.broadcast %107 : vector<18x1xf32> to vector<18x18xf32>
    %109 = arith.subf %105, %108 : vector<18x18xf32>
    %110 = math.exp %109 : vector<18x18xf32>
    %cst_60 = arith.constant dense<0.000000e+00> : vector<18xf32>
    %111 = vector.multi_reduction <add>, %110, %cst_60 [1] : vector<18x18xf32> to vector<18xf32>
    %112 = vector.shape_cast %111 : vector<18xf32> to vector<18x1xf32>
    %113 = tpu.reciprocal %112 {approx = true} : vector<18x1xf32> -> vector<18x1xf32>
    %114 = vector.broadcast %113 : vector<18x1xf32> to vector<18x18xf32>
    %115 = arith.mulf %110, %114 : vector<18x18xf32>
    %cst_61 = arith.constant dense<0.000000e+00> : vector<18x16xf32>
    %116 = tpu.matmul %115, %103, %cst_61 {dimension_numbers = #tpu.dot_dimension_numbers<[1], [0], [0], [1], [0, 0, 1, 1], [], []>} : vector<18x18xf32>, vector<18x16xf32>, vector<18x16xf32> -> vector<18x16xf32>
    %c0_62 = arith.constant 0 : index
    %c1 = arith.constant 1 : index
    %c0_63 = arith.constant 0 : index
    %c0_64 = arith.constant 0 : index
    %117 = vector.load %arg16[%c0_62, %c1, %c0_63, %c0_64] : memref<2x4x16x64xf32, #tpu.memory_space<vmem>>, vector<1x1x16x64xf32>
    %118 = vector.shape_cast %117 : vector<1x1x16x64xf32> to vector<16x64xf32>
    %cst_65 = arith.constant dense<0.000000e+00> : vector<18x64xf32>
    %119 = tpu.matmul %116, %118, %cst_65 {dimension_numbers = #tpu.dot_dimension_numbers<[1], [0], [0], [1], [0, 0, 1, 1], [], []>} : vector<18x16xf32>, vector<16x64xf32>, vector<18x64xf32> -> vector<18x64xf32>
    %120 = arith.addf %100, %119 : vector<18x64xf32>
    %121 = vector.extract_strided_slice %81 {offsets = [0, 32], sizes = [18, 16], strides = [1, 1]} : vector<18x192xf32> to vector<18x16xf32>
    %122 = vector.extract_strided_slice %81 {offsets = [0, 96], sizes = [18, 16], strides = [1, 1]} : vector<18x192xf32> to vector<18x16xf32>
    %123 = vector.extract_strided_slice %81 {offsets = [0, 160], sizes = [18, 16], strides = [1, 1]} : vector<18x192xf32> to vector<18x16xf32>
    %cst_66 = arith.constant dense<0.000000e+00> : vector<18x18xf32>
    %124 = tpu.matmul %121, %122, %cst_66 {dimension_numbers = #tpu.dot_dimension_numbers<[1], [1], [0], [0], [0, 0, 1, 0], [], []>} : vector<18x16xf32>, vector<18x16xf32>, vector<18x18xf32> -> vector<18x18xf32>
    %125 = arith.addf %124, %50 : vector<18x18xf32>
    %cst_67 = arith.constant dense<0xFF800000> : vector<18xf32>
    %126 = vector.multi_reduction <maximumf>, %125, %cst_67 [1] : vector<18x18xf32> to vector<18xf32>
    %127 = vector.shape_cast %126 : vector<18xf32> to vector<18x1xf32>
    %128 = vector.broadcast %127 : vector<18x1xf32> to vector<18x18xf32>
    %129 = arith.subf %125, %128 : vector<18x18xf32>
    %130 = math.exp %129 : vector<18x18xf32>
    %cst_68 = arith.constant dense<0.000000e+00> : vector<18xf32>
    %131 = vector.multi_reduction <add>, %130, %cst_68 [1] : vector<18x18xf32> to vector<18xf32>
    %132 = vector.shape_cast %131 : vector<18xf32> to vector<18x1xf32>
    %133 = tpu.reciprocal %132 {approx = true} : vector<18x1xf32> -> vector<18x1xf32>
    %134 = vector.broadcast %133 : vector<18x1xf32> to vector<18x18xf32>
    %135 = arith.mulf %130, %134 : vector<18x18xf32>
    %cst_69 = arith.constant dense<0.000000e+00> : vector<18x16xf32>
    %136 = tpu.matmul %135, %123, %cst_69 {dimension_numbers = #tpu.dot_dimension_numbers<[1], [0], [0], [1], [0, 0, 1, 1], [], []>} : vector<18x18xf32>, vector<18x16xf32>, vector<18x16xf32> -> vector<18x16xf32>
    %c0_70 = arith.constant 0 : index
    %c2 = arith.constant 2 : index
    %c0_71 = arith.constant 0 : index
    %c0_72 = arith.constant 0 : index
    %137 = vector.load %arg16[%c0_70, %c2, %c0_71, %c0_72] : memref<2x4x16x64xf32, #tpu.memory_space<vmem>>, vector<1x1x16x64xf32>
    %138 = vector.shape_cast %137 : vector<1x1x16x64xf32> to vector<16x64xf32>
    %cst_73 = arith.constant dense<0.000000e+00> : vector<18x64xf32>
    %139 = tpu.matmul %136, %138, %cst_73 {dimension_numbers = #tpu.dot_dimension_numbers<[1], [0], [0], [1], [0, 0, 1, 1], [], []>} : vector<18x16xf32>, vector<16x64xf32>, vector<18x64xf32> -> vector<18x64xf32>
    %140 = arith.addf %120, %139 : vector<18x64xf32>
    %141 = vector.extract_strided_slice %81 {offsets = [0, 48], sizes = [18, 16], strides = [1, 1]} : vector<18x192xf32> to vector<18x16xf32>
    %142 = vector.extract_strided_slice %81 {offsets = [0, 112], sizes = [18, 16], strides = [1, 1]} : vector<18x192xf32> to vector<18x16xf32>
    %143 = vector.extract_strided_slice %81 {offsets = [0, 176], sizes = [18, 16], strides = [1, 1]} : vector<18x192xf32> to vector<18x16xf32>
    %cst_74 = arith.constant dense<0.000000e+00> : vector<18x18xf32>
    %144 = tpu.matmul %141, %142, %cst_74 {dimension_numbers = #tpu.dot_dimension_numbers<[1], [1], [0], [0], [0, 0, 1, 0], [], []>} : vector<18x16xf32>, vector<18x16xf32>, vector<18x18xf32> -> vector<18x18xf32>
    %145 = arith.addf %144, %50 : vector<18x18xf32>
    %cst_75 = arith.constant dense<0xFF800000> : vector<18xf32>
    %146 = vector.multi_reduction <maximumf>, %145, %cst_75 [1] : vector<18x18xf32> to vector<18xf32>
    %147 = vector.shape_cast %146 : vector<18xf32> to vector<18x1xf32>
    %148 = vector.broadcast %147 : vector<18x1xf32> to vector<18x18xf32>
    %149 = arith.subf %145, %148 : vector<18x18xf32>
    %150 = math.exp %149 : vector<18x18xf32>
    %cst_76 = arith.constant dense<0.000000e+00> : vector<18xf32>
    %151 = vector.multi_reduction <add>, %150, %cst_76 [1] : vector<18x18xf32> to vector<18xf32>
    %152 = vector.shape_cast %151 : vector<18xf32> to vector<18x1xf32>
    %153 = tpu.reciprocal %152 {approx = true} : vector<18x1xf32> -> vector<18x1xf32>
    %154 = vector.broadcast %153 : vector<18x1xf32> to vector<18x18xf32>
    %155 = arith.mulf %150, %154 : vector<18x18xf32>
    %cst_77 = arith.constant dense<0.000000e+00> : vector<18x16xf32>
    %156 = tpu.matmul %155, %143, %cst_77 {dimension_numbers = #tpu.dot_dimension_numbers<[1], [0], [0], [1], [0, 0, 1, 1], [], []>} : vector<18x18xf32>, vector<18x16xf32>, vector<18x16xf32> -> vector<18x16xf32>
    %c0_78 = arith.constant 0 : index
    %c3 = arith.constant 3 : index
    %c0_79 = arith.constant 0 : index
    %c0_80 = arith.constant 0 : index
    %157 = vector.load %arg16[%c0_78, %c3, %c0_79, %c0_80] : memref<2x4x16x64xf32, #tpu.memory_space<vmem>>, vector<1x1x16x64xf32>
    %158 = vector.shape_cast %157 : vector<1x1x16x64xf32> to vector<16x64xf32>
    %cst_81 = arith.constant dense<0.000000e+00> : vector<18x64xf32>
    %159 = tpu.matmul %156, %158, %cst_81 {dimension_numbers = #tpu.dot_dimension_numbers<[1], [0], [0], [1], [0, 0, 1, 1], [], []>} : vector<18x16xf32>, vector<16x64xf32>, vector<18x64xf32> -> vector<18x64xf32>
    %160 = arith.addf %140, %159 : vector<18x64xf32>
    %161 = arith.addf %49, %160 : vector<18x64xf32>
    %c0_82 = arith.constant 0 : index
    %c0_83 = arith.constant 0 : index
    %c0_84 = arith.constant 0 : index
    %162 = vector.load %arg17[%c0_82, %c0_83, %c0_84] : memref<2x1x64xf32, #tpu.memory_space<vmem>>, vector<1x1x64xf32>
    %163 = vector.shape_cast %162 : vector<1x1x64xf32> to vector<1x64xf32>
    %164 = vector.broadcast %163 : vector<1x64xf32> to vector<18x64xf32>
    %165 = arith.addf %161, %164 : vector<18x64xf32>
    %c0_85 = arith.constant 0 : index
    %c0_86 = arith.constant 0 : index
    %c0_87 = arith.constant 0 : index
    %166 = vector.load %arg18[%c0_85, %c0_86, %c0_87] : memref<2x1x64xf32, #tpu.memory_space<vmem>>, vector<1x1x64xf32>
    %167 = vector.shape_cast %166 : vector<1x1x64xf32> to vector<1x64xf32>
    %c0_88 = arith.constant 0 : index
    %c0_89 = arith.constant 0 : index
    %c0_90 = arith.constant 0 : index
    %168 = vector.load %arg19[%c0_88, %c0_89, %c0_90] : memref<2x1x64xf32, #tpu.memory_space<vmem>>, vector<1x1x64xf32>
    %169 = vector.shape_cast %168 : vector<1x1x64xf32> to vector<1x64xf32>
    %cst_91 = arith.constant dense<0.000000e+00> : vector<18xf32>
    %170 = vector.multi_reduction <add>, %165, %cst_91 [1] : vector<18x64xf32> to vector<18xf32>
    %171 = vector.shape_cast %170 : vector<18xf32> to vector<18x1xf32>
    %cst_92 = arith.constant 6.400000e+01 : f32
    %172 = vector.broadcast %cst_92 : f32 to vector<18x1xf32>
    %173 = arith.divf %171, %172 : vector<18x1xf32>
    %174 = vector.broadcast %173 : vector<18x1xf32> to vector<18x64xf32>
    %175 = arith.subf %165, %174 : vector<18x64xf32>
    %176 = arith.mulf %175, %175 : vector<18x64xf32>
    %cst_93 = arith.constant dense<0.000000e+00> : vector<18xf32>
    %177 = vector.multi_reduction <add>, %176, %cst_93 [1] : vector<18x64xf32> to vector<18xf32>
    %178 = vector.shape_cast %177 : vector<18xf32> to vector<18x1xf32>
    %cst_94 = arith.constant 6.400000e+01 : f32
    %179 = vector.broadcast %cst_94 : f32 to vector<18x1xf32>
    %180 = arith.divf %178, %179 : vector<18x1xf32>
    %cst_95 = arith.constant 9.99999974E-6 : f32
    %181 = vector.broadcast %cst_95 : f32 to vector<18x1xf32>
    %182 = arith.addf %180, %181 : vector<18x1xf32>
    %183 = math.rsqrt %182 : vector<18x1xf32>
    %184 = vector.broadcast %183 : vector<18x1xf32> to vector<18x64xf32>
    %185 = arith.mulf %175, %184 : vector<18x64xf32>
    %186 = vector.broadcast %167 : vector<1x64xf32> to vector<18x64xf32>
    %187 = arith.mulf %185, %186 : vector<18x64xf32>
    %188 = vector.broadcast %169 : vector<1x64xf32> to vector<18x64xf32>
    %189 = arith.addf %187, %188 : vector<18x64xf32>
    %c0_96 = arith.constant 0 : index
    %c0_97 = arith.constant 0 : index
    %c0_98 = arith.constant 0 : index
    %190 = vector.load %arg20[%c0_96, %c0_97, %c0_98] : memref<2x64x256xf32, #tpu.memory_space<vmem>>, vector<1x64x256xf32>
    %191 = vector.shape_cast %190 : vector<1x64x256xf32> to vector<64x256xf32>
    %cst_99 = arith.constant dense<0.000000e+00> : vector<18x256xf32>
    %192 = tpu.matmul %189, %191, %cst_99 {dimension_numbers = #tpu.dot_dimension_numbers<[1], [0], [0], [1], [0, 0, 1, 1], [], []>} : vector<18x64xf32>, vector<64x256xf32>, vector<18x256xf32> -> vector<18x256xf32>
    %c0_100 = arith.constant 0 : index
    %c0_101 = arith.constant 0 : index
    %c0_102 = arith.constant 0 : index
    %193 = vector.load %arg21[%c0_100, %c0_101, %c0_102] : memref<2x1x256xf32, #tpu.memory_space<vmem>>, vector<1x1x256xf32>
    %194 = vector.shape_cast %193 : vector<1x1x256xf32> to vector<1x256xf32>
    %195 = vector.broadcast %194 : vector<1x256xf32> to vector<18x256xf32>
    %196 = arith.addf %192, %195 : vector<18x256xf32>
    %cst_103 = arith.constant 5.000000e-01 : f32
    %197 = vector.broadcast %cst_103 : f32 to vector<18x256xf32>
    %198 = arith.mulf %197, %196 : vector<18x256xf32>
    %cst_104 = arith.constant 4.471500e-02 : f32
    %199 = vector.broadcast %cst_104 : f32 to vector<18x256xf32>
    %200 = arith.mulf %199, %196 : vector<18x256xf32>
    %201 = arith.mulf %200, %196 : vector<18x256xf32>
    %202 = arith.mulf %201, %196 : vector<18x256xf32>
    %203 = arith.addf %196, %202 : vector<18x256xf32>
    %cst_105 = arith.constant 0.797884583 : f32
    %204 = vector.broadcast %cst_105 : f32 to vector<18x256xf32>
    %205 = arith.mulf %204, %203 : vector<18x256xf32>
    %206 = math.tanh %205 : vector<18x256xf32>
    %cst_106 = arith.constant 1.000000e+00 : f32
    %207 = vector.broadcast %cst_106 : f32 to vector<18x256xf32>
    %208 = arith.addf %207, %206 : vector<18x256xf32>
    %209 = arith.mulf %198, %208 : vector<18x256xf32>
    %c0_107 = arith.constant 0 : index
    %c0_108 = arith.constant 0 : index
    %c0_109 = arith.constant 0 : index
    %210 = vector.load %arg22[%c0_107, %c0_108, %c0_109] : memref<2x256x64xf32, #tpu.memory_space<vmem>>, vector<1x256x64xf32>
    %211 = vector.shape_cast %210 : vector<1x256x64xf32> to vector<256x64xf32>
    %cst_110 = arith.constant dense<0.000000e+00> : vector<18x64xf32>
    %212 = tpu.matmul %209, %211, %cst_110 {dimension_numbers = #tpu.dot_dimension_numbers<[1], [0], [0], [1], [0, 0, 1, 1], [], []>} : vector<18x256xf32>, vector<256x64xf32>, vector<18x64xf32> -> vector<18x64xf32>
    %213 = arith.addf %165, %212 : vector<18x64xf32>
    %c0_111 = arith.constant 0 : index
    %c0_112 = arith.constant 0 : index
    %c0_113 = arith.constant 0 : index
    %214 = vector.load %arg23[%c0_111, %c0_112, %c0_113] : memref<2x1x64xf32, #tpu.memory_space<vmem>>, vector<1x1x64xf32>
    %215 = vector.shape_cast %214 : vector<1x1x64xf32> to vector<1x64xf32>
    %216 = vector.broadcast %215 : vector<1x64xf32> to vector<18x64xf32>
    %217 = arith.addf %213, %216 : vector<18x64xf32>
    %c0_114 = arith.constant 0 : index
    %c0_115 = arith.constant 0 : index
    %218 = vector.load %arg26[%c0_114, %c0_115] : memref<64x256xf32, #tpu.memory_space<vmem>>, vector<64x256xf32>
    %cst_116 = arith.constant dense<0.000000e+00> : vector<18x256xf32>
    %219 = tpu.matmul %217, %218, %cst_116 {dimension_numbers = #tpu.dot_dimension_numbers<[1], [0], [0], [1], [0, 0, 1, 1], [], []>} : vector<18x64xf32>, vector<64x256xf32>, vector<18x256xf32> -> vector<18x256xf32>
    %c0_117 = arith.constant 0 : index
    %c0_118 = arith.constant 0 : index
    %220 = vector.load %arg27[%c0_117, %c0_118] : memref<1x256xf32, #tpu.memory_space<vmem>>, vector<1x256xf32>
    %221 = vector.broadcast %220 : vector<1x256xf32> to vector<18x256xf32>
    %222 = arith.addf %219, %221 : vector<18x256xf32>
    %cst_119 = arith.constant 5.000000e-01 : f32
    %223 = vector.broadcast %cst_119 : f32 to vector<18x256xf32>
    %224 = arith.mulf %223, %222 : vector<18x256xf32>
    %cst_120 = arith.constant 4.471500e-02 : f32
    %225 = vector.broadcast %cst_120 : f32 to vector<18x256xf32>
    %226 = arith.mulf %225, %222 : vector<18x256xf32>
    %227 = arith.mulf %226, %222 : vector<18x256xf32>
    %228 = arith.mulf %227, %222 : vector<18x256xf32>
    %229 = arith.addf %222, %228 : vector<18x256xf32>
    %cst_121 = arith.constant 0.797884583 : f32
    %230 = vector.broadcast %cst_121 : f32 to vector<18x256xf32>
    %231 = arith.mulf %230, %229 : vector<18x256xf32>
    %232 = math.tanh %231 : vector<18x256xf32>
    %cst_122 = arith.constant 1.000000e+00 : f32
    %233 = vector.broadcast %cst_122 : f32 to vector<18x256xf32>
    %234 = arith.addf %233, %232 : vector<18x256xf32>
    %235 = arith.mulf %224, %234 : vector<18x256xf32>
    %c0_123 = arith.constant 0 : index
    %c0_124 = arith.constant 0 : index
    %236 = vector.load %arg28[%c0_123, %c0_124] : memref<256x64xf32, #tpu.memory_space<vmem>>, vector<256x64xf32>
    %cst_125 = arith.constant dense<0.000000e+00> : vector<18x64xf32>
    %237 = tpu.matmul %235, %236, %cst_125 {dimension_numbers = #tpu.dot_dimension_numbers<[1], [0], [0], [1], [0, 0, 1, 1], [], []>} : vector<18x256xf32>, vector<256x64xf32>, vector<18x64xf32> -> vector<18x64xf32>
    %c0_126 = arith.constant 0 : index
    %c0_127 = arith.constant 0 : index
    %238 = vector.load %arg29[%c0_126, %c0_127] : memref<1x64xf32, #tpu.memory_space<vmem>>, vector<1x64xf32>
    %239 = vector.broadcast %238 : vector<1x64xf32> to vector<18x64xf32>
    %240 = arith.addf %237, %239 : vector<18x64xf32>
    %cst_128 = arith.constant 5.000000e-01 : f32
    %241 = vector.broadcast %cst_128 : f32 to vector<18x64xf32>
    %242 = arith.mulf %241, %240 : vector<18x64xf32>
    %cst_129 = arith.constant 4.471500e-02 : f32
    %243 = vector.broadcast %cst_129 : f32 to vector<18x64xf32>
    %244 = arith.mulf %243, %240 : vector<18x64xf32>
    %245 = arith.mulf %244, %240 : vector<18x64xf32>
    %246 = arith.mulf %245, %240 : vector<18x64xf32>
    %247 = arith.addf %240, %246 : vector<18x64xf32>
    %cst_130 = arith.constant 0.797884583 : f32
    %248 = vector.broadcast %cst_130 : f32 to vector<18x64xf32>
    %249 = arith.mulf %248, %247 : vector<18x64xf32>
    %250 = math.tanh %249 : vector<18x64xf32>
    %cst_131 = arith.constant 1.000000e+00 : f32
    %251 = vector.broadcast %cst_131 : f32 to vector<18x64xf32>
    %252 = arith.addf %251, %250 : vector<18x64xf32>
    %253 = arith.mulf %242, %252 : vector<18x64xf32>
    %254 = vector.extract_strided_slice %253 {offsets = [0, 0], sizes = [8, 64], strides = [1, 1]} : vector<18x64xf32> to vector<8x64xf32>
    %c0_132 = arith.constant 0 : index
    %c0_133 = arith.constant 0 : index
    %c0_134 = arith.constant 0 : index
    %255 = vector.load %arg36[%c0_132, %c0_133, %c0_134] : memref<4x8x64xf32, #tpu.memory_space<vmem>>, vector<1x8x64xf32>
    %256 = vector.shape_cast %255 : vector<1x8x64xf32> to vector<8x64xf32>
    %257 = vector.shape_cast %254 : vector<8x64xf32> to vector<1x8x64xf32>
    tpu.vector_store %arg36[%c0_132, %c0_133, %c0_134], %257 {strides = array<i32>} : memref<4x8x64xf32, #tpu.memory_space<vmem>>, vector<1x8x64xf32>,
    %258 = vector.extract_strided_slice %253 {offsets = [9, 0], sizes = [8, 64], strides = [1, 1]} : vector<18x64xf32> to vector<8x64xf32>
    %c1_135 = arith.constant 1 : index
    %c0_136 = arith.constant 0 : index
    %c0_137 = arith.constant 0 : index
    %259 = vector.load %arg36[%c1_135, %c0_136, %c0_137] : memref<4x8x64xf32, #tpu.memory_space<vmem>>, vector<1x8x64xf32>
    %260 = vector.shape_cast %259 : vector<1x8x64xf32> to vector<8x64xf32>
    %261 = vector.shape_cast %258 : vector<8x64xf32> to vector<1x8x64xf32>
    tpu.vector_store %arg36[%c1_135, %c0_136, %c0_137], %261 {strides = array<i32>} : memref<4x8x64xf32, #tpu.memory_space<vmem>>, vector<1x8x64xf32>,
    %c1_138 = arith.constant 1 : index
    %c0_139 = arith.constant 0 : index
    %c0_140 = arith.constant 0 : index
    %262 = vector.load %arg12[%c1_138, %c0_139, %c0_140] : memref<2x1x64xf32, #tpu.memory_space<vmem>>, vector<1x1x64xf32>
    %263 = vector.shape_cast %262 : vector<1x1x64xf32> to vector<1x64xf32>
    %c1_141 = arith.constant 1 : index
    %c0_142 = arith.constant 0 : index
    %c0_143 = arith.constant 0 : index
    %264 = vector.load %arg13[%c1_141, %c0_142, %c0_143] : memref<2x1x64xf32, #tpu.memory_space<vmem>>, vector<1x1x64xf32>
    %265 = vector.shape_cast %264 : vector<1x1x64xf32> to vector<1x64xf32>
    %cst_144 = arith.constant dense<0.000000e+00> : vector<18xf32>
    %266 = vector.multi_reduction <add>, %217, %cst_144 [1] : vector<18x64xf32> to vector<18xf32>
    %267 = vector.shape_cast %266 : vector<18xf32> to vector<18x1xf32>
    %cst_145 = arith.constant 6.400000e+01 : f32
    %268 = vector.broadcast %cst_145 : f32 to vector<18x1xf32>
    %269 = arith.divf %267, %268 : vector<18x1xf32>
    %270 = vector.broadcast %269 : vector<18x1xf32> to vector<18x64xf32>
    %271 = arith.subf %217, %270 : vector<18x64xf32>
    %272 = arith.mulf %271, %271 : vector<18x64xf32>
    %cst_146 = arith.constant dense<0.000000e+00> : vector<18xf32>
    %273 = vector.multi_reduction <add>, %272, %cst_146 [1] : vector<18x64xf32> to vector<18xf32>
    %274 = vector.shape_cast %273 : vector<18xf32> to vector<18x1xf32>
    %cst_147 = arith.constant 6.400000e+01 : f32
    %275 = vector.broadcast %cst_147 : f32 to vector<18x1xf32>
    %276 = arith.divf %274, %275 : vector<18x1xf32>
    %cst_148 = arith.constant 9.99999974E-6 : f32
    %277 = vector.broadcast %cst_148 : f32 to vector<18x1xf32>
    %278 = arith.addf %276, %277 : vector<18x1xf32>
    %279 = math.rsqrt %278 : vector<18x1xf32>
    %280 = vector.broadcast %279 : vector<18x1xf32> to vector<18x64xf32>
    %281 = arith.mulf %271, %280 : vector<18x64xf32>
    %282 = vector.broadcast %263 : vector<1x64xf32> to vector<18x64xf32>
    %283 = arith.mulf %281, %282 : vector<18x64xf32>
    %284 = vector.broadcast %265 : vector<1x64xf32> to vector<18x64xf32>
    %285 = arith.addf %283, %284 : vector<18x64xf32>
    %c1_149 = arith.constant 1 : index
    %c0_150 = arith.constant 0 : index
    %c0_151 = arith.constant 0 : index
    %286 = vector.load %arg14[%c1_149, %c0_150, %c0_151] : memref<2x64x192xf32, #tpu.memory_space<vmem>>, vector<1x64x192xf32>
    %287 = vector.shape_cast %286 : vector<1x64x192xf32> to vector<64x192xf32>
    %cst_152 = arith.constant dense<0.000000e+00> : vector<18x192xf32>
    %288 = tpu.matmul %285, %287, %cst_152 {dimension_numbers = #tpu.dot_dimension_numbers<[1], [0], [0], [1], [0, 0, 1, 1], [], []>} : vector<18x64xf32>, vector<64x192xf32>, vector<18x192xf32> -> vector<18x192xf32>
    %c1_153 = arith.constant 1 : index
    %c0_154 = arith.constant 0 : index
    %c0_155 = arith.constant 0 : index
    %289 = vector.load %arg15[%c1_153, %c0_154, %c0_155] : memref<2x1x192xf32, #tpu.memory_space<vmem>>, vector<1x1x192xf32>
    %290 = vector.shape_cast %289 : vector<1x1x192xf32> to vector<1x192xf32>
    %291 = vector.broadcast %290 : vector<1x192xf32> to vector<18x192xf32>
    %292 = arith.addf %288, %291 : vector<18x192xf32>
    %293 = vector.extract_strided_slice %292 {offsets = [0, 0], sizes = [18, 16], strides = [1, 1]} : vector<18x192xf32> to vector<18x16xf32>
    %294 = vector.extract_strided_slice %292 {offsets = [0, 64], sizes = [18, 16], strides = [1, 1]} : vector<18x192xf32> to vector<18x16xf32>
    %295 = vector.extract_strided_slice %292 {offsets = [0, 128], sizes = [18, 16], strides = [1, 1]} : vector<18x192xf32> to vector<18x16xf32>
    %cst_156 = arith.constant dense<0.000000e+00> : vector<18x18xf32>
    %296 = tpu.matmul %293, %294, %cst_156 {dimension_numbers = #tpu.dot_dimension_numbers<[1], [1], [0], [0], [0, 0, 1, 0], [], []>} : vector<18x16xf32>, vector<18x16xf32>, vector<18x18xf32> -> vector<18x18xf32>
    %297 = arith.addf %296, %50 : vector<18x18xf32>
    %cst_157 = arith.constant dense<0xFF800000> : vector<18xf32>
    %298 = vector.multi_reduction <maximumf>, %297, %cst_157 [1] : vector<18x18xf32> to vector<18xf32>
    %299 = vector.shape_cast %298 : vector<18xf32> to vector<18x1xf32>
    %300 = vector.broadcast %299 : vector<18x1xf32> to vector<18x18xf32>
    %301 = arith.subf %297, %300 : vector<18x18xf32>
    %302 = math.exp %301 : vector<18x18xf32>
    %cst_158 = arith.constant dense<0.000000e+00> : vector<18xf32>
    %303 = vector.multi_reduction <add>, %302, %cst_158 [1] : vector<18x18xf32> to vector<18xf32>
    %304 = vector.shape_cast %303 : vector<18xf32> to vector<18x1xf32>
    %305 = tpu.reciprocal %304 {approx = true} : vector<18x1xf32> -> vector<18x1xf32>
    %306 = vector.broadcast %305 : vector<18x1xf32> to vector<18x18xf32>
    %307 = arith.mulf %302, %306 : vector<18x18xf32>
    %cst_159 = arith.constant dense<0.000000e+00> : vector<18x16xf32>
    %308 = tpu.matmul %307, %295, %cst_159 {dimension_numbers = #tpu.dot_dimension_numbers<[1], [0], [0], [1], [0, 0, 1, 1], [], []>} : vector<18x18xf32>, vector<18x16xf32>, vector<18x16xf32> -> vector<18x16xf32>
    %c1_160 = arith.constant 1 : index
    %c0_161 = arith.constant 0 : index
    %c0_162 = arith.constant 0 : index
    %c0_163 = arith.constant 0 : index
    %309 = vector.load %arg16[%c1_160, %c0_161, %c0_162, %c0_163] : memref<2x4x16x64xf32, #tpu.memory_space<vmem>>, vector<1x1x16x64xf32>
    %310 = vector.shape_cast %309 : vector<1x1x16x64xf32> to vector<16x64xf32>
    %cst_164 = arith.constant dense<0.000000e+00> : vector<18x64xf32>
    %311 = tpu.matmul %308, %310, %cst_164 {dimension_numbers = #tpu.dot_dimension_numbers<[1], [0], [0], [1], [0, 0, 1, 1], [], []>} : vector<18x16xf32>, vector<16x64xf32>, vector<18x64xf32> -> vector<18x64xf32>
    %312 = vector.extract_strided_slice %292 {offsets = [0, 16], sizes = [18, 16], strides = [1, 1]} : vector<18x192xf32> to vector<18x16xf32>
    %313 = vector.extract_strided_slice %292 {offsets = [0, 80], sizes = [18, 16], strides = [1, 1]} : vector<18x192xf32> to vector<18x16xf32>
    %314 = vector.extract_strided_slice %292 {offsets = [0, 144], sizes = [18, 16], strides = [1, 1]} : vector<18x192xf32> to vector<18x16xf32>
    %cst_165 = arith.constant dense<0.000000e+00> : vector<18x18xf32>
    %315 = tpu.matmul %312, %313, %cst_165 {dimension_numbers = #tpu.dot_dimension_numbers<[1], [1], [0], [0], [0, 0, 1, 0], [], []>} : vector<18x16xf32>, vector<18x16xf32>, vector<18x18xf32> -> vector<18x18xf32>
    %316 = arith.addf %315, %50 : vector<18x18xf32>
    %cst_166 = arith.constant dense<0xFF800000> : vector<18xf32>
    %317 = vector.multi_reduction <maximumf>, %316, %cst_166 [1] : vector<18x18xf32> to vector<18xf32>
    %318 = vector.shape_cast %317 : vector<18xf32> to vector<18x1xf32>
    %319 = vector.broadcast %318 : vector<18x1xf32> to vector<18x18xf32>
    %320 = arith.subf %316, %319 : vector<18x18xf32>
    %321 = math.exp %320 : vector<18x18xf32>
    %cst_167 = arith.constant dense<0.000000e+00> : vector<18xf32>
    %322 = vector.multi_reduction <add>, %321, %cst_167 [1] : vector<18x18xf32> to vector<18xf32>
    %323 = vector.shape_cast %322 : vector<18xf32> to vector<18x1xf32>
    %324 = tpu.reciprocal %323 {approx = true} : vector<18x1xf32> -> vector<18x1xf32>
    %325 = vector.broadcast %324 : vector<18x1xf32> to vector<18x18xf32>
    %326 = arith.mulf %321, %325 : vector<18x18xf32>
    %cst_168 = arith.constant dense<0.000000e+00> : vector<18x16xf32>
    %327 = tpu.matmul %326, %314, %cst_168 {dimension_numbers = #tpu.dot_dimension_numbers<[1], [0], [0], [1], [0, 0, 1, 1], [], []>} : vector<18x18xf32>, vector<18x16xf32>, vector<18x16xf32> -> vector<18x16xf32>
    %c1_169 = arith.constant 1 : index
    %c1_170 = arith.constant 1 : index
    %c0_171 = arith.constant 0 : index
    %c0_172 = arith.constant 0 : index
    %328 = vector.load %arg16[%c1_169, %c1_170, %c0_171, %c0_172] : memref<2x4x16x64xf32, #tpu.memory_space<vmem>>, vector<1x1x16x64xf32>
    %329 = vector.shape_cast %328 : vector<1x1x16x64xf32> to vector<16x64xf32>
    %cst_173 = arith.constant dense<0.000000e+00> : vector<18x64xf32>
    %330 = tpu.matmul %327, %329, %cst_173 {dimension_numbers = #tpu.dot_dimension_numbers<[1], [0], [0], [1], [0, 0, 1, 1], [], []>} : vector<18x16xf32>, vector<16x64xf32>, vector<18x64xf32> -> vector<18x64xf32>
    %331 = arith.addf %311, %330 : vector<18x64xf32>
    %332 = vector.extract_strided_slice %292 {offsets = [0, 32], sizes = [18, 16], strides = [1, 1]} : vector<18x192xf32> to vector<18x16xf32>
    %333 = vector.extract_strided_slice %292 {offsets = [0, 96], sizes = [18, 16], strides = [1, 1]} : vector<18x192xf32> to vector<18x16xf32>
    %334 = vector.extract_strided_slice %292 {offsets = [0, 160], sizes = [18, 16], strides = [1, 1]} : vector<18x192xf32> to vector<18x16xf32>
    %cst_174 = arith.constant dense<0.000000e+00> : vector<18x18xf32>
    %335 = tpu.matmul %332, %333, %cst_174 {dimension_numbers = #tpu.dot_dimension_numbers<[1], [1], [0], [0], [0, 0, 1, 0], [], []>} : vector<18x16xf32>, vector<18x16xf32>, vector<18x18xf32> -> vector<18x18xf32>
    %336 = arith.addf %335, %50 : vector<18x18xf32>
    %cst_175 = arith.constant dense<0xFF800000> : vector<18xf32>
    %337 = vector.multi_reduction <maximumf>, %336, %cst_175 [1] : vector<18x18xf32> to vector<18xf32>
    %338 = vector.shape_cast %337 : vector<18xf32> to vector<18x1xf32>
    %339 = vector.broadcast %338 : vector<18x1xf32> to vector<18x18xf32>
    %340 = arith.subf %336, %339 : vector<18x18xf32>
    %341 = math.exp %340 : vector<18x18xf32>
    %cst_176 = arith.constant dense<0.000000e+00> : vector<18xf32>
    %342 = vector.multi_reduction <add>, %341, %cst_176 [1] : vector<18x18xf32> to vector<18xf32>
    %343 = vector.shape_cast %342 : vector<18xf32> to vector<18x1xf32>
    %344 = tpu.reciprocal %343 {approx = true} : vector<18x1xf32> -> vector<18x1xf32>
    %345 = vector.broadcast %344 : vector<18x1xf32> to vector<18x18xf32>
    %346 = arith.mulf %341, %345 : vector<18x18xf32>
    %cst_177 = arith.constant dense<0.000000e+00> : vector<18x16xf32>
    %347 = tpu.matmul %346, %334, %cst_177 {dimension_numbers = #tpu.dot_dimension_numbers<[1], [0], [0], [1], [0, 0, 1, 1], [], []>} : vector<18x18xf32>, vector<18x16xf32>, vector<18x16xf32> -> vector<18x16xf32>
    %c1_178 = arith.constant 1 : index
    %c2_179 = arith.constant 2 : index
    %c0_180 = arith.constant 0 : index
    %c0_181 = arith.constant 0 : index
    %348 = vector.load %arg16[%c1_178, %c2_179, %c0_180, %c0_181] : memref<2x4x16x64xf32, #tpu.memory_space<vmem>>, vector<1x1x16x64xf32>
    %349 = vector.shape_cast %348 : vector<1x1x16x64xf32> to vector<16x64xf32>
    %cst_182 = arith.constant dense<0.000000e+00> : vector<18x64xf32>
    %350 = tpu.matmul %347, %349, %cst_182 {dimension_numbers = #tpu.dot_dimension_numbers<[1], [0], [0], [1], [0, 0, 1, 1], [], []>} : vector<18x16xf32>, vector<16x64xf32>, vector<18x64xf32> -> vector<18x64xf32>
    %351 = arith.addf %331, %350 : vector<18x64xf32>
    %352 = vector.extract_strided_slice %292 {offsets = [0, 48], sizes = [18, 16], strides = [1, 1]} : vector<18x192xf32> to vector<18x16xf32>
    %353 = vector.extract_strided_slice %292 {offsets = [0, 112], sizes = [18, 16], strides = [1, 1]} : vector<18x192xf32> to vector<18x16xf32>
    %354 = vector.extract_strided_slice %292 {offsets = [0, 176], sizes = [18, 16], strides = [1, 1]} : vector<18x192xf32> to vector<18x16xf32>
    %cst_183 = arith.constant dense<0.000000e+00> : vector<18x18xf32>
    %355 = tpu.matmul %352, %353, %cst_183 {dimension_numbers = #tpu.dot_dimension_numbers<[1], [1], [0], [0], [0, 0, 1, 0], [], []>} : vector<18x16xf32>, vector<18x16xf32>, vector<18x18xf32> -> vector<18x18xf32>
    %356 = arith.addf %355, %50 : vector<18x18xf32>
    %cst_184 = arith.constant dense<0xFF800000> : vector<18xf32>
    %357 = vector.multi_reduction <maximumf>, %356, %cst_184 [1] : vector<18x18xf32> to vector<18xf32>
    %358 = vector.shape_cast %357 : vector<18xf32> to vector<18x1xf32>
    %359 = vector.broadcast %358 : vector<18x1xf32> to vector<18x18xf32>
    %360 = arith.subf %356, %359 : vector<18x18xf32>
    %361 = math.exp %360 : vector<18x18xf32>
    %cst_185 = arith.constant dense<0.000000e+00> : vector<18xf32>
    %362 = vector.multi_reduction <add>, %361, %cst_185 [1] : vector<18x18xf32> to vector<18xf32>
    %363 = vector.shape_cast %362 : vector<18xf32> to vector<18x1xf32>
    %364 = tpu.reciprocal %363 {approx = true} : vector<18x1xf32> -> vector<18x1xf32>
    %365 = vector.broadcast %364 : vector<18x1xf32> to vector<18x18xf32>
    %366 = arith.mulf %361, %365 : vector<18x18xf32>
    %cst_186 = arith.constant dense<0.000000e+00> : vector<18x16xf32>
    %367 = tpu.matmul %366, %354, %cst_186 {dimension_numbers = #tpu.dot_dimension_numbers<[1], [0], [0], [1], [0, 0, 1, 1], [], []>} : vector<18x18xf32>, vector<18x16xf32>, vector<18x16xf32> -> vector<18x16xf32>
    %c1_187 = arith.constant 1 : index
    %c3_188 = arith.constant 3 : index
    %c0_189 = arith.constant 0 : index
    %c0_190 = arith.constant 0 : index
    %368 = vector.load %arg16[%c1_187, %c3_188, %c0_189, %c0_190] : memref<2x4x16x64xf32, #tpu.memory_space<vmem>>, vector<1x1x16x64xf32>
    %369 = vector.shape_cast %368 : vector<1x1x16x64xf32> to vector<16x64xf32>
    %cst_191 = arith.constant dense<0.000000e+00> : vector<18x64xf32>
    %370 = tpu.matmul %367, %369, %cst_191 {dimension_numbers = #tpu.dot_dimension_numbers<[1], [0], [0], [1], [0, 0, 1, 1], [], []>} : vector<18x16xf32>, vector<16x64xf32>, vector<18x64xf32> -> vector<18x64xf32>
    %371 = arith.addf %351, %370 : vector<18x64xf32>
    %372 = arith.addf %217, %371 : vector<18x64xf32>
    %c1_192 = arith.constant 1 : index
    %c0_193 = arith.constant 0 : index
    %c0_194 = arith.constant 0 : index
    %373 = vector.load %arg17[%c1_192, %c0_193, %c0_194] : memref<2x1x64xf32, #tpu.memory_space<vmem>>, vector<1x1x64xf32>
    %374 = vector.shape_cast %373 : vector<1x1x64xf32> to vector<1x64xf32>
    %375 = vector.broadcast %374 : vector<1x64xf32> to vector<18x64xf32>
    %376 = arith.addf %372, %375 : vector<18x64xf32>
    %c1_195 = arith.constant 1 : index
    %c0_196 = arith.constant 0 : index
    %c0_197 = arith.constant 0 : index
    %377 = vector.load %arg18[%c1_195, %c0_196, %c0_197] : memref<2x1x64xf32, #tpu.memory_space<vmem>>, vector<1x1x64xf32>
    %378 = vector.shape_cast %377 : vector<1x1x64xf32> to vector<1x64xf32>
    %c1_198 = arith.constant 1 : index
    %c0_199 = arith.constant 0 : index
    %c0_200 = arith.constant 0 : index
    %379 = vector.load %arg19[%c1_198, %c0_199, %c0_200] : memref<2x1x64xf32, #tpu.memory_space<vmem>>, vector<1x1x64xf32>
    %380 = vector.shape_cast %379 : vector<1x1x64xf32> to vector<1x64xf32>
    %cst_201 = arith.constant dense<0.000000e+00> : vector<18xf32>
    %381 = vector.multi_reduction <add>, %376, %cst_201 [1] : vector<18x64xf32> to vector<18xf32>
    %382 = vector.shape_cast %381 : vector<18xf32> to vector<18x1xf32>
    %cst_202 = arith.constant 6.400000e+01 : f32
    %383 = vector.broadcast %cst_202 : f32 to vector<18x1xf32>
    %384 = arith.divf %382, %383 : vector<18x1xf32>
    %385 = vector.broadcast %384 : vector<18x1xf32> to vector<18x64xf32>
    %386 = arith.subf %376, %385 : vector<18x64xf32>
    %387 = arith.mulf %386, %386 : vector<18x64xf32>
    %cst_203 = arith.constant dense<0.000000e+00> : vector<18xf32>
    %388 = vector.multi_reduction <add>, %387, %cst_203 [1] : vector<18x64xf32> to vector<18xf32>
    %389 = vector.shape_cast %388 : vector<18xf32> to vector<18x1xf32>
    %cst_204 = arith.constant 6.400000e+01 : f32
    %390 = vector.broadcast %cst_204 : f32 to vector<18x1xf32>
    %391 = arith.divf %389, %390 : vector<18x1xf32>
    %cst_205 = arith.constant 9.99999974E-6 : f32
    %392 = vector.broadcast %cst_205 : f32 to vector<18x1xf32>
    %393 = arith.addf %391, %392 : vector<18x1xf32>
    %394 = math.rsqrt %393 : vector<18x1xf32>
    %395 = vector.broadcast %394 : vector<18x1xf32> to vector<18x64xf32>
    %396 = arith.mulf %386, %395 : vector<18x64xf32>
    %397 = vector.broadcast %378 : vector<1x64xf32> to vector<18x64xf32>
    %398 = arith.mulf %396, %397 : vector<18x64xf32>
    %399 = vector.broadcast %380 : vector<1x64xf32> to vector<18x64xf32>
    %400 = arith.addf %398, %399 : vector<18x64xf32>
    %c1_206 = arith.constant 1 : index
    %c0_207 = arith.constant 0 : index
    %c0_208 = arith.constant 0 : index
    %401 = vector.load %arg20[%c1_206, %c0_207, %c0_208] : memref<2x64x256xf32, #tpu.memory_space<vmem>>, vector<1x64x256xf32>
    %402 = vector.shape_cast %401 : vector<1x64x256xf32> to vector<64x256xf32>
    %cst_209 = arith.constant dense<0.000000e+00> : vector<18x256xf32>
    %403 = tpu.matmul %400, %402, %cst_209 {dimension_numbers = #tpu.dot_dimension_numbers<[1], [0], [0], [1], [0, 0, 1, 1], [], []>} : vector<18x64xf32>, vector<64x256xf32>, vector<18x256xf32> -> vector<18x256xf32>
    %c1_210 = arith.constant 1 : index
    %c0_211 = arith.constant 0 : index
    %c0_212 = arith.constant 0 : index
    %404 = vector.load %arg21[%c1_210, %c0_211, %c0_212] : memref<2x1x256xf32, #tpu.memory_space<vmem>>, vector<1x1x256xf32>
    %405 = vector.shape_cast %404 : vector<1x1x256xf32> to vector<1x256xf32>
    %406 = vector.broadcast %405 : vector<1x256xf32> to vector<18x256xf32>
    %407 = arith.addf %403, %406 : vector<18x256xf32>
    %cst_213 = arith.constant 5.000000e-01 : f32
    %408 = vector.broadcast %cst_213 : f32 to vector<18x256xf32>
    %409 = arith.mulf %408, %407 : vector<18x256xf32>
    %cst_214 = arith.constant 4.471500e-02 : f32
    %410 = vector.broadcast %cst_214 : f32 to vector<18x256xf32>
    %411 = arith.mulf %410, %407 : vector<18x256xf32>
    %412 = arith.mulf %411, %407 : vector<18x256xf32>
    %413 = arith.mulf %412, %407 : vector<18x256xf32>
    %414 = arith.addf %407, %413 : vector<18x256xf32>
    %cst_215 = arith.constant 0.797884583 : f32
    %415 = vector.broadcast %cst_215 : f32 to vector<18x256xf32>
    %416 = arith.mulf %415, %414 : vector<18x256xf32>
    %417 = math.tanh %416 : vector<18x256xf32>
    %cst_216 = arith.constant 1.000000e+00 : f32
    %418 = vector.broadcast %cst_216 : f32 to vector<18x256xf32>
    %419 = arith.addf %418, %417 : vector<18x256xf32>
    %420 = arith.mulf %409, %419 : vector<18x256xf32>
    %c1_217 = arith.constant 1 : index
    %c0_218 = arith.constant 0 : index
    %c0_219 = arith.constant 0 : index
    %421 = vector.load %arg22[%c1_217, %c0_218, %c0_219] : memref<2x256x64xf32, #tpu.memory_space<vmem>>, vector<1x256x64xf32>
    %422 = vector.shape_cast %421 : vector<1x256x64xf32> to vector<256x64xf32>
    %cst_220 = arith.constant dense<0.000000e+00> : vector<18x64xf32>
    %423 = tpu.matmul %420, %422, %cst_220 {dimension_numbers = #tpu.dot_dimension_numbers<[1], [0], [0], [1], [0, 0, 1, 1], [], []>} : vector<18x256xf32>, vector<256x64xf32>, vector<18x64xf32> -> vector<18x64xf32>
    %424 = arith.addf %376, %423 : vector<18x64xf32>
    %c1_221 = arith.constant 1 : index
    %c0_222 = arith.constant 0 : index
    %c0_223 = arith.constant 0 : index
    %425 = vector.load %arg23[%c1_221, %c0_222, %c0_223] : memref<2x1x64xf32, #tpu.memory_space<vmem>>, vector<1x1x64xf32>
    %426 = vector.shape_cast %425 : vector<1x1x64xf32> to vector<1x64xf32>
    %427 = vector.broadcast %426 : vector<1x64xf32> to vector<18x64xf32>
    %428 = arith.addf %424, %427 : vector<18x64xf32>
    %c0_224 = arith.constant 0 : index
    %c0_225 = arith.constant 0 : index
    %429 = vector.load %arg24[%c0_224, %c0_225] : memref<1x64xf32, #tpu.memory_space<vmem>>, vector<1x64xf32>
    %c0_226 = arith.constant 0 : index
    %c0_227 = arith.constant 0 : index
    %430 = vector.load %arg25[%c0_226, %c0_227] : memref<1x64xf32, #tpu.memory_space<vmem>>, vector<1x64xf32>
    %cst_228 = arith.constant dense<0.000000e+00> : vector<18xf32>
    %431 = vector.multi_reduction <add>, %428, %cst_228 [1] : vector<18x64xf32> to vector<18xf32>
    %432 = vector.shape_cast %431 : vector<18xf32> to vector<18x1xf32>
    %cst_229 = arith.constant 6.400000e+01 : f32
    %433 = vector.broadcast %cst_229 : f32 to vector<18x1xf32>
    %434 = arith.divf %432, %433 : vector<18x1xf32>
    %435 = vector.broadcast %434 : vector<18x1xf32> to vector<18x64xf32>
    %436 = arith.subf %428, %435 : vector<18x64xf32>
    %437 = arith.mulf %436, %436 : vector<18x64xf32>
    %cst_230 = arith.constant dense<0.000000e+00> : vector<18xf32>
    %438 = vector.multi_reduction <add>, %437, %cst_230 [1] : vector<18x64xf32> to vector<18xf32>
    %439 = vector.shape_cast %438 : vector<18xf32> to vector<18x1xf32>
    %cst_231 = arith.constant 6.400000e+01 : f32
    %440 = vector.broadcast %cst_231 : f32 to vector<18x1xf32>
    %441 = arith.divf %439, %440 : vector<18x1xf32>
    %cst_232 = arith.constant 9.99999974E-6 : f32
    %442 = vector.broadcast %cst_232 : f32 to vector<18x1xf32>
    %443 = arith.addf %441, %442 : vector<18x1xf32>
    %444 = math.rsqrt %443 : vector<18x1xf32>
    %445 = vector.broadcast %444 : vector<18x1xf32> to vector<18x64xf32>
    %446 = arith.mulf %436, %445 : vector<18x64xf32>
    %447 = vector.broadcast %429 : vector<1x64xf32> to vector<18x64xf32>
    %448 = arith.mulf %446, %447 : vector<18x64xf32>
    %449 = vector.broadcast %430 : vector<1x64xf32> to vector<18x64xf32>
    %450 = arith.addf %448, %449 : vector<18x64xf32>
    %c0_233 = arith.constant 0 : index
    %c0_234 = arith.constant 0 : index
    %451 = vector.load %arg26[%c0_233, %c0_234] : memref<64x256xf32, #tpu.memory_space<vmem>>, vector<64x256xf32>
    %cst_235 = arith.constant dense<0.000000e+00> : vector<18x256xf32>
    %452 = tpu.matmul %450, %451, %cst_235 {dimension_numbers = #tpu.dot_dimension_numbers<[1], [0], [0], [1], [0, 0, 1, 1], [], []>} : vector<18x64xf32>, vector<64x256xf32>, vector<18x256xf32> -> vector<18x256xf32>
    %c0_236 = arith.constant 0 : index
    %c0_237 = arith.constant 0 : index
    %453 = vector.load %arg27[%c0_236, %c0_237] : memref<1x256xf32, #tpu.memory_space<vmem>>, vector<1x256xf32>
    %454 = vector.broadcast %453 : vector<1x256xf32> to vector<18x256xf32>
    %455 = arith.addf %452, %454 : vector<18x256xf32>
    %cst_238 = arith.constant 5.000000e-01 : f32
    %456 = vector.broadcast %cst_238 : f32 to vector<18x256xf32>
    %457 = arith.mulf %456, %455 : vector<18x256xf32>
    %cst_239 = arith.constant 4.471500e-02 : f32
    %458 = vector.broadcast %cst_239 : f32 to vector<18x256xf32>
    %459 = arith.mulf %458, %455 : vector<18x256xf32>
    %460 = arith.mulf %459, %455 : vector<18x256xf32>
    %461 = arith.mulf %460, %455 : vector<18x256xf32>
    %462 = arith.addf %455, %461 : vector<18x256xf32>
    %cst_240 = arith.constant 0.797884583 : f32
    %463 = vector.broadcast %cst_240 : f32 to vector<18x256xf32>
    %464 = arith.mulf %463, %462 : vector<18x256xf32>
    %465 = math.tanh %464 : vector<18x256xf32>
    %cst_241 = arith.constant 1.000000e+00 : f32
    %466 = vector.broadcast %cst_241 : f32 to vector<18x256xf32>
    %467 = arith.addf %466, %465 : vector<18x256xf32>
    %468 = arith.mulf %457, %467 : vector<18x256xf32>
    %c0_242 = arith.constant 0 : index
    %c0_243 = arith.constant 0 : index
    %469 = vector.load %arg28[%c0_242, %c0_243] : memref<256x64xf32, #tpu.memory_space<vmem>>, vector<256x64xf32>
    %cst_244 = arith.constant dense<0.000000e+00> : vector<18x64xf32>
    %470 = tpu.matmul %468, %469, %cst_244 {dimension_numbers = #tpu.dot_dimension_numbers<[1], [0], [0], [1], [0, 0, 1, 1], [], []>} : vector<18x256xf32>, vector<256x64xf32>, vector<18x64xf32> -> vector<18x64xf32>
    %c0_245 = arith.constant 0 : index
    %c0_246 = arith.constant 0 : index
    %471 = vector.load %arg29[%c0_245, %c0_246] : memref<1x64xf32, #tpu.memory_space<vmem>>, vector<1x64xf32>
    %472 = vector.broadcast %471 : vector<1x64xf32> to vector<18x64xf32>
    %473 = arith.addf %470, %472 : vector<18x64xf32>
    %cst_247 = arith.constant 5.000000e-01 : f32
    %474 = vector.broadcast %cst_247 : f32 to vector<18x64xf32>
    %475 = arith.mulf %474, %473 : vector<18x64xf32>
    %cst_248 = arith.constant 4.471500e-02 : f32
    %476 = vector.broadcast %cst_248 : f32 to vector<18x64xf32>
    %477 = arith.mulf %476, %473 : vector<18x64xf32>
    %478 = arith.mulf %477, %473 : vector<18x64xf32>
    %479 = arith.mulf %478, %473 : vector<18x64xf32>
    %480 = arith.addf %473, %479 : vector<18x64xf32>
    %cst_249 = arith.constant 0.797884583 : f32
    %481 = vector.broadcast %cst_249 : f32 to vector<18x64xf32>
    %482 = arith.mulf %481, %480 : vector<18x64xf32>
    %483 = math.tanh %482 : vector<18x64xf32>
    %cst_250 = arith.constant 1.000000e+00 : f32
    %484 = vector.broadcast %cst_250 : f32 to vector<18x64xf32>
    %485 = arith.addf %484, %483 : vector<18x64xf32>
    %486 = arith.mulf %475, %485 : vector<18x64xf32>
    %487 = vector.extract_strided_slice %486 {offsets = [0, 0], sizes = [8, 64], strides = [1, 1]} : vector<18x64xf32> to vector<8x64xf32>
    %c2_251 = arith.constant 2 : index
    %c0_252 = arith.constant 0 : index
    %c0_253 = arith.constant 0 : index
    %488 = vector.load %arg36[%c2_251, %c0_252, %c0_253] : memref<4x8x64xf32, #tpu.memory_space<vmem>>, vector<1x8x64xf32>
    %489 = vector.shape_cast %488 : vector<1x8x64xf32> to vector<8x64xf32>
    %490 = vector.shape_cast %487 : vector<8x64xf32> to vector<1x8x64xf32>
    tpu.vector_store %arg36[%c2_251, %c0_252, %c0_253], %490 {strides = array<i32>} : memref<4x8x64xf32, #tpu.memory_space<vmem>>, vector<1x8x64xf32>,
    %491 = vector.extract_strided_slice %486 {offsets = [9, 0], sizes = [8, 64], strides = [1, 1]} : vector<18x64xf32> to vector<8x64xf32>
    %c3_254 = arith.constant 3 : index
    %c0_255 = arith.constant 0 : index
    %c0_256 = arith.constant 0 : index
    %492 = vector.load %arg36[%c3_254, %c0_255, %c0_256] : memref<4x8x64xf32, #tpu.memory_space<vmem>>, vector<1x8x64xf32>
    %493 = vector.shape_cast %492 : vector<1x8x64xf32> to vector<8x64xf32>
    %494 = vector.shape_cast %491 : vector<8x64xf32> to vector<1x8x64xf32>
    tpu.vector_store %arg36[%c3_254, %c0_255, %c0_256], %494 {strides = array<i32>} : memref<4x8x64xf32, #tpu.memory_space<vmem>>, vector<1x8x64xf32>,
    %495 = vector.extract_strided_slice %450 {offsets = [8, 0], sizes = [1, 64], strides = [1, 1]} : vector<18x64xf32> to vector<1x64xf32>
    %496 = vector.extract_strided_slice %450 {offsets = [17, 0], sizes = [1, 64], strides = [1, 1]} : vector<18x64xf32> to vector<1x64xf32>
    %497 = tpu.concatenate %495, %496 in 0 : vector<1x64xf32>, vector<1x64xf32> -> vector<2x64xf32>
    %c0_257 = arith.constant 0 : index
    %c0_258 = arith.constant 0 : index
    %498 = vector.load %arg30[%c0_257, %c0_258] : memref<64x256xf32, #tpu.memory_space<vmem>>, vector<64x256xf32>
    %cst_259 = arith.constant dense<0.000000e+00> : vector<2x256xf32>
    %499 = tpu.matmul %497, %498, %cst_259 {dimension_numbers = #tpu.dot_dimension_numbers<[1], [0], [0], [1], [0, 0, 1, 1], [], []>} : vector<2x64xf32>, vector<64x256xf32>, vector<2x256xf32> -> vector<2x256xf32>
    %c0_260 = arith.constant 0 : index
    %c0_261 = arith.constant 0 : index
    %500 = vector.load %arg31[%c0_260, %c0_261] : memref<1x256xf32, #tpu.memory_space<vmem>>, vector<1x256xf32>
    %501 = vector.broadcast %500 : vector<1x256xf32> to vector<2x256xf32>
    %502 = arith.addf %499, %501 : vector<2x256xf32>
    %cst_262 = arith.constant 5.000000e-01 : f32
    %503 = vector.broadcast %cst_262 : f32 to vector<2x256xf32>
    %504 = arith.mulf %503, %502 : vector<2x256xf32>
    %cst_263 = arith.constant 4.471500e-02 : f32
    %505 = vector.broadcast %cst_263 : f32 to vector<2x256xf32>
    %506 = arith.mulf %505, %502 : vector<2x256xf32>
    %507 = arith.mulf %506, %502 : vector<2x256xf32>
    %508 = arith.mulf %507, %502 : vector<2x256xf32>
    %509 = arith.addf %502, %508 : vector<2x256xf32>
    %cst_264 = arith.constant 0.797884583 : f32
    %510 = vector.broadcast %cst_264 : f32 to vector<2x256xf32>
    %511 = arith.mulf %510, %509 : vector<2x256xf32>
    %512 = math.tanh %511 : vector<2x256xf32>
    %cst_265 = arith.constant 1.000000e+00 : f32
    %513 = vector.broadcast %cst_265 : f32 to vector<2x256xf32>
    %514 = arith.addf %513, %512 : vector<2x256xf32>
    %515 = arith.mulf %504, %514 : vector<2x256xf32>
    %c0_266 = arith.constant 0 : index
    %c0_267 = arith.constant 0 : index
    %516 = vector.load %arg32[%c0_266, %c0_267] : memref<256x64xf32, #tpu.memory_space<vmem>>, vector<256x64xf32>
    %cst_268 = arith.constant dense<0.000000e+00> : vector<2x64xf32>
    %517 = tpu.matmul %515, %516, %cst_268 {dimension_numbers = #tpu.dot_dimension_numbers<[1], [0], [0], [1], [0, 0, 1, 1], [], []>} : vector<2x256xf32>, vector<256x64xf32>, vector<2x64xf32> -> vector<2x64xf32>
    %c0_269 = arith.constant 0 : index
    %c0_270 = arith.constant 0 : index
    %518 = vector.load %arg33[%c0_269, %c0_270] : memref<1x64xf32, #tpu.memory_space<vmem>>, vector<1x64xf32>
    %519 = vector.broadcast %518 : vector<1x64xf32> to vector<2x64xf32>
    %520 = arith.addf %517, %519 : vector<2x64xf32>
    %cst_271 = arith.constant 5.000000e-01 : f32
    %521 = vector.broadcast %cst_271 : f32 to vector<2x64xf32>
    %522 = arith.mulf %521, %520 : vector<2x64xf32>
    %cst_272 = arith.constant 4.471500e-02 : f32
    %523 = vector.broadcast %cst_272 : f32 to vector<2x64xf32>
    %524 = arith.mulf %523, %520 : vector<2x64xf32>
    %525 = arith.mulf %524, %520 : vector<2x64xf32>
    %526 = arith.mulf %525, %520 : vector<2x64xf32>
    %527 = arith.addf %520, %526 : vector<2x64xf32>
    %cst_273 = arith.constant 0.797884583 : f32
    %528 = vector.broadcast %cst_273 : f32 to vector<2x64xf32>
    %529 = arith.mulf %528, %527 : vector<2x64xf32>
    %530 = math.tanh %529 : vector<2x64xf32>
    %cst_274 = arith.constant 1.000000e+00 : f32
    %531 = vector.broadcast %cst_274 : f32 to vector<2x64xf32>
    %532 = arith.addf %531, %530 : vector<2x64xf32>
    %533 = arith.mulf %522, %532 : vector<2x64xf32>
    %c0_275 = arith.constant 0 : index
    %c0_276 = arith.constant 0 : index
    %534 = vector.load %arg34[%c0_275, %c0_276] : memref<64x128xf32, #tpu.memory_space<vmem>>, vector<64x128xf32>
    %cst_277 = arith.constant dense<0.000000e+00> : vector<2x128xf32>
    %535 = tpu.matmul %533, %534, %cst_277 {dimension_numbers = #tpu.dot_dimension_numbers<[1], [0], [0], [1], [0, 0, 1, 1], [], []>} : vector<2x64xf32>, vector<64x128xf32>, vector<2x128xf32> -> vector<2x128xf32>
    %c0_278 = arith.constant 0 : index
    %c0_279 = arith.constant 0 : index
    %536 = vector.load %arg35[%c0_278, %c0_279] : memref<1x128xf32, #tpu.memory_space<vmem>>, vector<1x128xf32>
    %537 = vector.broadcast %536 : vector<1x128xf32> to vector<2x128xf32>
    %538 = arith.addf %535, %537 : vector<2x128xf32>
    %c0_280 = arith.constant 0 : index
    %c0_281 = arith.constant 0 : index
    %539 = vector.load %arg37[%c0_280, %c0_281] : memref<2x128xf32, #tpu.memory_space<vmem>>, vector<2x128xf32>
    tpu.vector_store %arg37[%c0_280, %c0_281], %538 {strides = array<i32>} : memref<2x128xf32, #tpu.memory_space<vmem>>, vector<2x128xf32>,
    return
  }
  func.func @transform_0(%arg0: i32) -> (i32, i32) {
    %c0_i32 = arith.constant 0 : i32
    %c0_i32_0 = arith.constant 0 : i32
    %c0_i32_1 = arith.constant 0 : i32
    return %c0_i32, %c0_i32_0 : i32, i32
  }
  func.func @transform_1(%arg0: i32) -> (i32, i32) {
    %c0_i32 = arith.constant 0 : i32
    %c0_i32_0 = arith.constant 0 : i32
    %c0_i32_1 = arith.constant 0 : i32
    return %c0_i32, %c0_i32_0 : i32, i32
  }
  func.func @transform_2(%arg0: i32) -> (i32, i32) {
    %c0_i32 = arith.constant 0 : i32
    %c0_i32_0 = arith.constant 0 : i32
    %c0_i32_1 = arith.constant 0 : i32
    return %c0_i32, %c0_i32_0 : i32, i32
  }
  func.func @transform_3(%arg0: i32) -> (i32, i32) {
    %c0_i32 = arith.constant 0 : i32
    %c0_i32_0 = arith.constant 0 : i32
    %c0_i32_1 = arith.constant 0 : i32
    return %c0_i32, %c0_i32_0 : i32, i32
  }
  func.func @transform_4(%arg0: i32) -> (i32, i32) {
    %c0_i32 = arith.constant 0 : i32
    %c0_i32_0 = arith.constant 0 : i32
    %c0_i32_1 = arith.constant 0 : i32
    return %c0_i32, %c0_i32_0 : i32, i32
  }
  func.func @transform_5(%arg0: i32) -> (i32, i32) {
    %c0_i32 = arith.constant 0 : i32
    %c0_i32_0 = arith.constant 0 : i32
    %c0_i32_1 = arith.constant 0 : i32
    return %c0_i32, %c0_i32_0 : i32, i32
  }
  func.func @transform_6(%arg0: i32) -> (i32, i32) {
    %c0_i32 = arith.constant 0 : i32
    %c0_i32_0 = arith.constant 0 : i32
    %c0_i32_1 = arith.constant 0 : i32
    return %c0_i32, %c0_i32_0 : i32, i32
  }
  func.func @transform_7(%arg0: i32) -> (i32, i32) {
    %c0_i32 = arith.constant 0 : i32
    %c0_i32_0 = arith.constant 0 : i32
    %c0_i32_1 = arith.constant 0 : i32
    return %c0_i32, %c0_i32_0 : i32, i32
  }
  func.func @transform_8(%arg0: i32) -> (i32, i32) {
    %c0_i32 = arith.constant 0 : i32
    %c0_i32_0 = arith.constant 0 : i32
    %c0_i32_1 = arith.constant 0 : i32
    return %c0_i32, %c0_i32_0 : i32, i32
  }
  func.func @transform_9(%arg0: i32) -> (i32, i32) {
    %c0_i32 = arith.constant 0 : i32
    %c0_i32_0 = arith.constant 0 : i32
    %c0_i32_1 = arith.constant 0 : i32
    return %c0_i32, %c0_i32_0 : i32, i32
  }
  func.func @transform_10(%arg0: i32) -> (i32, i32) {
    %c0_i32 = arith.constant 0 : i32
    %c0_i32_0 = arith.constant 0 : i32
    %c0_i32_1 = arith.constant 0 : i32
    return %c0_i32, %c0_i32_0 : i32, i32
  }
  func.func @transform_11(%arg0: i32) -> (i32, i32, i32) {
    %c0_i32 = arith.constant 0 : i32
    %c0_i32_0 = arith.constant 0 : i32
    %c0_i32_1 = arith.constant 0 : i32
    %c0_i32_2 = arith.constant 0 : i32
    return %c0_i32, %c0_i32_0, %c0_i32_1 : i32, i32, i32
  }
  func.func @transform_12(%arg0: i32) -> (i32, i32, i32) {
    %c0_i32 = arith.constant 0 : i32
    %c0_i32_0 = arith.constant 0 : i32
    %c0_i32_1 = arith.constant 0 : i32
    %c0_i32_2 = arith.constant 0 : i32
    return %c0_i32, %c0_i32_0, %c0_i32_1 : i32, i32, i32
  }
  func.func @transform_13(%arg0: i32) -> (i32, i32, i32) {
    %c0_i32 = arith.constant 0 : i32
    %c0_i32_0 = arith.constant 0 : i32
    %c0_i32_1 = arith.constant 0 : i32
    %c0_i32_2 = arith.constant 0 : i32
    return %c0_i32, %c0_i32_0, %c0_i32_1 : i32, i32, i32
  }
  func.func @transform_14(%arg0: i32) -> (i32, i32, i32) {
    %c0_i32 = arith.constant 0 : i32
    %c0_i32_0 = arith.constant 0 : i32
    %c0_i32_1 = arith.constant 0 : i32
    %c0_i32_2 = arith.constant 0 : i32
    return %c0_i32, %c0_i32_0, %c0_i32_1 : i32, i32, i32
  }
  func.func @transform_15(%arg0: i32) -> (i32, i32, i32, i32) {
    %c0_i32 = arith.constant 0 : i32
    %c0_i32_0 = arith.constant 0 : i32
    %c0_i32_1 = arith.constant 0 : i32
    %c0_i32_2 = arith.constant 0 : i32
    %c0_i32_3 = arith.constant 0 : i32
    return %c0_i32, %c0_i32_0, %c0_i32_1, %c0_i32_2 : i32, i32, i32, i32
  }
  func.func @transform_16(%arg0: i32) -> (i32, i32, i32) {
    %c0_i32 = arith.constant 0 : i32
    %c0_i32_0 = arith.constant 0 : i32
    %c0_i32_1 = arith.constant 0 : i32
    %c0_i32_2 = arith.constant 0 : i32
    return %c0_i32, %c0_i32_0, %c0_i32_1 : i32, i32, i32
  }
  func.func @transform_17(%arg0: i32) -> (i32, i32, i32) {
    %c0_i32 = arith.constant 0 : i32
    %c0_i32_0 = arith.constant 0 : i32
    %c0_i32_1 = arith.constant 0 : i32
    %c0_i32_2 = arith.constant 0 : i32
    return %c0_i32, %c0_i32_0, %c0_i32_1 : i32, i32, i32
  }
  func.func @transform_18(%arg0: i32) -> (i32, i32, i32) {
    %c0_i32 = arith.constant 0 : i32
    %c0_i32_0 = arith.constant 0 : i32
    %c0_i32_1 = arith.constant 0 : i32
    %c0_i32_2 = arith.constant 0 : i32
    return %c0_i32, %c0_i32_0, %c0_i32_1 : i32, i32, i32
  }
  func.func @transform_19(%arg0: i32) -> (i32, i32, i32) {
    %c0_i32 = arith.constant 0 : i32
    %c0_i32_0 = arith.constant 0 : i32
    %c0_i32_1 = arith.constant 0 : i32
    %c0_i32_2 = arith.constant 0 : i32
    return %c0_i32, %c0_i32_0, %c0_i32_1 : i32, i32, i32
  }
  func.func @transform_20(%arg0: i32) -> (i32, i32, i32) {
    %c0_i32 = arith.constant 0 : i32
    %c0_i32_0 = arith.constant 0 : i32
    %c0_i32_1 = arith.constant 0 : i32
    %c0_i32_2 = arith.constant 0 : i32
    return %c0_i32, %c0_i32_0, %c0_i32_1 : i32, i32, i32
  }
  func.func @transform_21(%arg0: i32) -> (i32, i32, i32) {
    %c0_i32 = arith.constant 0 : i32
    %c0_i32_0 = arith.constant 0 : i32
    %c0_i32_1 = arith.constant 0 : i32
    %c0_i32_2 = arith.constant 0 : i32
    return %c0_i32, %c0_i32_0, %c0_i32_1 : i32, i32, i32
  }
  func.func @transform_22(%arg0: i32) -> (i32, i32, i32) {
    %c0_i32 = arith.constant 0 : i32
    %c0_i32_0 = arith.constant 0 : i32
    %c0_i32_1 = arith.constant 0 : i32
    %c0_i32_2 = arith.constant 0 : i32
    return %c0_i32, %c0_i32_0, %c0_i32_1 : i32, i32, i32
  }
  func.func @transform_23(%arg0: i32) -> (i32, i32) {
    %c0_i32 = arith.constant 0 : i32
    %c0_i32_0 = arith.constant 0 : i32
    %c0_i32_1 = arith.constant 0 : i32
    return %c0_i32, %c0_i32_0 : i32, i32
  }
  func.func @transform_24(%arg0: i32) -> (i32, i32) {
    %c0_i32 = arith.constant 0 : i32
    %c0_i32_0 = arith.constant 0 : i32
    %c0_i32_1 = arith.constant 0 : i32
    return %c0_i32, %c0_i32_0 : i32, i32
  }
  func.func @transform_25(%arg0: i32) -> (i32, i32) {
    %c0_i32 = arith.constant 0 : i32
    %c0_i32_0 = arith.constant 0 : i32
    %c0_i32_1 = arith.constant 0 : i32
    return %c0_i32, %c0_i32_0 : i32, i32
  }
  func.func @transform_26(%arg0: i32) -> (i32, i32) {
    %c0_i32 = arith.constant 0 : i32
    %c0_i32_0 = arith.constant 0 : i32
    %c0_i32_1 = arith.constant 0 : i32
    return %c0_i32, %c0_i32_0 : i32, i32
  }
  func.func @transform_27(%arg0: i32) -> (i32, i32) {
    %c0_i32 = arith.constant 0 : i32
    %c0_i32_0 = arith.constant 0 : i32
    %c0_i32_1 = arith.constant 0 : i32
    return %c0_i32, %c0_i32_0 : i32, i32
  }
  func.func @transform_28(%arg0: i32) -> (i32, i32) {
    %c0_i32 = arith.constant 0 : i32
    %c0_i32_0 = arith.constant 0 : i32
    %c0_i32_1 = arith.constant 0 : i32
    return %c0_i32, %c0_i32_0 : i32, i32
  }
  func.func @transform_29(%arg0: i32) -> (i32, i32) {
    %c0_i32 = arith.constant 0 : i32
    %c0_i32_0 = arith.constant 0 : i32
    %c0_i32_1 = arith.constant 0 : i32
    return %c0_i32, %c0_i32_0 : i32, i32
  }
  func.func @transform_30(%arg0: i32) -> (i32, i32) {
    %c0_i32 = arith.constant 0 : i32
    %c0_i32_0 = arith.constant 0 : i32
    %c0_i32_1 = arith.constant 0 : i32
    return %c0_i32, %c0_i32_0 : i32, i32
  }
  func.func @transform_31(%arg0: i32) -> (i32, i32) {
    %c0_i32 = arith.constant 0 : i32
    %c0_i32_0 = arith.constant 0 : i32
    %c0_i32_1 = arith.constant 0 : i32
    return %c0_i32, %c0_i32_0 : i32, i32
  }
  func.func @transform_32(%arg0: i32) -> (i32, i32) {
    %c0_i32 = arith.constant 0 : i32
    %c0_i32_0 = arith.constant 0 : i32
    %c0_i32_1 = arith.constant 0 : i32
    return %c0_i32, %c0_i32_0 : i32, i32
  }
  func.func @transform_33(%arg0: i32) -> (i32, i32) {
    %c0_i32 = arith.constant 0 : i32
    %c0_i32_0 = arith.constant 0 : i32
    %c0_i32_1 = arith.constant 0 : i32
    return %c0_i32, %c0_i32_0 : i32, i32
  }
  func.func @transform_34(%arg0: i32) -> (i32, i32) {
    %c0_i32 = arith.constant 0 : i32
    %c0_i32_0 = arith.constant 0 : i32
    %c0_i32_1 = arith.constant 0 : i32
    return %c0_i32, %c0_i32_0 : i32, i32
  }
  func.func @transform_35(%arg0: i32) -> (i32, i32, i32) {
    %c0_i32 = arith.constant 0 : i32
    %c0_i32_0 = arith.constant 0 : i32
    %c0_i32_1 = arith.constant 0 : i32
    %c0_i32_2 = arith.constant 0 : i32
    return %c0_i32, %c0_i32_0, %c0_i32_1 : i32, i32, i32
  }
  func.func @transform_36(%arg0: i32) -> (i32, i32) {
    %c0_i32 = arith.constant 0 : i32
    %c0_i32_0 = arith.constant 0 : i32
    %c0_i32_1 = arith.constant 0 : i32
    return %c0_i32, %c0_i32_0 : i32, i32
  }
}

</mosaic_0001>

<bundles_post_ra>
// kernel: pallas_forward.1
= control target key start
LH: loop header
LB: loop body
LE: loop exit
PB: predicated region body
PF: predicated region fallthrough
CT: control target
= control target key end

     0   :  { %s7383_s6 = smov 1   ;;  %s7384_s10 = smov 2   ;;  %s8873_s0 = inlined_call_operand.smem [shape: u32[37], index: -1, kind: input, shape index: {}] }
   0x1   :  { %s7457_s5 = sld [smem:[%s8873_s0]]   ;;  %s7385_s14 = smov 3  }
   0x2   :  { %s7462_s9 = sld [smem:[%s8873_s0 + %s7383_s6]]   ;;  %s7386_s18 = smov 4  }
   0x3   :  { %s7467_s13 = sld [smem:[%s8873_s0 + %s7384_s10]]   ;;  %s7387_s22 = smov 5  }
   0x4   :  { %s7472_s17 = sld [smem:[%s8873_s0 + %s7385_s14]]   ;;  %s7388_s26 = smov 6  }
   0x5   :  { %s7477_s21 = sld [smem:[%s8873_s0 + %s7386_s18]]   ;;  %s7389_s30 = smov 7  }
   0x6   :  { %s7482_s25 = sld [smem:[%s8873_s0 + %s7387_s22]]   ;;  %s7390_s4 = smov 8  }
   0x7   :  { %s7487_s29 = sld [smem:[%s8873_s0 + %s7388_s26]]   ;;  %s7391_s10 = smov 9  }
   0x8   :  { %8888 = sst [smem:[#allocation39_spill]] %s7462_s9  ;;  %s7392_s15 = smov 10  }
   0x9   :  { %s7492_s3 = sld [smem:[%s8873_s0 + %s7389_s30]]   ;;  %s7393_s20 = smov 11  }
   0xa   :  { %8889 = sst [smem:[#allocation40_spill]] %s7472_s17  ;;  %s7394_s26 = smov 12  }
   0xb   :  { %s7497_s8 = sld [smem:[%s8873_s0 + %s7390_s4]]   ;;  %s7395_s1 = smov 13  }
   0xc   :  { %8890 = sst [smem:[#allocation41_spill]] %s7482_s25  ;;  %s7396_s7 = smov 14  }
   0xd   :  { %8891 = sst [smem:[#allocation42_spill]] %s7487_s29  ;;  %s7398_s22 = smov 16  }
   0xe   :  { %s7502_s14 = sld [smem:[%s8873_s0 + %s7391_s10]]   ;;  %s7399_s28 = smov 17  }
   0xf   :  { %8892 = sst [smem:[#allocation43_spill]] %s7492_s3 }
  0x10   :  { %s7507_s19 = sld [smem:[%s8873_s0 + %s7392_s15]]   ;;  %s7397_s15 = smov 15  }
  0x11   :  { %s7512_s24 = sld [smem:[%s8873_s0 + %s7393_s20]]  }
  0x12   :  { %s7517_s30 = sld [smem:[%s8873_s0 + %s7394_s26]]  }
  0x13   :  { %s7522_s6 = sld [smem:[%s8873_s0 + %s7395_s1]]  }
  0x14   :  { %8893 = sst [smem:[#allocation44_spill]] %s7502_s14 }
  0x15   :  { %s7527_s12 = sld [smem:[%s8873_s0 + %s7396_s7]]   ;;  %s7400_s7 = smov 18  }
  0x16   :  { %8894 = sst [smem:[#allocation45_spill]] %s7507_s19 }
  0x17   :  { %s7532_s20 = sld [smem:[%s8873_s0 + %s7397_s15]]   ;;  %s7401_s15 = smov 19  }
  0x18   :  { %s7537_s27 = sld [smem:[%s8873_s0 + %s7398_s22]]   ;;  %s7402_s22 = smov 20  }
  0x19   :  { %8895 = sst [smem:[#allocation46_spill]] %s7522_s6 }
  0x1a   :  { %s7542_s4 = sld [smem:[%s8873_s0 + %s7399_s28]]   ;;  %s7403_s28 = smov 21  }
  0x1b   :  { %s7547_s19 = sld [smem:[%s8873_s0 + %s7400_s7]]   ;;  %s7404_s7 = smov 22  }
  0x1c   :  { %s7557_s6 = sld [smem:[%s8873_s0 + %s7402_s22]]   ;;  %s7406_s22 = smov 24  }
  0x1d   :  { %8896 = sst [smem:[#allocation47_spill]] %s7532_s20 }
  0x1e   :  { %s7552_s20 = sld [smem:[%s8873_s0 + %s7401_s15]]   ;;  %s7405_s15 = smov 23  }
  0x1f   :  { %s7562_s14 = sld [smem:[%s8873_s0 + %s7403_s28]]   ;;  %s7407_s28 = smov 25  }
  0x20   :  { %s7567_s3 = sld [smem:[%s8873_s0 + %s7404_s7]]   ;;  %s7408_s7 = smov 26  }
  0x21   :  { %s7577_s29 = sld [smem:[%s8873_s0 + %s7406_s22]]   ;;  %s7410_s22 = smov 28  }
  0x22   :  { %s7587_s9 = sld [smem:[%s8873_s0 + %s7408_s7]]   ;;  %s7412_s7 = smov 30  }
  0x23   :  { %s7597_s17 = sld [smem:[%s8873_s0 + %s7410_s22]]   ;;  %s7414_s22 = smov 32  }
  0x24   :  { %8897 = sst [smem:[#allocation48_spill]] %s7552_s20 }
  0x25   :  { %8898 = sst [smem:[#allocation49_spill]] %s7562_s14 }
  0x26   :  { %s7572_s20 = sld [smem:[%s8873_s0 + %s7405_s15]]   ;;  %s7409_s15 = smov 27  }
  0x27   :  { %s7582_s14 = sld [smem:[%s8873_s0 + %s7407_s28]]   ;;  %s7411_s28 = smov 29  }
  0x28   :  { %8900 = sst [smem:[#allocation51_spill]] %s7587_s9 }
  0x29   :  { %s7592_s25 = sld [smem:[%s8873_s0 + %s7409_s15]]   ;;  %s7413_s15 = smov 31  }
  0x2a   :  { %8902 = sst [smem:[#allocation53_spill]] %s7597_s17 }
  0x2b   :  { %s7607_s9 = sld [smem:[%s8873_s0 + %s7412_s7]]   ;;  %s7416_s7 = smov 34  }
  0x2c   :  { %s7617_s17 = sld [smem:[%s8873_s0 + %s7414_s22]]   ;;  %s7418_s22 = smov 36  }
  0x2d   :  { %8899 = sst [smem:[#allocation50_spill]] %s7582_s14 }
  0x2e   :  { %s7602_s14 = sld [smem:[%s8873_s0 + %s7411_s28]]   ;;  %s7415_s28 = smov 33  }
  0x2f   :  { %8901 = sst [smem:[#allocation52_spill]] %s7592_s25 }
  0x30   :  { %s7612_s25 = sld [smem:[%s8873_s0 + %s7413_s15]]   ;;  %s7417_s15 = smov 35  }
  0x31   :  { %8904 = sst [smem:[#allocation55_spill]] %s7607_s9 }
  0x32   :  { %8906 = sst [smem:[#allocation57_spill]] %s7617_s17 }
  0x33   :  { %s7627_s9 = sld [smem:[%s8873_s0 + %s7416_s7]]  }
  0x34   :  { %8903 = sst [smem:[#allocation54_spill]] %s7602_s14 }
  0x35   :  { %s7622_s14 = sld [smem:[%s8873_s0 + %s7415_s28]]  }
  0x36   :  { %8905 = sst [smem:[#allocation56_spill]] %s7612_s25 }
  0x37   :  { %s7632_s25 = sld [smem:[%s8873_s0 + %s7417_s15]]  }
  0x38   :  { %s7637_s17 = sld [smem:[%s8873_s0 + %s7418_s22]]  }
  0x39   :  { %79 = vsyncpa [#allocation3], 0 }
  0x3a   :  { %80 = vsyncpa [#allocation6], 0 }
  0x3b   :  { %81 = vsyncpa [#allocation9], 0 }
  0x3c   :  { %82 = vsyncpa [#allocation12], 0 }
  0x3d   :  { %83 = vsyncpa [#allocation15], 0 }
  0x3e   :  { %84 = vsyncpa [#allocation18], 0 }
  0x3f   :  { %85 = vsyncpa [#allocation21], 0 }
  0x40   :  { %86 = vsyncpa [#allocation24], 0 }
  0x41   :  { %87 = vsyncpa [#allocation27], 0 }
  0x42   :  { %88 = vsyncpa [#allocation4], 0  ;;  %s7419_s28 = smov [#allocation5]   ;;  %s7420_s2 = smov [#allocation8]  }
  0x43   :  { %s109_s1 = sshll.u32 %s7419_s28, 4  ;;  %s137_s7 = sshll.u32 %s7420_s2, 4  ;;  %s110_s1 = int_to_ptr.vmem [resolvable:$true] %s109_s1  ;;  %s138_s7 = int_to_ptr.vmem [resolvable:$true] %s137_s7 }
  0x44   :  { %s7031_s10 = scalar_lea.vmem %s110_s1, 16  ;;  %s7035_s0 = scalar_lea.vmem %s110_s1, 32 }
  0x45   :  { %p7032_p0 = scmp.ne.s32.totalorder %s110_s1, %s7031_s10  ;;  %p7036_p1 = scmp.lt.s32.totalorder %s110_s1, %s110_s1 }
  0x46   :  { %p7037_p2 = scmp.lt.s32.totalorder %s7035_s0, %s7031_s10 }
  0x48   :  { %p7038_p3 = por %p7037_p2, %p7036_p1 }
  0x4a   :  { %p7039_p4 = pnand %p7038_p3, %p7032_p0 }
  0x4c   :  { %7042 = shalt.err (!%p7039_p4)
}
  0x4d   :  { %112 = dma.hbm_to_vmem [thread:$0]  %s7467_s13, 16, %s110_s1, [#allocation6]  }
  0x4e   :  { %s7051_s11 = scalar_lea.vmem %s138_s7, 16  ;;  %s7055_s15 = scalar_lea.vmem %s138_s7, 32 }
  0x4f   :  { %p7052_p5 = scmp.ne.s32.totalorder %s138_s7, %s7051_s11  ;;  %p7056_p6 = scmp.lt.s32.totalorder %s138_s7, %s138_s7 }
  0x50   :  { %p7057_p7 = scmp.lt.s32.totalorder %s7055_s15, %s7051_s11 }
  0x52   :  { %p7058_p8 = por %p7057_p7, %p7056_p6 }
  0x54   :  { %p7059_p9 = pnand %p7058_p8, %p7052_p5 }
  0x56   :  { %7062 = shalt.err (!%p7059_p9)
}
  0x57   :  { %140 = dma.hbm_to_vmem [thread:$0]  %s7497_s8, 16, %s138_s7, [#allocation9]  }
  0x58   :  { %s7421_s16 = smov [#allocation11]   ;;  %s7422_s22 = smov [#allocation14]  }
  0x59   :  { %s162_s18 = sshll.u32 %s7421_s16, 4  ;;  %s190_s23 = sshll.u32 %s7422_s22, 4  ;;  %s163_s18 = int_to_ptr.vmem [resolvable:$true] %s162_s18  ;;  %s191_s23 = int_to_ptr.vmem [resolvable:$true] %s190_s23 }
  0x5a   :  { %s7071_s26 = scalar_lea.vmem %s163_s18, 32  ;;  %p7076_p11 = scmp.lt.s32.totalorder %s163_s18, %s163_s18 }
  0x5b   :  { %p7072_p10 = scmp.ne.s32.totalorder %s163_s18, %s7071_s26  ;;  %p7077_p12 = scmp.lt.s32.totalorder %s7071_s26, %s7071_s26 }
  0x5d   :  { %p7078_p13 = por %p7077_p12, %p7076_p11 }
  0x5f   :  { %p7079_p0 = pnand %p7078_p13, %p7072_p10 }
  0x61   :  { %7082 = shalt.err (!%p7079_p0)
}
  0x62   :  { %s7423_s13 = smov 16   ;;  %s7424_s28 = smov 1  }
  0x63   :  { %168 = dma.hbm_to_vmem [thread:$0]  %s7517_s30, 32, %s163_s18, [#allocation12], %s7423_s13, %s7423_s13, %s7424_s28  }
  0x64   :  { %s7091_s8 = scalar_lea.vmem %s191_s23, 32  ;;  %p7096_p2 = scmp.lt.s32.totalorder %s191_s23, %s191_s23 }
  0x65   :  { %p7092_p1 = scmp.ne.s32.totalorder %s191_s23, %s7091_s8  ;;  %p7097_p3 = scmp.lt.s32.totalorder %s7091_s8, %s7091_s8 }
  0x67   :  { %p7098_p4 = por %p7097_p3, %p7096_p2 }
  0x69   :  { %p7099_p5 = pnand %p7098_p4, %p7092_p1 }
  0x6b   :  { %7102 = shalt.err (!%p7099_p5)
}
  0x6c   :  { %196 = dma.hbm_to_vmem [thread:$0]  %s7537_s27, 32, %s191_s23, [#allocation15], %s7423_s13, %s7423_s13, %s7424_s28  }
  0x6d   :  { %s7425_s1 = smov [#allocation17]   ;;  %s7426_s7 = smov [#allocation20]  }
  0x6e   :  { %s214_s2 = sshll.u32 %s7425_s1, 4  ;;  %s242_s10 = sshll.u32 %s7426_s7, 4  ;;  %s215_s2 = int_to_ptr.vmem [resolvable:$true] %s214_s2  ;;  %s243_s10 = int_to_ptr.vmem [resolvable:$true] %s242_s10 }
  0x6f   :  { %s7111_s0 = scalar_lea.vmem %s215_s2, 32  ;;  %p7116_p7 = scmp.lt.s32.totalorder %s215_s2, %s215_s2 }
  0x70   :  { %p7112_p6 = scmp.ne.s32.totalorder %s215_s2, %s7111_s0  ;;  %p7117_p8 = scmp.lt.s32.totalorder %s7111_s0, %s7111_s0 }
  0x72   :  { %p7118_p9 = por %p7117_p8, %p7116_p7 }
  0x74   :  { %p7119_p10 = pnand %p7118_p9, %p7112_p6 }
  0x76   :  { %7122 = shalt.err (!%p7119_p10)
}
  0x77   :  { %220 = dma.hbm_to_vmem [thread:$0]  %s7547_s19, 32, %s215_s2, [#allocation18], %s7423_s13, %s7423_s13, %s7424_s28  }
  0x78   :  { %s7131_s30 = scalar_lea.vmem %s243_s10, 32  ;;  %p7136_p12 = scmp.lt.s32.totalorder %s243_s10, %s243_s10 }
  0x79   :  { %p7132_p11 = scmp.ne.s32.totalorder %s243_s10, %s7131_s30  ;;  %p7137_p13 = scmp.lt.s32.totalorder %s7131_s30, %s7131_s30 }
  0x7b   :  { %p7138_p0 = por %p7137_p13, %p7136_p12 }
  0x7d   :  { %p7139_p1 = pnand %p7138_p0, %p7132_p11 }
  0x7f   :  { %7142 = shalt.err (!%p7139_p1)
}
  0x80   :  { %248 = dma.hbm_to_vmem [thread:$0]  %s7567_s3, 32, %s243_s10, [#allocation21], %s7423_s13, %s7423_s13, %s7424_s28  }
  0x81   :  { %s7427_s27 = smov [#allocation23]   ;;  %s7428_s15 = smov [#allocation2]  }
  0x82   :  { %s265_s11 = sshll.u32 %s7427_s27, 4  ;;  %s94_s16 = sshll.u32 %s7428_s15, 4  ;;  %s266_s11 = int_to_ptr.vmem [resolvable:$true] %s265_s11  ;;  %s95_s16 = int_to_ptr.vmem [resolvable:$true] %s94_s16 }
  0x83   :  { %s7151_s18 = scalar_lea.vmem %s266_s11, 16  ;;  %s7155_s19 = scalar_lea.vmem %s266_s11, 32 }
  0x84   :  { %p7152_p2 = scmp.ne.s32.totalorder %s266_s11, %s7151_s18  ;;  %p7156_p3 = scmp.lt.s32.totalorder %s266_s11, %s266_s11 }
  0x85   :  { %p7157_p4 = scmp.lt.s32.totalorder %s7155_s19, %s7151_s18 }
  0x87   :  { %p7158_p5 = por %p7157_p4, %p7156_p3 }
  0x89   :  { %p7159_p6 = pnand %p7158_p5, %p7152_p2 }
  0x8b   :  { %7162 = shalt.err (!%p7159_p6)
}
  0x8c   :  { %268 = dma.hbm_to_vmem [thread:$0]  %s7577_s29, 16, %s266_s11, [#allocation24]  }
  0x8d   :  { %s7171_s22 = scalar_lea.vmem %s95_s16, 256  ;;  %p7176_p8 = scmp.lt.s32.totalorder %s95_s16, %s95_s16 }
  0x8e   :  { %p7172_p7 = scmp.ne.s32.totalorder %s95_s16, %s7171_s22  ;;  %p7177_p9 = scmp.lt.s32.totalorder %s7171_s22, %s7171_s22 }
  0x90   :  { %p7178_p10 = por %p7177_p9, %p7176_p8 }
  0x92   :  { %p7179_p11 = pnand %p7178_p10, %p7172_p7 }
  0x94   :  { %7182 = shalt.err (!%p7179_p11)
}
  0x95   :  { %s7429_s3 = smov 128   ;;  %s7430_s23 = smov 8  }
  0x96   :  { %100 = dma.hbm_to_vmem [thread:$0]  %s7457_s5, 256, %s95_s16, [#allocation3], %s7429_s3, %s7429_s3, %s7430_s23  }
  0x97   :  { %s7431_s26 = smov [#allocation7]   ;;  %s7432_s1 = smov [#allocation10]  }
  0x98   :  { %s121_s8 = sshll.u32 %s7431_s26, 4  ;;  %s150_s2 = sshll.u32 %s7432_s1, 4  ;;  %s122_s8 = int_to_ptr.vmem [resolvable:$true] %s121_s8  ;;  %s151_s2 = int_to_ptr.vmem [resolvable:$true] %s150_s2 }
  0x99   :  { %s7191_s7 = scalar_lea.vmem %s122_s8, 16  ;;  %s7195_s29 = scalar_lea.vmem %s122_s8, 32 }
  0x9a   :  { %p7192_p12 = scmp.ne.s32.totalorder %s122_s8, %s7191_s7  ;;  %p7196_p13 = scmp.lt.s32.totalorder %s122_s8, %s122_s8 }
  0x9b   :  { %p7197_p0 = scmp.lt.s32.totalorder %s7195_s29, %s7191_s7 }
  0x9d   :  { %p7198_p1 = por %p7197_p0, %p7196_p13 }
  0x9f   :  { %p7199_p2 = pnand %p7198_p1, %p7192_p12 }
  0xa1   :  { %7202 = shalt.err (!%p7199_p2)
}
  0xa2   :  { %124 = dma.hbm_to_vmem [thread:$0]  %s7477_s21, 16, %s122_s8, [#allocation6]  }
  0xa3   :  { %s7211_s10 = scalar_lea.vmem %s151_s2, 32  ;;  %p7216_p4 = scmp.lt.s32.totalorder %s151_s2, %s151_s2 }
  0xa4   :  { %p7212_p3 = scmp.ne.s32.totalorder %s151_s2, %s7211_s10  ;;  %p7217_p5 = scmp.lt.s32.totalorder %s7211_s10, %s7211_s10 }
  0xa6   :  { %p7218_p6 = por %p7217_p5, %p7216_p4 }
  0xa8   :  { %p7219_p7 = pnand %p7218_p6, %p7212_p3 }
  0xaa   :  { %7222 = shalt.err (!%p7219_p7)
}
  0xab   :  { %156 = dma.hbm_to_vmem [thread:$0]  %s7512_s24, 32, %s151_s2, [#allocation9], %s7423_s13, %s7423_s13, %s7424_s28  }
  0xac   :  { %s7433_s5 = smov [#allocation13]  }
  0xad   :  { %s176_s0 = sshll.u32 %s7433_s5, 4  ;;  %s177_s0 = int_to_ptr.vmem [resolvable:$true] %s176_s0 }
  0xae   :  { %s7231_s30 = scalar_lea.vmem %s177_s0, 64  ;;  %p7236_p9 = scmp.lt.s32.totalorder %s177_s0, %s177_s0 }
  0xaf   :  { %p7232_p8 = scmp.ne.s32.totalorder %s177_s0, %s7231_s30  ;;  %p7237_p10 = scmp.lt.s32.totalorder %s7231_s30, %s7231_s30 }
  0xb1   :  { %p7238_p11 = por %p7237_p10, %p7236_p9 }
  0xb3   :  { %p7239_p12 = pnand %p7238_p11, %p7232_p8 }
  0xb5   :  { %7242 = shalt.err (!%p7239_p12)
}
  0xb6   :  { %s7434_s21 = smov 32   ;;  %s7435_s27 = smov 2  }
  0xb7   :  { %182 = dma.hbm_to_vmem [thread:$0]  %s7527_s12, 64, %s177_s0, [#allocation12], %s7434_s21, %s7434_s21, %s7435_s27  }
  0xb8   :  { %s7436_s11 = smov [#allocation16]   ;;  %s7437_s24 = smov [#allocation19]  }
  0xb9   :  { %s202_s15 = sshll.u32 %s7436_s11, 4  ;;  %s228_s16 = sshll.u32 %s7437_s24, 4  ;;  %s203_s15 = int_to_ptr.vmem [resolvable:$true] %s202_s15  ;;  %s229_s16 = int_to_ptr.vmem [resolvable:$true] %s228_s16 }
  0xba   :  { %s7251_s18 = scalar_lea.vmem %s203_s15, 32  ;;  %p7256_p0 = scmp.lt.s32.totalorder %s203_s15, %s203_s15 }
  0xbb   :  { %p7252_p13 = scmp.ne.s32.totalorder %s203_s15, %s7251_s18  ;;  %p7257_p1 = scmp.lt.s32.totalorder %s7251_s18, %s7251_s18 }
  0xbd   :  { %p7258_p2 = por %p7257_p1, %p7256_p0 }
  0xbf   :  { %p7259_p3 = pnand %p7258_p2, %p7252_p13 }
  0xc1   :  { %7262 = shalt.err (!%p7259_p3)
}
  0xc2   :  { %208 = dma.hbm_to_vmem [thread:$0]  %s7542_s4, 32, %s203_s15, [#allocation15], %s7423_s13, %s7423_s13, %s7424_s28  }
  0xc3   :  { %s7271_s19 = scalar_lea.vmem %s229_s16, 64  ;;  %p7276_p5 = scmp.lt.s32.totalorder %s229_s16, %s229_s16 }
  0xc4   :  { %p7272_p4 = scmp.ne.s32.totalorder %s229_s16, %s7271_s19  ;;  %p7277_p6 = scmp.lt.s32.totalorder %s7271_s19, %s7271_s19 }
  0xc6   :  { %p7278_p7 = por %p7277_p6, %p7276_p5 }
  0xc8   :  { %p7279_p8 = pnand %p7278_p7, %p7272_p4 }
  0xca   :  { %7282 = shalt.err (!%p7279_p8)
}
  0xcb   :  { %234 = dma.hbm_to_vmem [thread:$0]  %s7557_s6, 64, %s229_s16, [#allocation18], %s7434_s21, %s7434_s21, %s7435_s27  }
  0xcc   :  { %s7438_s12 = smov [#allocation22]   ;;  %s7439_s3 = smov [#allocation25]  }
  0xcd   :  { %s255_s22 = sshll.u32 %s7438_s12, 4  ;;  %s277_s23 = sshll.u32 %s7439_s3, 4  ;;  %s256_s22 = int_to_ptr.vmem [resolvable:$true] %s255_s22  ;;  %s278_s23 = int_to_ptr.vmem [resolvable:$true] %s277_s23 }
  0xce   :  { %s7291_s26 = scalar_lea.vmem %s256_s22, 16  ;;  %s7295_s4 = scalar_lea.vmem %s256_s22, 32 }
  0xcf   :  { %p7292_p9 = scmp.ne.s32.totalorder %s256_s22, %s7291_s26  ;;  %p7296_p10 = scmp.lt.s32.totalorder %s256_s22, %s256_s22 }
  0xd0   :  { %p7297_p11 = scmp.lt.s32.totalorder %s7295_s4, %s7291_s26 }
  0xd2   :  { %p7298_p12 = por %p7297_p11, %p7296_p10 }
  0xd4   :  { %p7299_p13 = pnand %p7298_p12, %p7292_p9 }
  0xd6   :  { %7302 = shalt.err (!%p7299_p13)
}
  0xd7   :  { %258 = dma.hbm_to_vmem [thread:$0]  %s7572_s20, 16, %s256_s22, [#allocation21]  }
  0xd8   :  { %s7311_s28 = scalar_lea.vmem %s278_s23, 32  ;;  %p7316_p1 = scmp.lt.s32.totalorder %s278_s23, %s278_s23 }
  0xd9   :  { %p7312_p0 = scmp.ne.s32.totalorder %s278_s23, %s7311_s28  ;;  %p7317_p2 = scmp.lt.s32.totalorder %s7311_s28, %s7311_s28 }
  0xdb   :  { %p7318_p3 = por %p7317_p2, %p7316_p1 }
  0xdd   :  { %p7319_p4 = pnand %p7318_p3, %p7312_p0 }
  0xdf   :  { %7322 = shalt.err (!%p7319_p4)
}
  0xe0   :  { %s8907_s6 = sld [smem:[#allocation51_spill]]  ;;  %s7440_s8 = smov [#allocation26]  }
  0xe1   :  { %s289_s1 = sshll.u32 %s7440_s8, 4  ;;  %s290_s1 = int_to_ptr.vmem [resolvable:$true] %s289_s1 }
  0xe2   :  { %s7331_s2 = scalar_lea.vmem %s290_s1, 16  ;;  %s7335_s7 = scalar_lea.vmem %s290_s1, 32 }
  0xe3   :  { %p7332_p5 = scmp.ne.s32.totalorder %s290_s1, %s7331_s2  ;;  %p7336_p6 = scmp.lt.s32.totalorder %s290_s1, %s290_s1 }
  0xe4   :  { %p7337_p7 = scmp.lt.s32.totalorder %s7335_s7, %s7331_s2 }
  0xe6   :  { %280 = dma.hbm_to_vmem [thread:$0]  %s8907_s6, 32, %s278_s23, [#allocation24]  }
  0xe7   :  { %p7338_p8 = por %p7337_p7, %p7336_p6 }
  0xe9   :  { %p7339_p9 = pnand %p7338_p8, %p7332_p5 }
  0xeb   :  { %7342 = shalt.err (!%p7339_p9)
}
  0xec   :  { %s8908_s20 = sld [smem:[#allocation53_spill]] }
  0xf2   :  { %292 = dma.hbm_to_vmem [thread:$0]  %s8908_s20, 16, %s290_s1, [#allocation27]  }
  0xf3   :  { %7363 = dma.done.wait [#allocation3], 256  }
  0xf4   :  { %7364 = vsyncadd [#allocation3], 4294967040 }
  0xf5   :  { %7365 = dma.done.wait [#allocation6], 32  }
  0xf6   :  { %7366 = vsyncadd [#allocation6], 4294967264 }
  0xf7   :  { %7367 = dma.done.wait [#allocation9], 48  }
  0xf8   :  { %7368 = vsyncadd [#allocation9], 4294967248 }
  0xf9   :  { %7369 = dma.done.wait [#allocation12], 96  }
  0xfa   :  { %7370 = vsyncadd [#allocation12], 4294967200 }
  0xfb   :  { %7371 = dma.done.wait [#allocation15], 64  }
  0xfc   :  { %7372 = vsyncadd [#allocation15], 4294967232 }
  0xfd   :  { %7373 = dma.done.wait [#allocation18], 96  }
  0xfe   :  { %7374 = vsyncadd [#allocation18], 4294967200 }
  0xff   :  { %7375 = dma.done.wait [#allocation21], 48  }
 0x100   :  { %7376 = vsyncadd [#allocation21], 4294967248 }
 0x101   :  { %7377 = dma.done.wait [#allocation24], 48  }
 0x102   :  { %7378 = vsyncadd [#allocation24], 4294967248 }
 0x103   :  { %7379 = dma.done.wait [#allocation27], 16  }
 0x104   :  { %7380 = vsyncadd [#allocation27], 4294967280  ;;  %vm357_vm0 = vcmask 523264   ;;  %v353_v0 = vld [vmem:[#allocation2] sm:$0xff]  ;;  %v354_v1 = vld [vmem:[#allocation2 + $0x8] sm:$0xff]  ;;  %s8909_s29 = sld [smem:[#allocation40_spill]] }
 0x105   :  { %v358_v2 = vsel %vm357_vm0, %v353_v0, 0.0  ;;  %v361_v3 = vsel %vm357_vm0, %v354_v1, 0.0  ;;  %s8910_s10 = sld [smem:[#allocation41_spill]]  ;;  %v5641_v36 = vld [vmem:[#allocation5] ss:$0 sm:$0xff]  ;;  %vm792_vm1 = vcmask 1040384  }
 0x106   :  { %359 = vadd.xlane.f32.xlu0 %v358_v2  ;;  %s8911_s5 = sld [smem:[#allocation39_spill]]  ;;  %v5642_v47 = vld [vmem:[#allocation7] ss:$0 sm:$0xff]  ;;  %vm812_vm2 = vcmask 517120   ;;  %s7442_s15 = smov 64   ;;  %vm7443_vm3 = vmmov 0  }
 0x107   :  { %s8912_s0 = sld [smem:[#allocation42_spill]]  ;;  %s7444_s24 = smov 48   ;;  %vm993_vm4 = vcmask 130048   ;;  %vm1130_vm5 = vcmask 1041408   ;;  %vm1086_vm6 = vcmask 146432   ;;  %vm1093_vm7 = vcmask 140288  }
 0x108   :  { %s8913_s30 = sld [smem:[#allocation43_spill]]  ;;  %s7445_s16 = smov 112   ;;  %vm2990_vm8 = vcmask 523265   ;;  %vm2992_vm9 = vcmask 516096  }
 0x109   :  { %s8914_s27 = sld [smem:[#allocation44_spill]]  ;;  %s7446_s19 = smov 96  }
 0x10a   :  { %362 = vadd.xlane.f32.xlu0 %v361_v3  ;;  %v408_v14 = vld [vmem:[%s8909_s29 + $0x38] sm:$0xff]  ;;  %v407_v15 = vld [vmem:[%s8909_s29 + $0x30] sm:$0xff]  ;;  %v406_v16 = vld [vmem:[%s8909_s29 + $0x28] sm:$0xff]  ;;  %s8915_s11 = sld [smem:[#allocation46_spill]]  ;;  %s7447_s22 = smov 80  }
 0x10b   :  { %6273 = vmatprep.subr.mxu0 %v408_v14  ;;  %v405_v17 = vld [vmem:[%s8909_s29 + $0x20] sm:$0xff]  ;;  %v404_v18 = vld [vmem:[%s8909_s29 + $0x18] sm:$0xff]  ;;  %v403_v19 = vld [vmem:[%s8909_s29 + $0x10] sm:$0xff]  ;;  %s8916_s18 = sld [smem:[#allocation45_spill]] }
 0x10c   :  { %6274 = vmatpush3.msra.mxu0 %v408_v14  ;;  %v402_v20 = vld [vmem:[%s8909_s29 + $0x8] sm:$0xff]  ;;  %v401_v21 = vld [vmem:[%s8909_s29] sm:$0xff]  ;;  %v504_v22 = vld [vmem:[%s8910_s10 + $0x38] sm:$0xff]  ;;  %s8917_s12 = sld [smem:[#allocation47_spill]] }
 0x10d   :  { %6275 = vmatprep.subr.mxu0 %v407_v15  ;;  %v503_v23 = vld [vmem:[%s8910_s10 + $0x30] sm:$0xff]  ;;  %6292 = vmatprep.subr.mxu1 %v504_v22  ;;  %v502_v24 = vld [vmem:[%s8910_s10 + $0x28] sm:$0xff]  ;;  %v501_v25 = vld [vmem:[%s8910_s10 + $0x20] sm:$0xff]  ;;  %s8918_s3 = sld [smem:[#allocation48_spill]] }
 0x10e   :  { %6276 = vmatpush3.msra.mxu0 %v407_v15  ;;  %6293 = vmatpush3.msra.mxu1 %v504_v22  ;;  %v500_v26 = vld [vmem:[%s8910_s10 + $0x18] sm:$0xff]  ;;  %v5640_v34 = vld [vmem:[%s8911_s5] ss:$0 sm:$0xff]  ;;  %v499_v43 = vld [vmem:[%s8910_s10 + $0x10] sm:$0xff]  ;;  %s8919_s23 = sld [smem:[#allocation49_spill]] }
 0x10f   :  { %6277 = vmatprep.subr.mxu0 %v406_v16  ;;  %6294 = vmatprep.subr.mxu1 %v503_v23  ;;  %v498_v44 = vld [vmem:[%s8910_s10 + $0x8] sm:$0xff]  ;;  %v497_v45 = vld [vmem:[%s8910_s10] sm:$0xff]  ;;  %v611_v51 = vld [vmem:[%s8912_s0 + $0x78] sm:$0xff]  ;;  %s8920_s26 = sld [smem:[#allocation50_spill]] }
 0x110   :  { %6278 = vmatpush3.msra.mxu0 %v406_v16  ;;  %6295 = vmatpush3.msra.mxu1 %v503_v23  ;;  %v610_v52 = vld [vmem:[%s8912_s0 + $0x70] sm:$0xff]  ;;  %v609_v53 = vld [vmem:[%s8912_s0 + $0x68] sm:$0xff]  ;;  %v608_v54 = vld [vmem:[%s8912_s0 + $0x60] sm:$0xff]  ;;  %s8921_s4 = sld [smem:[#allocation52_spill]] }
 0x111   :  { %6279 = vmatprep.subr.mxu0 %v405_v17  ;;  %6296 = vmatprep.subr.mxu1 %v502_v24  ;;  %v607_v55 = vld [vmem:[%s8912_s0 + $0x58] sm:$0xff]  ;;  %v606_v56 = vld [vmem:[%s8912_s0 + $0x50] sm:$0xff]  ;;  %v605_v59 = vld [vmem:[%s8912_s0 + $0x48] sm:$0xff]  ;;  %s8924_s28 = sld [smem:[#allocation55_spill]] }
 0x112   :  { %6280 = vmatpush3.msra.mxu0 %v405_v17  ;;  %6297 = vmatpush3.msra.mxu1 %v502_v24  ;;  %v604_v60 = vld [vmem:[%s8912_s0 + $0x40] sm:$0xff]  ;;  %v603_v61 = vld [vmem:[%s8912_s0 + $0x38] sm:$0xff]  ;;  %v602_v62 = vld [vmem:[%s8912_s0 + $0x30] sm:$0xff]  ;;  %s8925_s6 = sld [smem:[#allocation57_spill]] }
 0x113   :  { %6281 = vmatprep.subr.mxu0 %v404_v18  ;;  %6298 = vmatprep.subr.mxu1 %v501_v25  ;;  %v601_v63 = vld [vmem:[%s8912_s0 + $0x28] sm:$0xff]  ;;  %v598_v2 = vld [vmem:[%s8912_s0 + $0x10] sm:$0xff]  ;;  %v695_v24 = vld [vmem:[%s8913_s30 + $0x20] sm:$0xff] }
 0x114   :  { %6282 = vmatpush3.msra.mxu0 %v404_v18  ;;  %6299 = vmatpush3.msra.mxu1 %v501_v25  ;;  %v597_v3 = vld [vmem:[%s8912_s0 + $0x8] sm:$0xff]  ;;  %v697_v22 = vld [vmem:[%s8913_s30 + $0x30] sm:$0xff]  ;;  %v694_v25 = vld [vmem:[%s8913_s30 + $0x18] sm:$0xff] }
 0x115   :  { %6283 = vmatprep.subr.mxu0 %v403_v19  ;;  %6300 = vmatprep.subr.mxu1 %v500_v26  ;;  %v696_v23 = vld [vmem:[%s8913_s30 + $0x28] sm:$0xff] }
 0x116   :  { %6284 = vmatpush3.msra.mxu0 %v403_v19  ;;  %6301 = vmatpush3.msra.mxu1 %v500_v26  ;;  %v700_v19 = vld [vmem:[%s8913_s30 + $0x48] sm:$0xff]  ;;  %v693_v26 = vld [vmem:[%s8913_s30 + $0x10] sm:$0xff] }
 0x117   :  { %6285 = vmatprep.subr.mxu0 %v402_v20  ;;  %6302 = vmatprep.subr.mxu1 %v499_v43 }
 0x118   :  { %6286 = vmatpush3.msra.mxu0 %v402_v20  ;;  %6303 = vmatpush3.msra.mxu1 %v499_v43  ;;  %v699_v20 = vld [vmem:[%s8913_s30 + $0x40] sm:$0xff]  ;;  %v797_v43 = vld [vmem:[%s8914_s27 + $0x10] sm:$0x3] }
 0x119   :  { %6287 = vmatprep.subr.mxu0 %v401_v21  ;;  %6304 = vmatprep.subr.mxu1 %v498_v44 }
 0x11a   :  { %6288 = vmatpush3.msra.mxu0 %v401_v21  ;;  %6305 = vmatpush3.msra.mxu1 %v498_v44  ;;  %v698_v21 = vld [vmem:[%s8913_s30 + $0x38] sm:$0xff] }
 0x11b   :  { %6306 = vmatprep.subr.mxu1 %v497_v45  ;;  %6311 = vmatprep.subr.mxu0 %v611_v51 }
 0x11c   :  { %6307 = vmatpush3.msra.mxu1 %v497_v45 }
 0x18f   :  { %v360_v4 = vpop.xlane.xlu0 %359 }
 0x190   :  { %v365_v5 = vmul.f32 0.015625, %v360_v4  ;;  %v596_v4 = vld [vmem:[%s8912_s0] sm:$0xff] }
 0x192   :  { %v367_v6 = vsub.f32 %v353_v0, %v365_v5  ;;  %v600_v0 = vld [vmem:[%s8912_s0 + $0x20] sm:$0xff]  ;;  %v706_v5 = vld [vmem:[%s8913_s30 + $0x78] sm:$0xff] }
 0x193   :  { %v363_v7 = vpop.xlane.xlu0 %362  ;;  %6346 = vmatprep.subr.mxu1 %v706_v5 }
 0x194   :  { %v366_v8 = vmul.f32 0.015625, %v363_v7  ;;  %v369_v9 = vmul.f32 %v367_v6, %v367_v6  ;;  %v704_v7 = vld [vmem:[%s8913_s30 + $0x68] sm:$0xff] }
 0x196   :  { %v368_v10 = vsub.f32 %v354_v1, %v366_v8  ;;  %v371_v11 = vsel %vm357_vm0, %v369_v9, 0.0  ;;  %v599_v1 = vld [vmem:[%s8912_s0 + $0x18] sm:$0xff]  ;;  %v703_v8 = vld [vmem:[%s8913_s30 + $0x60] sm:$0xff] }
 0x197   :  { %372 = vadd.xlane.f32.xlu1 %v371_v11  ;;  %v702_v9 = vld [vmem:[%s8913_s30 + $0x58] sm:$0xff] }
 0x198   :  { %v370_v12 = vmul.f32 %v368_v10, %v368_v10 }
 0x19a   :  { %v374_v13 = vsel %vm357_vm0, %v370_v12, 0.0 }
 0x19b   :  { %375 = vadd.xlane.f32.xlu1 %v374_v13 }
 0x220   :  { %v373_v27 = vpop.xlane.xlu1 %372 }
 0x221   :  { %v377_v28 = vmul.f32 0.015625, %v373_v27  ;;  %v692_v27 = vld [vmem:[%s8913_s30 + $0x8] sm:$0xff] }
 0x223   :  { %v379_v29 = vadd.f32 1e-05, %v377_v28  ;;  %v691_v28 = vld [vmem:[%s8913_s30] sm:$0xff] }
 0x224   :  { %v376_v30 = vpop.xlane.xlu1 %375 }
 0x225   :  { %6816 = vrsqrt.f32 %v379_v29  ;;  %v378_v31 = vmul.f32 0.015625, %v376_v30 }
 0x227   :  { %v380_v32 = vadd.f32 1e-05, %v378_v31 }
 0x229   :  { %6818 = vrsqrt.f32 %v380_v32 }
 0x232   :  { %v6817_v33 = vpop.eup %6816 }
 0x233   :  { %v383_v35 = vmul.f32 %v6817_v33, %v367_v6  ;;  %v705_v6 = vld [vmem:[%s8913_s30 + $0x70] sm:$0xff] }
 0x235   :  { %v391_v37 = vmul.f32 %v5640_v34, %v383_v35  ;;  %v5647_v35 = vld [vmem:[#allocation8] ss:$0 sm:$0xff] }
 0x236   :  { %v6819_v38 = vpop.eup %6818 }
 0x237   :  { %v384_v39 = vmul.f32 %v6819_v38, %v368_v10  ;;  %v399_v40 = vadd.f32 %v5641_v36, %v391_v37  ;;  %v701_v10 = vld [vmem:[%s8913_s30 + $0x50] sm:$0xff] }
 0x239   :  { %v392_v41 = vmul.f32 %v5640_v34, %v384_v39  ;;  %6289 = vmatprep.mubr.msk.f32.mxu0 %vm357_vm0, %v399_v40  ;;  %v795_v39 = vld [vmem:[%s8914_s27] sm:$0xff] }
 0x23b   :  { %v400_v42 = vadd.f32 %v5641_v36, %v392_v41  ;;  %v796_v41 = vld [vmem:[%s8914_s27 + $0x8] sm:$0xff] }
 0x23d   :  { %6290 = vmatmul.mubr.msk.f32.vlgmr.msra.gmra.mxu0 %vm357_vm0, %v400_v42 }
 0x23e   :  { %6312 = vmatpush3.msra.mxu0 %v611_v51 }
 0x23f   :  { %6313 = vmatprep.subr.mxu0 %v610_v52 }
 0x240   :  { %6314 = vmatpush3.msra.mxu0 %v610_v52 }
 0x241   :  { %6315 = vmatprep.subr.mxu0 %v609_v53 }
 0x242   :  { %6316 = vmatpush3.msra.mxu0 %v609_v53 }
 0x243   :  { %6317 = vmatprep.subr.mxu0 %v608_v54 }
 0x244   :  { %6318 = vmatpush3.msra.mxu0 %v608_v54 }
 0x245   :  { %6319 = vmatprep.subr.mxu0 %v607_v55 }
 0x246   :  { %6320 = vmatpush3.msra.mxu0 %v607_v55 }
 0x247   :  { %6321 = vmatprep.subr.mxu0 %v606_v56 }
 0x248   :  { %6322 = vmatpush3.msra.mxu0 %v606_v56 }
 0x249   :  { %6323 = vmatprep.subr.mxu0 %v605_v59 }
 0x24a   :  { %6324 = vmatpush3.msra.mxu0 %v605_v59 }
 0x24b   :  { %6325 = vmatprep.subr.mxu0 %v604_v60 }
 0x24c   :  { %6326 = vmatpush3.msra.mxu0 %v604_v60 }
 0x24d   :  { %6327 = vmatprep.subr.mxu0 %v603_v61 }
 0x24e   :  { %6328 = vmatpush3.msra.mxu0 %v603_v61 }
 0x24f   :  { %6329 = vmatprep.subr.mxu0 %v602_v62 }
 0x250   :  { %6330 = vmatpush3.msra.mxu0 %v602_v62 }
 0x251   :  { %6331 = vmatprep.subr.mxu0 %v601_v63 }
 0x252   :  { %6332 = vmatpush3.msra.mxu0 %v601_v63 }
 0x253   :  { %6333 = vmatprep.subr.mxu0 %v600_v0 }
 0x254   :  { %6334 = vmatpush3.msra.mxu0 %v600_v0 }
 0x255   :  { %6335 = vmatprep.subr.mxu0 %v599_v1 }
 0x256   :  { %6336 = vmatpush3.msra.mxu0 %v599_v1 }
 0x257   :  { %6337 = vmatprep.subr.mxu0 %v598_v2 }
 0x258   :  { %6338 = vmatpush3.msra.mxu0 %v598_v2 }
 0x259   :  { %6339 = vmatprep.subr.mxu0 %v597_v3 }
 0x25a   :  { %6340 = vmatpush3.msra.mxu0 %v597_v3  ;;  %v879_v3 = vld [vmem:[%s8915_s11 + $0x78] sm:$0xff] }
 0x25b   :  { %6341 = vmatprep.subr.mxu0 %v596_v4 }
 0x25c   :  { %6342 = vmatpush3.msra.mxu0 %v596_v4  ;;  %v878_v4 = vld [vmem:[%s8915_s11 + $0x70] sm:$0xff] }
 0x25d   :  { %917 = vmatprep.subr.mxu0 %v879_v3 }
 0x2fd   :  { %v6291_v46 = vpop.f32.mrf.mxu0 }
 0x2fe   :  { %v494_v50 = vadd.f32 %v6291_v46, %v5642_v47 }
 0x2ff   :  { %v488_v48 = vpop.f32.mrf.mxu0 }
 0x300   :  { %v489_v49 = vadd.f32 %v5642_v47, %v488_v48 }
 0x302   :  { %6308 = vmatprep.mubr.msk.f32.mxu1 %vm357_vm0, %v489_v49 }
 0x303   :  { %6309 = vmatmul.mubr.msk.f32.vlgmr.msra.gmra.mxu1 %vm357_vm0, %v494_v50 }
 0x304   :  { %6347 = vmatpush3.msra.mxu1 %v706_v5  ;;  %v877_v5 = vld [vmem:[%s8915_s11 + $0x68] sm:$0xff] }
 0x305   :  { %6348 = vmatprep.subr.mxu1 %v705_v6 }
 0x306   :  { %6349 = vmatpush3.msra.mxu1 %v705_v6  ;;  %v876_v6 = vld [vmem:[%s8915_s11 + $0x60] sm:$0xff] }
 0x307   :  { %6350 = vmatprep.subr.mxu1 %v704_v7 }
 0x308   :  { %6351 = vmatpush3.msra.mxu1 %v704_v7  ;;  %v875_v7 = vld [vmem:[%s8915_s11 + $0x58] sm:$0xff] }
 0x309   :  { %6352 = vmatprep.subr.mxu1 %v703_v8 }
 0x30a   :  { %6353 = vmatpush3.msra.mxu1 %v703_v8  ;;  %v7441_v8 = vmov 0.0  }
 0x30b   :  { %6354 = vmatprep.subr.mxu1 %v702_v9 }
 0x30c   :  { %6355 = vmatpush3.msra.mxu1 %v702_v9  ;;  %v874_v9 = vld [vmem:[%s8915_s11 + $0x50] sm:$0xff] }
 0x30d   :  { %6356 = vmatprep.subr.mxu1 %v701_v10 }
 0x30e   :  { %6357 = vmatpush3.msra.mxu1 %v701_v10  ;;  %v873_v10 = vld [vmem:[%s8915_s11 + $0x48] sm:$0xff] }
 0x30f   :  { %6358 = vmatprep.subr.mxu1 %v700_v19 }
 0x310   :  { %6359 = vmatpush3.msra.mxu1 %v700_v19  ;;  %v864_v19 = vld [vmem:[%s8915_s11] sm:$0xff] }
 0x311   :  { %6360 = vmatprep.subr.mxu1 %v699_v20 }
 0x312   :  { %6361 = vmatpush3.msra.mxu1 %v699_v20 }
 0x313   :  { %6362 = vmatprep.subr.mxu1 %v698_v21 }
 0x314   :  { %6363 = vmatpush3.msra.mxu1 %v698_v21 }
 0x315   :  { %6364 = vmatprep.subr.mxu1 %v697_v22 }
 0x316   :  { %6365 = vmatpush3.msra.mxu1 %v697_v22 }
 0x317   :  { %6366 = vmatprep.subr.mxu1 %v696_v23 }
 0x318   :  { %6367 = vmatpush3.msra.mxu1 %v696_v23 }
 0x319   :  { %6368 = vmatprep.subr.mxu1 %v695_v24 }
 0x31a   :  { %6369 = vmatpush3.msra.mxu1 %v695_v24 }
 0x31b   :  { %6370 = vmatprep.subr.mxu1 %v694_v25 }
 0x31c   :  { %6371 = vmatpush3.msra.mxu1 %v694_v25 }
 0x31d   :  { %6372 = vmatprep.subr.mxu1 %v693_v26 }
 0x31e   :  { %6373 = vmatpush3.msra.mxu1 %v693_v26 }
 0x31f   :  { %6374 = vmatprep.subr.mxu1 %v692_v27 }
 0x320   :  { %6375 = vmatpush3.msra.mxu1 %v692_v27 }
 0x321   :  { %6376 = vmatprep.subr.mxu1 %v691_v28 }
 0x322   :  { %6377 = vmatpush3.msra.mxu1 %v691_v28 }
 0x323   :  { %6381 = vmatprep.subr.mxu1 %v7441_v8 }
 0x3c3   :  { %v6310_v57 = vpop.f32.mrf.mxu1 }
 0x3c4   :  { %588 = vmax.xlane.f32.xlu1 %v6310_v57 }
 0x3c5   :  { %v577_v58 = vpop.f32.mrf.mxu1 }
 0x3c6   :  { %586 = vmax.xlane.f32.xlu0 %v577_v58 }
 0x44d   :  { %v589_v11 = vpop.xlane.xlu1 %588 }
 0x44e   :  { %v591_v12 = vsub.f32 %v6310_v57, %v589_v11  ;;  %v872_v11 = vld [vmem:[%s8915_s11 + $0x40] sm:$0xff] }
 0x44f   :  { %v587_v13 = vpop.xlane.xlu0 %586 }
 0x450   :  { %v590_v14 = vsub.f32 %v577_v58, %v587_v13  ;;  %v594_v15 = vmul.f32 1.442695, %v591_v12  ;;  %v871_v12 = vld [vmem:[%s8915_s11 + $0x38] sm:$0xff]  ;;  %v870_v13 = vld [vmem:[%s8915_s11 + $0x30] sm:$0xff] }
 0x452   :  { %v592_v16 = vmul.f32 1.442695, %v590_v14  ;;  %v869_v14 = vld [vmem:[%s8915_s11 + $0x28] sm:$0xff] }
 0x454   :  { %6820 = vpow2.f32 %v592_v16  ;;  %v867_v16 = vld [vmem:[%s8915_s11 + $0x18] sm:$0xff] }
 0x455   :  { %6822 = vpow2.f32 %v594_v15  ;;  %v868_v15 = vld [vmem:[%s8915_s11 + $0x20] sm:$0xff] }
 0x461   :  { %v6821_v17 = vpop.eup %6820 }
 0x462   :  { %v6823_v18 = vpop.eup %6822  ;;  %6343 = vmatprep.mubr.f32.mxu0 %v6821_v17 }
 0x463   :  { %6344 = vmatmul.mubr.f32.vlgmr.msra.gmra.mxu0 %v6823_v18 }
 0x464   :  { %918 = vmatpush1.msra.mxu0 %v878_v4  ;;  %965 = vmatprep.mubr.f32.mxu0 %v7441_v8 }
 0x465   :  { %919 = vmatprep.subr.mxu0 %v877_v5 }
 0x466   :  { %920 = vmatpush1.msra.mxu0 %v876_v6 }
 0x467   :  { %921 = vmatprep.subr.mxu0 %v875_v7 }
 0x468   :  { %922 = vmatpush1.msra.mxu0 %v874_v9 }
 0x469   :  { %923 = vmatprep.subr.mxu0 %v873_v10 }
 0x46a   :  { %924 = vmatpush1.msra.mxu0 %v872_v11  ;;  %v7877_v11 = vld [vmem:[%s8916_s18] sm:$0xff] }
 0x46b   :  { %925 = vmatprep.subr.mxu0 %v871_v12 }
 0x46c   :  { %926 = vmatpush1.msra.mxu0 %v870_v13 }
 0x46d   :  { %927 = vmatprep.subr.mxu0 %v869_v14 }
 0x46e   :  { %928 = vmatpush1.msra.mxu0 %v868_v15  ;;  %v7881_v15 = vld [vmem:[%s8916_s18 + $0x8] sm:$0xff] }
 0x46f   :  { %929 = vmatprep.subr.mxu0 %v867_v16 }
 0x523   :  { %v6345_v29 = vpop.f32.mrf.mxu0 }
 0x524   :  { %6824 = vrcp.f32 %v6345_v29 }
 0x525   :  { %v678_v30 = vpop.f32.mrf.mxu0 }
 0x526   :  { %6826 = vrcp.f32 %v678_v30  ;;  %v5648_v30 = vld [vmem:[#allocation10] ss:$0 sm:$0xff] }
 0x531   :  { %v6825_v31 = vpop.eup %6824 }
 0x532   :  { %v690_v34 = vmul.f32 %v6825_v31, %v6823_v18  ;;  %v865_v18 = vld [vmem:[%s8915_s11 + $0x8] sm:$0xff] }
 0x533   :  { %v6827_v32 = vpop.eup %6826 }
 0x534   :  { %v689_v33 = vmul.f32 %v6827_v32, %v6821_v17  ;;  %v866_v17 = vld [vmem:[%s8915_s11 + $0x10] sm:$0xff] }
 0x535   :  { %930 = vmatpush1.msra.mxu0 %v866_v17 }
 0x536   :  { %6378 = vmatprep.mubr.f32.mxu1 %v689_v33  ;;  %931 = vmatprep.subr.mxu0 %v865_v18  ;;  %v5649_v33 = vld [vmem:[#allocation11] ss:$0 sm:$0xff] }
 0x537   :  { %6379 = vmatmul.mubr.f32.vlgmr.msra.gmra.mxu1 %v690_v34  ;;  %932 = vmatpush1.msra.mxu0 %v864_v19 }
 0x538   :  { %6411 = vmatprep.subr.mxu0 %v7441_v8  ;;  %6387 = vmatprep.mubr.msk.f32.mxu1 %vm7443_vm3, %v7441_v8 }
 0x5f7   :  { %v6380_v36 = vpop.f32.mrf.mxu1 }
 0x5f8   :  { %v786_v37 = vadd.f32 %v6380_v36, %v5647_v35 }
 0x5f9   :  { %v780_v38 = vpop.f32.mrf.mxu1 }
 0x5fa   :  { %v790_v40 = vrot.slane %v786_v37, 7  ;;  %v781_v42 = vadd.f32 %v5647_v35, %v780_v38 }
 0x5fc   :  { %v793_v44 = vsel %vm792_vm1, 0.0, %v790_v40  ;;  %v794_v45 = vsel %vm792_vm1, %v790_v40, 0.0  ;;  %v7739_v46 = vadd.f32 %v795_v39, %v781_v42 }
 0x5fd   :  { %v7741_v47 = vadd.f32 %v796_v41, %v793_v44  ;;  %v7743_v48 = vadd.f32 %v797_v43, %v794_v45  ;;  %v882_v43 = vlaneseq }
 0x5fe   :  { %v806_v49 = vsel %vm357_vm0, %v7739_v46, 0.0 }
 0x5ff   :  { %807 = vadd.xlane.f32.xlu0 %v806_v49  ;;  %v809_v50 = vsel %vm357_vm0, %v7741_v47, 0.0  ;;  %v813_v51 = vsel %vm812_vm2, %v7743_v48, 0.0  ;;  %v883_v44 = vshrl.u32 %v882_v43, 7  ;;  %v880_v49 = vld [vmem:[#allocation13] sm:$0x3] }
 0x600   :  { %810 = vadd.xlane.f32.xlu1 %v809_v50 }
 0x601   :  { %v7796_v45 = vsub.s32 0, %v883_v44 }
 0x603   :  { %814 = vadd.xlane.f32.xlu0 %v813_v51 }
 0x688   :  { %v808_v52 = vpop.xlane.xlu0 %807 }
 0x689   :  { %v816_v53 = vmul.f32 0.015625, %v808_v52  ;;  %v811_v54 = vpop.xlane.xlu1 %810  ;;  %v885_v52 = vrot.slane %v880_v49, %v7796_v45 }
 0x68a   :  { %v817_v55 = vmul.f32 0.015625, %v811_v54 }
 0x68b   :  { %v7752_v56 = vsub.f32 %v7739_v46, %v816_v53 }
 0x68c   :  { %v7755_v57 = vsub.f32 %v7741_v47, %v817_v55  ;;  %v815_v58 = vpop.xlane.xlu0 %814 }
 0x68d   :  { %v818_v59 = vmul.f32 0.015625, %v815_v58  ;;  %v822_v60 = vmul.f32 %v7752_v56, %v7752_v56 }
 0x68e   :  { %v823_v61 = vmul.f32 %v7755_v57, %v7755_v57 }
 0x68f   :  { %v7762_v62 = vsub.f32 %v7743_v48, %v818_v59  ;;  %v825_v63 = vsel %vm357_vm0, %v822_v60, 0.0 }
 0x690   :  { %826 = vadd.xlane.f32.xlu1 %v825_v63  ;;  %v828_v0 = vsel %vm357_vm0, %v823_v61, 0.0  ;;  %v7829_v63 = vsub.s32 1, %v883_v44 }
 0x691   :  { %829 = vadd.xlane.f32.xlu0 %v828_v0  ;;  %v824_v1 = vmul.f32 %v7762_v62, %v7762_v62 }
 0x693   :  { %v831_v2 = vsel %vm812_vm2, %v824_v1, 0.0 }
 0x694   :  { %832 = vadd.xlane.f32.xlu1 %v831_v2  ;;  %v889_v2 = vrot.slane %v880_v49, %v7829_v63 }
 0x719   :  { %v827_v20 = vpop.xlane.xlu1 %826 }
 0x71a   :  { %v834_v21 = vmul.f32 0.015625, %v827_v20  ;;  %v830_v22 = vpop.xlane.xlu0 %829 }
 0x71b   :  { %v835_v23 = vmul.f32 0.015625, %v830_v22 }
 0x71c   :  { %v837_v24 = vadd.f32 1e-05, %v834_v21  ;;  %v7886_v21 = vld [vmem:[%s8916_s18 + $0x10] sm:$0x3] }
 0x71d   :  { %v838_v25 = vadd.f32 1e-05, %v835_v23  ;;  %v833_v26 = vpop.xlane.xlu1 %832 }
 0x71e   :  { %6828 = vrsqrt.f32 %v837_v24  ;;  %v836_v27 = vmul.f32 0.015625, %v833_v26 }
 0x71f   :  { %6830 = vrsqrt.f32 %v838_v25 }
 0x720   :  { %v839_v28 = vadd.f32 1e-05, %v836_v27 }
 0x722   :  { %6832 = vrsqrt.f32 %v839_v28 }
 0x72b   :  { %v6829_v29 = vpop.eup %6828 }
 0x72c   :  { %v6831_v31 = vpop.eup %6830  ;;  %v843_v32 = vmul.f32 %v6829_v29, %v7752_v56 }
 0x72d   :  { %v844_v34 = vmul.f32 %v6831_v31, %v7755_v57 }
 0x72e   :  { %v852_v35 = vmul.f32 %v5648_v30, %v843_v32 }
 0x72f   :  { %v6833_v36 = vpop.eup %6832  ;;  %v853_v38 = vmul.f32 %v5648_v30, %v844_v34 }
 0x730   :  { %v861_v37 = vadd.f32 %v5649_v33, %v852_v35  ;;  %v845_v39 = vmul.f32 %v6833_v36, %v7762_v62 }
 0x731   :  { %v862_v40 = vadd.f32 %v5649_v33, %v853_v38 }
 0x732   :  { %5650 = vmatmul.mubr.msk.f32.vlgmr.msra.gmra.mxu0 %vm357_vm0, %v861_v37  ;;  %v854_v41 = vmul.f32 %v5648_v30, %v845_v39 }
 0x733   :  { %971 = vmatprep.mubr.f32.mxu0 %v7441_v8 }
 0x734   :  { %v863_v42 = vadd.f32 %v5649_v33, %v854_v41 }
 0x736   :  { %5651 = vmatmul.mubr.msk.f32.gmra.mxu0 %vm357_vm0, %v862_v40 }
 0x737   :  { %977 = vmatprep.mubr.f32.mxu0 %v7441_v8 }
 0x73a   :  { %5652 = vmatmul.mubr.msk.f32.gmra.mxu0 %vm357_vm0, %v863_v42 }
 0x73b   :  { %6417 = vmatprep.mubr.msk.f32.mxu0 %vm7443_vm3, %v7441_v8 }
 0x7f2   :  { %v967_v50 = vpop.f32.mrf.mxu0 }
 0x7f3   :  { %v7807_v57 = vadd.f32 %v967_v50, %v885_v52 }
 0x7f4   :  { %v969_v51 = vpop.f32.mrf.mxu0 }
 0x7f5   :  { %v7852_v6 = vadd.f32 %v969_v51, %v889_v2 }
 0x7f6   :  { %v973_v53 = vpop.f32.mrf.mxu0 }
 0x7f7   :  { %v7799_v54 = vadd.f32 %v973_v53, %v885_v52 }
 0x7f8   :  { %v975_v55 = vpop.f32.mrf.mxu0 }
 0x7f9   :  { %989 = vrot.lane.b32.xlu1 %v7799_v54, %s7442_s15  ;;  %v7844_v5 = vadd.f32 %v975_v55, %v889_v2 }
 0x7fa   :  { %v979_v56 = vpop.f32.mrf.mxu0 }
 0x7fb   :  { %v7809_v58 = vadd.f32 %v979_v56, %v885_v52 }
 0x7fc   :  { %v981_v0 = vpop.f32.mrf.mxu0 }
 0x7fd   :  { %991 = vrot.lane.b32.xlu0 %v7809_v58, %s7442_s15  ;;  %987 = vrot.lane.b32.xlu1 %v7807_v57, %s7442_s15  ;;  %v7840_v3 = vadd.f32 %v981_v0, %v889_v2 }
 0x801   :  { %1224 = vrot.lane.b32.xlu0 %v7799_v54, %s7444_s24  ;;  %1226 = vrot.lane.b32.xlu1 %v7809_v58, %s7444_s24 }
 0x805   :  { %1216 = vrot.lane.b32.xlu0 %v7807_v57, %s7445_s16  ;;  %1222 = vrot.lane.b32.xlu1 %v7807_v57, %s7444_s24 }
 0x809   :  { %1220 = vrot.lane.b32.xlu0 %v7809_v58, %s7445_s16  ;;  %1218 = vrot.lane.b32.xlu1 %v7799_v54, %s7445_s16 }
 0x86b   :  { %v990_v59 = vpop.permute.xlu1 %989 }
 0x86f   :  { %v992_v60 = vpop.permute.xlu0 %991  ;;  %v988_v61 = vpop.permute.xlu1 %987 }
 0x870   :  { %6382 = vmatpush3.xpose.msk.msra.mxu1 %vm993_vm4, %v992_v60 }
 0x871   :  { %6383 = vmatprep.subr.mxu1 %v7441_v8 }
 0x873   :  { %v1227_v62 = vpop.permute.xlu1 %1226  ;;  %v1225_v1 = vpop.permute.xlu0 %1224 }
 0x874   :  { %6384 = vmatpush3.xpose.msk.msra.mxu1 %vm993_vm4, %v990_v59  ;;  %6412 = vmatpush3.xpose.msk.msra.mxu0 %vm993_vm4, %v1227_v62 }
 0x875   :  { %6385 = vmatprep.subr.mxu1 %v7441_v8  ;;  %6413 = vmatprep.subr.mxu0 %v7441_v8 }
 0x877   :  { %v1223_v4 = vpop.permute.xlu1 %1222  ;;  %v1217_v7 = vpop.permute.xlu0 %1216 }
 0x878   :  { %6386 = vmatpush3.xpose.msk.msra.mxu1 %vm993_vm4, %v988_v61  ;;  %6414 = vmatpush3.xpose.msk.msra.mxu0 %vm993_vm4, %v1225_v1 }
 0x879   :  { %6396 = vmatprep.subr.mxu1 %v7441_v8  ;;  %6415 = vmatprep.subr.mxu0 %v7441_v8 }
 0x87b   :  { %6388 = vmatmul.mubr.msk.f32.vlgmr.msra.gmra.mxu1 %vm993_vm4, %v7807_v57  ;;  %v1219_v9 = vpop.permute.xlu1 %1218  ;;  %v1221_v10 = vpop.permute.xlu0 %1220 }
 0x87c   :  { %6397 = vmatpush3.msk.msra.mxu1 %vm1130_vm5, %v7840_v3  ;;  %6416 = vmatpush3.xpose.msk.msra.mxu0 %vm993_vm4, %v1223_v4 }
 0x87d   :  { %6398 = vmatprep.subr.mxu1 %v7441_v8  ;;  %6390 = vmatprep.mubr.msk.f32.mxu1 %vm7443_vm3, %v7441_v8 }
 0x87e   :  { %6399 = vmatpush3.msra.mxu1 %v7844_v5  ;;  %6441 = vmatprep.subr.mxu0 %v7441_v8 }
 0x87f   :  { %6391 = vmatmul.mubr.msk.f32.gmra.mxu1 %vm993_vm4, %v7799_v54  ;;  %6400 = vmatprep.subr.mxu1 %v7441_v8 }
 0x880   :  { %6418 = vmatmul.mubr.msk.f32.vlgmr.msra.gmra.mxu0 %vm993_vm4, %v1217_v7  ;;  %6401 = vmatpush3.msra.mxu1 %v7852_v6 }
 0x881   :  { %6393 = vmatprep.mubr.msk.f32.mxu1 %vm7443_vm3, %v7441_v8  ;;  %6420 = vmatprep.mubr.msk.f32.mxu0 %vm7443_vm3, %v7441_v8 }
 0x882   :  { %6426 = vmatprep.subr.mxu1 %v7441_v8 }
 0x883   :  { %6394 = vmatmul.mubr.msk.f32.gmra.mxu1 %vm993_vm4, %v7809_v58 }
 0x884   :  { %6421 = vmatmul.mubr.msk.f32.gmra.mxu0 %vm993_vm4, %v1219_v9  ;;  %6402 = vmatprep.mubr.msk.f32.mxu1 %vm7443_vm3, %v7441_v8 }
 0x885   :  { %6423 = vmatprep.mubr.msk.f32.mxu0 %vm7443_vm3, %v7441_v8 }
 0x888   :  { %6424 = vmatmul.mubr.msk.f32.gmra.mxu0 %vm993_vm4, %v1221_v10 }
 0x889   :  { %6445 = vmatprep.mubr.msk.f32.mxu0 %vm7443_vm3, %v7441_v8 }
 0x93b   :  { %v1072_v12 = vpop.f32.mrf.mxu1 }
 0x93c   :  { %v1073_v13 = vadd.f32 %v1072_v12, %v7877_v11 }
 0x93d   :  { %v6389_v14 = vpop.f32.mrf.mxu1 }
 0x93e   :  { %v1087_v16 = vsel %vm1086_vm6, %v1073_v13, -inf }
 0x93f   :  { %1088 = vmax.xlane.f32.xlu1 %v1087_v16  ;;  %v1077_v17 = vpop.f32.mrf.mxu1 }
 0x940   :  { %v1078_v18 = vadd.f32 %v1077_v17, %v7881_v15  ;;  %v1306_v19 = vpop.f32.mrf.mxu0 }
 0x941   :  { %v6392_v20 = vpop.f32.mrf.mxu1  ;;  %v1307_v29 = vadd.f32 %v1306_v19, %v7877_v11 }
 0x942   :  { %v6419_v22 = vpop.f32.mrf.mxu0  ;;  %v1090_v23 = vsel %vm1086_vm6, %v1078_v18, -inf }
 0x943   :  { %1091 = vmax.xlane.f32.xlu0 %v1090_v23  ;;  %v1082_v24 = vpop.f32.mrf.mxu1  ;;  %v1320_v36 = vsel %vm1086_vm6, %v1307_v29, -inf }
 0x944   :  { %v1083_v25 = vadd.f32 %v1082_v24, %v7886_v21  ;;  %v1311_v26 = vpop.f32.mrf.mxu0 }
 0x945   :  { %v1312_v27 = vadd.f32 %v1311_v26, %v7881_v15  ;;  %v6395_v28 = vpop.f32.mrf.mxu1 }
 0x946   :  { %v6422_v30 = vpop.f32.mrf.mxu0  ;;  %v1094_v31 = vsel %vm1093_vm7, %v1083_v25, -inf }
 0x947   :  { %1095 = vmax.xlane.f32.xlu0 %v1094_v31  ;;  %v1323_v32 = vsel %vm1086_vm6, %v1312_v27, -inf }
 0x948   :  { %1324 = vmax.xlane.f32.xlu1 %v1323_v32  ;;  %v1316_v33 = vpop.f32.mrf.mxu0 }
 0x949   :  { %v1317_v34 = vadd.f32 %v1316_v33, %v7886_v21 }
 0x94a   :  { %v6425_v35 = vpop.f32.mrf.mxu0 }
 0x94b   :  { %1321 = vmax.xlane.f32.xlu0 %v1320_v36  ;;  %v1326_v37 = vsel %vm1093_vm7, %v1317_v34, -inf  ;;  %v1215_v36 = vld [vmem:[%s8917_s12 + $0x8] sm:$0xff] }
 0x94f   :  { %1327 = vmax.xlane.f32.xlu0 %v1326_v37 }
 0x959   :  { %1359 = vrot.lane.b32.xlu1 %v7840_v3, %s7445_s16 }
 0x9c8   :  { %v1089_v38 = vpop.xlane.xlu1 %1088 }
 0x9c9   :  { %v1097_v39 = vsub.f32 %v1073_v13, %v1089_v38 }
 0x9cb   :  { %v1100_v40 = vmul.f32 1.442695, %v1097_v39 }
 0x9cc   :  { %v1092_v41 = vpop.xlane.xlu0 %1091 }
 0x9cd   :  { %6834 = vpow2.f32 %v1100_v40  ;;  %v1098_v50 = vsub.f32 %v1078_v18, %v1092_v41  ;;  %v1214_v41 = vld [vmem:[%s8917_s12] sm:$0xff] }
 0x9cf   :  { %v1102_v56 = vmul.f32 1.442695, %v1098_v50 }
 0x9d0   :  { %v1096_v42 = vpop.xlane.xlu0 %1095 }
 0x9d1   :  { %v1099_v43 = vsub.f32 %v1083_v25, %v1096_v42  ;;  %v1325_v44 = vpop.xlane.xlu1 %1324  ;;  %v5674_v42 = vld [vmem:[%s8917_s12 + $0x18] sm:$0xff] }
 0x9d2   :  { %v1330_v49 = vsub.f32 %v1312_v27, %v1325_v44  ;;  %6442 = vmatpush3.msra.mxu0 %v5674_v42 }
 0x9d3   :  { %v1104_v51 = vmul.f32 1.442695, %v1099_v43  ;;  %6443 = vmatprep.subr.mxu0 %v7441_v8  ;;  %v5673_v43 = vld [vmem:[%s8917_s12 + $0x10] sm:$0xff] }
 0x9d4   :  { %v1334_v52 = vmul.f32 1.442695, %v1330_v49  ;;  %v1322_v53 = vpop.xlane.xlu0 %1321  ;;  %6444 = vmatpush3.msra.mxu0 %v5673_v43 }
 0x9d5   :  { %v1329_v55 = vsub.f32 %v1307_v29, %v1322_v53  ;;  %v1360_v18 = vpop.permute.xlu1 %1359  ;;  %6467 = vmatprep.subr.mxu0 %v7441_v8 }
 0x9d6   :  { %6836 = vpow2.f32 %v1334_v52 }
 0x9d7   :  { %v1332_v59 = vmul.f32 1.442695, %v1329_v55  ;;  %6838 = vpow2.f32 %v1104_v51 }
 0x9d8   :  { %v1328_v60 = vpop.xlane.xlu0 %1327 }
 0x9d9   :  { %6840 = vpow2.f32 %v1332_v59  ;;  %v1331_v61 = vsub.f32 %v1317_v34, %v1328_v60 }
 0x9da   :  { %v6835_v62 = vpop.eup %6834  ;;  %6842 = vpow2.f32 %v1102_v56 }
 0x9db   :  { %v1336_v0 = vmul.f32 1.442695, %v1331_v61  ;;  %v1106_v1 = vsel %vm1086_vm6, %v6835_v62, 0.0 }
 0x9dc   :  { %1107 = vadd.xlane.f32.xlu1 %v1106_v1 }
 0x9dd   :  { %6844 = vpow2.f32 %v1336_v0 }
 0x9e3   :  { %v7900_v2 = vpop.eup %6836 }
 0x9e4   :  { %v1341_v4 = vsel %vm1086_vm6, %v7900_v2, 0.0  ;;  %v6839_v7 = vpop.eup %6838 }
 0x9e5   :  { %1342 = vadd.xlane.f32.xlu1 %v1341_v4  ;;  %v1112_v13 = vsel %vm1093_vm7, %v6839_v7, 0.0 }
 0x9e6   :  { %v6841_v9 = vpop.eup %6840 }
 0x9e7   :  { %v1338_v10 = vsel %vm1086_vm6, %v6841_v9, 0.0  ;;  %v6843_v12 = vpop.eup %6842 }
 0x9e8   :  { %1339 = vadd.xlane.f32.xlu0 %v1338_v10  ;;  %v1109_v14 = vsel %vm1086_vm6, %v6843_v12, 0.0 }
 0x9e9   :  { %1113 = vadd.xlane.f32.xlu1 %v1112_v13 }
 0x9ea   :  { %v6845_v16 = vpop.eup %6844 }
 0x9eb   :  { %v1344_v17 = vsel %vm1093_vm7, %v6845_v16, 0.0 }
 0x9ec   :  { %1110 = vadd.xlane.f32.xlu0 %v1109_v14 }
 0x9f0   :  { %1345 = vadd.xlane.f32.xlu0 %v1344_v17 }
 0x9fa   :  { %1355 = vrot.lane.b32.xlu1 %v7852_v6, %s7445_s16 }
 0x9fe   :  { %1645 = vrot.lane.b32.xlu1 %v7809_v58, %s7434_s21 }
 0xa02   :  { %1643 = vrot.lane.b32.xlu1 %v7799_v54, %s7434_s21 }
 0xa06   :  { %1635 = vrot.lane.b32.xlu1 %v7807_v57, %s7446_s19  ;;  %1357 = vrot.lane.b32.xlu0 %v7844_v5, %s7445_s16 }
 0xa0a   :  { %1639 = vrot.lane.b32.xlu1 %v7809_v58, %s7446_s19  ;;  %1641 = vrot.lane.b32.xlu0 %v7807_v57, %s7434_s21 }
 0xa0e   :  { %1637 = vrot.lane.b32.xlu0 %v7799_v54, %s7446_s19 }
 0xa65   :  { %v1108_v19 = vpop.xlane.xlu1 %1107 }
 0xa66   :  { %6846 = vrcp.f32 %v1108_v19 }
 0xa6e   :  { %v1343_v20 = vpop.xlane.xlu1 %1342 }
 0xa71   :  { %v1340_v22 = vpop.xlane.xlu0 %1339 }
 0xa72   :  { %v1114_v25 = vpop.xlane.xlu1 %1113 }
 0xa73   :  { %v6847_v23 = vpop.eup %6846 }
 0xa74   :  { %v1118_v24 = vmul.f32 %v6847_v23, %v6835_v62 }
 0xa75   :  { %v1111_v26 = vpop.xlane.xlu0 %1110 }
 0xa76   :  { %6848 = vrcp.f32 %v1111_v26  ;;  %6403 = vmatmul.mubr.msk.f32.vlgmr.msra.gmra.mxu1 %vm1086_vm6, %v1118_v24  ;;  %v1356_v29 = vpop.permute.xlu1 %1355 }
 0xa77   :  { %6427 = vmatpush3.msk.msra.mxu1 %vm1130_vm5, %v1360_v18  ;;  %6405 = vmatprep.mubr.msk.f32.mxu1 %vm7443_vm3, %v7441_v8  ;;  %6850 = vrcp.f32 %v1114_v25 }
 0xa78   :  { %6428 = vmatprep.subr.mxu1 %v7441_v8  ;;  %6852 = vrcp.f32 %v1340_v22 }
 0xa79   :  { %v1346_v27 = vpop.xlane.xlu0 %1345  ;;  %6854 = vrcp.f32 %v1343_v20 }
 0xa7a   :  { %6856 = vrcp.f32 %v1346_v27  ;;  %v1646_v55 = vpop.permute.xlu1 %1645 }
 0xa7d   :  { %v1358_v28 = vpop.permute.xlu0 %1357 }
 0xa7e   :  { %6429 = vmatpush3.msra.mxu1 %v1358_v28  ;;  %v1644_v61 = vpop.permute.xlu1 %1643 }
 0xa7f   :  { %6430 = vmatprep.subr.mxu1 %v7441_v8 }
 0xa80   :  { %6431 = vmatpush3.msra.mxu1 %v1356_v29 }
 0xa81   :  { %6454 = vmatprep.subr.mxu1 %v7441_v8  ;;  %v1642_v1 = vpop.permute.xlu0 %1641 }
 0xa82   :  { %v1636_v4 = vpop.permute.xlu1 %1635 }
 0xa83   :  { %v6849_v30 = vpop.eup %6848 }
 0xa84   :  { %v1119_v31 = vmul.f32 %v6849_v30, %v6843_v12  ;;  %v6851_v32 = vpop.eup %6850 }
 0xa85   :  { %v1120_v33 = vmul.f32 %v6851_v32, %v6839_v7  ;;  %v6853_v34 = vpop.eup %6852  ;;  %v1638_v7 = vpop.permute.xlu0 %1637 }
 0xa86   :  { %6406 = vmatmul.mubr.msk.f32.gmra.mxu1 %vm1086_vm6, %v1119_v31  ;;  %v1350_v35 = vmul.f32 %v6853_v34, %v6841_v9  ;;  %v6855_v37 = vpop.eup %6854  ;;  %v1640_v9 = vpop.permute.xlu1 %1639 }
 0xa87   :  { %6408 = vmatprep.mubr.msk.f32.mxu1 %vm7443_vm3, %v7441_v8  ;;  %v1351_v38 = vmul.f32 %v6855_v37, %v7900_v2  ;;  %v6857_v39 = vpop.eup %6856 }
 0xa88   :  { %v1352_v40 = vmul.f32 %v6857_v39, %v6845_v16 }
 0xa8a   :  { %6409 = vmatmul.mubr.msk.f32.gmra.mxu1 %vm1086_vm6, %v1120_v33 }
 0xa8b   :  { %6432 = vmatprep.mubr.msk.f32.mxu1 %vm7443_vm3, %v7441_v8 }
 0xa8e   :  { %6433 = vmatmul.mubr.msk.f32.vlgmr.msra.gmra.mxu1 %vm1086_vm6, %v1350_v35 }
 0xa8f   :  { %6435 = vmatprep.mubr.msk.f32.mxu1 %vm7443_vm3, %v7441_v8  ;;  %6455 = vmatpush3.msra.mxu1 %v1215_v36 }
 0xa90   :  { %6456 = vmatprep.subr.mxu1 %v7441_v8 }
 0xa91   :  { %6457 = vmatpush3.msra.mxu1 %v1214_v41 }
 0xa92   :  { %6436 = vmatmul.mubr.msk.f32.gmra.mxu1 %vm1086_vm6, %v1351_v38  ;;  %6482 = vmatprep.subr.mxu1 %v7441_v8 }
 0xa93   :  { %6438 = vmatprep.mubr.msk.f32.mxu1 %vm7443_vm3, %v7441_v8 }
 0xa96   :  { %6439 = vmatmul.mubr.msk.f32.gmra.mxu1 %vm1086_vm6, %v1352_v40 }
 0xa97   :  { %6458 = vmatprep.mubr.msk.f32.mxu1 %vm7443_vm3, %v7441_v8 }
 0xb36   :  { %v1200_v44 = vpop.f32.mrf.mxu1 }
 0xb37   :  { %6459 = vmatmul.mubr.msk.f32.vlgmr.msra.gmra.mxu1 %vm993_vm4, %v1200_v44 }
 0xb38   :  { %v6404_v49 = vpop.f32.mrf.mxu1  ;;  %6461 = vmatprep.mubr.msk.f32.mxu1 %vm7443_vm3, %v7441_v8 }
 0xb46   :  { %v1205_v50 = vpop.f32.mrf.mxu1 }
 0xb47   :  { %6462 = vmatmul.mubr.msk.f32.gmra.mxu1 %vm993_vm4, %v1205_v50 }
 0xb48   :  { %v6407_v51 = vpop.f32.mrf.mxu1  ;;  %6464 = vmatprep.mubr.msk.f32.mxu1 %vm7443_vm3, %v7441_v8 }
 0xb4a   :  { %v1210_v52 = vpop.f32.mrf.mxu1 }
 0xb4b   :  { %6465 = vmatmul.mubr.msk.f32.gmra.mxu1 %vm993_vm4, %v1210_v52 }
 0xb4c   :  { %v6410_v53 = vpop.f32.mrf.mxu1  ;;  %6488 = vmatprep.mubr.msk.f32.mxu1 %vm7443_vm3, %v7441_v8 }
 0xb4e   :  { %v1440_v56 = vpop.f32.mrf.mxu1 }
 0xb4f   :  { %6446 = vmatmul.mubr.msk.f32.vlgmr.msra.gmra.mxu0 %vm993_vm4, %v1440_v56 }
 0xb50   :  { %6468 = vmatpush3.xpose.msk.msra.mxu0 %vm993_vm4, %v1646_v55  ;;  %v6434_v59 = vpop.f32.mrf.mxu1  ;;  %6448 = vmatprep.mubr.msk.f32.mxu0 %vm7443_vm3, %v7441_v8 }
 0xb51   :  { %6469 = vmatprep.subr.mxu0 %v7441_v8 }
 0xb52   :  { %v1445_v60 = vpop.f32.mrf.mxu1 }
 0xb53   :  { %6449 = vmatmul.mubr.msk.f32.gmra.mxu0 %vm993_vm4, %v1445_v60 }
 0xb54   :  { %6470 = vmatpush3.xpose.msk.msra.mxu0 %vm993_vm4, %v1644_v61  ;;  %v6437_v62 = vpop.f32.mrf.mxu1  ;;  %6451 = vmatprep.mubr.msk.f32.mxu0 %vm7443_vm3, %v7441_v8 }
 0xb55   :  { %6471 = vmatprep.subr.mxu0 %v7441_v8 }
 0xb56   :  { %v1450_v0 = vpop.f32.mrf.mxu1 }
 0xb57   :  { %6452 = vmatmul.mubr.msk.f32.gmra.mxu0 %vm993_vm4, %v1450_v0 }
 0xb58   :  { %6472 = vmatpush3.xpose.msk.msra.mxu0 %vm993_vm4, %v1642_v1  ;;  %v6440_v2 = vpop.f32.mrf.mxu1  ;;  %6473 = vmatprep.mubr.msk.f32.mxu0 %vm7443_vm3, %v7441_v8 }
 0xb59   :  { %6497 = vmatprep.subr.mxu0 %v7441_v8  ;;  %v5692_v2 = vld [vmem:[%s8917_s12 + $0x28] sm:$0xff] }
 0xb5b   :  { %6474 = vmatmul.mubr.msk.f32.vlgmr.msra.gmra.mxu0 %vm993_vm4, %v1636_v4 }
 0xb5c   :  { %6476 = vmatprep.mubr.msk.f32.mxu0 %vm7443_vm3, %v7441_v8  ;;  %6498 = vmatpush3.msra.mxu0 %v5692_v2 }
 0xb5d   :  { %6499 = vmatprep.subr.mxu0 %v7441_v8 }
 0xb5f   :  { %6477 = vmatmul.mubr.msk.f32.gmra.mxu0 %vm993_vm4, %v1638_v7 }
 0xb60   :  { %6479 = vmatprep.mubr.msk.f32.mxu0 %vm7443_vm3, %v7441_v8 }
 0xb63   :  { %6480 = vmatmul.mubr.msk.f32.gmra.mxu0 %vm993_vm4, %v1640_v9 }
 0xb64   :  { %6501 = vmatprep.mubr.msk.f32.mxu0 %vm7443_vm3, %v7441_v8 }
 0xbf7   :  { %v1621_v10 = vpop.f32.mrf.mxu1 }
 0xbf9   :  { %v6460_v12 = vpop.f32.mrf.mxu1 }
 0xc07   :  { %v1626_v13 = vpop.f32.mrf.mxu1 }
 0xc09   :  { %v6463_v14 = vpop.f32.mrf.mxu1 }
 0xc0b   :  { %v1631_v16 = vpop.f32.mrf.mxu1 }
 0xc0d   :  { %v6466_v17 = vpop.f32.mrf.mxu1 }
 0xc0f   :  { %v1532_v18 = vpop.f32.mrf.mxu0 }
 0xc10   :  { %v7988_v19 = vadd.f32 %v1621_v10, %v1532_v18 }
 0xc11   :  { %v6447_v20 = vpop.f32.mrf.mxu0 }
 0xc13   :  { %v1537_v22 = vpop.f32.mrf.mxu0 }
 0xc14   :  { %v7990_v23 = vadd.f32 %v1626_v13, %v1537_v22 }
 0xc15   :  { %v6450_v24 = vpop.f32.mrf.mxu0 }
 0xc16   :  { %v5691_v24 = vld [vmem:[%s8917_s12 + $0x20] sm:$0xff] }
 0xc17   :  { %v1542_v25 = vpop.f32.mrf.mxu0  ;;  %6500 = vmatpush3.msra.mxu0 %v5691_v24 }
 0xc18   :  { %v7992_v26 = vadd.f32 %v1631_v16, %v1542_v25  ;;  %6525 = vmatprep.subr.mxu0 %v7441_v8 }
 0xc19   :  { %v6453_v27 = vpop.f32.mrf.mxu0 }
 0xc1b   :  { %v1725_v28 = vpop.f32.mrf.mxu0 }
 0xc1c   :  { %v1726_v29 = vadd.f32 %v1725_v28, %v7877_v11 }
 0xc1d   :  { %v6475_v30 = vpop.f32.mrf.mxu0 }
 0xc1e   :  { %v1739_v31 = vsel %vm1086_vm6, %v1726_v29, -inf }
 0xc1f   :  { %1740 = vmax.xlane.f32.xlu0 %v1739_v31  ;;  %v1730_v32 = vpop.f32.mrf.mxu0 }
 0xc20   :  { %v1731_v33 = vadd.f32 %v1730_v32, %v7881_v15 }
 0xc21   :  { %v6478_v34 = vpop.f32.mrf.mxu0 }
 0xc22   :  { %v1742_v35 = vsel %vm1086_vm6, %v1731_v33, -inf }
 0xc23   :  { %1743 = vmax.xlane.f32.xlu1 %v1742_v35  ;;  %v1735_v36 = vpop.f32.mrf.mxu0 }
 0xc24   :  { %v1736_v37 = vadd.f32 %v1735_v36, %v7886_v21 }
 0xc25   :  { %v6481_v38 = vpop.f32.mrf.mxu0 }
 0xc26   :  { %v1745_v39 = vsel %vm1093_vm7, %v1736_v37, -inf }
 0xc27   :  { %1746 = vmax.xlane.f32.xlu0 %v1745_v39 }
 0xc34   :  { %1774 = vrot.lane.b32.xlu1 %v7844_v5, %s7446_s19 }
 0xc38   :  { %1772 = vrot.lane.b32.xlu1 %v7852_v6, %s7446_s19 }
 0xc3c   :  { %1976 = vrot.lane.b32.xlu1 %v7809_v58, %s7423_s13 }
 0xc3d   :  { %1776 = vrot.lane.b32.xlu0 %v7840_v3, %s7446_s19 }
 0xc40   :  { %1972 = vrot.lane.b32.xlu1 %v7807_v57, %s7423_s13 }
 0xca8   :  { %v1741_v40 = vpop.xlane.xlu0 %1740 }
 0xca9   :  { %v1748_v41 = vsub.f32 %v1726_v29, %v1741_v40 }
 0xcab   :  { %v1751_v42 = vmul.f32 1.442695, %v1748_v41 }
 0xcac   :  { %v1744_v43 = vpop.xlane.xlu1 %1743 }
 0xcad   :  { %6858 = vpow2.f32 %v1751_v42  ;;  %v1749_v44 = vsub.f32 %v1731_v33, %v1744_v43 }
 0xcaf   :  { %v1753_v49 = vmul.f32 1.442695, %v1749_v44 }
 0xcb0   :  { %v1747_v50 = vpop.xlane.xlu0 %1746  ;;  %v1775_v52 = vpop.permute.xlu1 %1774 }
 0xcb1   :  { %6860 = vpow2.f32 %v1753_v49  ;;  %v1750_v51 = vsub.f32 %v1736_v37, %v1747_v50 }
 0xcb3   :  { %v1755_v53 = vmul.f32 1.442695, %v1750_v51 }
 0xcb4   :  { %v1777_v55 = vpop.permute.xlu0 %1776  ;;  %v1773_v56 = vpop.permute.xlu1 %1772 }
 0xcb5   :  { %6862 = vpow2.f32 %v1755_v53  ;;  %6483 = vmatpush3.msk.msra.mxu1 %vm1130_vm5, %v1777_v55 }
 0xcb6   :  { %6484 = vmatprep.subr.mxu1 %v7441_v8 }
 0xcb7   :  { %6485 = vmatpush3.msra.mxu1 %v1775_v52 }
 0xcb8   :  { %6486 = vmatprep.subr.mxu1 %v7441_v8  ;;  %v1977_v4 = vpop.permute.xlu1 %1976 }
 0xcb9   :  { %6487 = vmatpush3.msra.mxu1 %v1773_v56 }
 0xcba   :  { %v6859_v59 = vpop.eup %6858  ;;  %6510 = vmatprep.subr.mxu1 %v7441_v8 }
 0xcbb   :  { %v1757_v60 = vsel %vm1086_vm6, %v6859_v59, 0.0 }
 0xcbc   :  { %1758 = vadd.xlane.f32.xlu0 %v1757_v60  ;;  %v1973_v9 = vpop.permute.xlu1 %1972 }
 0xcbe   :  { %v6861_v61 = vpop.eup %6860 }
 0xcbf   :  { %v1760_v62 = vsel %vm1086_vm6, %v6861_v61, 0.0 }
 0xcc0   :  { %1761 = vadd.xlane.f32.xlu0 %v1760_v62 }
 0xcc2   :  { %v6863_v0 = vpop.eup %6862 }
 0xcc3   :  { %v1763_v1 = vsel %vm1093_vm7, %v6863_v0, 0.0 }
 0xcc4   :  { %1764 = vadd.xlane.f32.xlu1 %v1763_v1 }
 0xcd5   :  { %1968 = vrot.lane.b32.xlu1 %v7799_v54, %s7447_s22 }
 0xcd6   :  { %1974 = vrot.lane.b32.xlu0 %v7799_v54, %s7423_s13 }
 0xcda   :  { %1966 = vrot.lane.b32.xlu0 %v7807_v57, %s7447_s22 }
 0xcde   :  { %1970 = vrot.lane.b32.xlu0 %v7809_v58, %s7447_s22 }
 0xd45   :  { %v1759_v7 = vpop.xlane.xlu0 %1758 }
 0xd46   :  { %6864 = vrcp.f32 %v1759_v7 }
 0xd49   :  { %v1762_v10 = vpop.xlane.xlu0 %1761 }
 0xd4a   :  { %6866 = vrcp.f32 %v1762_v10 }
 0xd4d   :  { %v1765_v12 = vpop.xlane.xlu1 %1764  ;;  %v1975_v14 = vpop.permute.xlu0 %1974 }
 0xd4e   :  { %6868 = vrcp.f32 %v1765_v12 }
 0xd51   :  { %v1967_v18 = vpop.permute.xlu0 %1966  ;;  %v1969_v20 = vpop.permute.xlu1 %1968 }
 0xd53   :  { %v6865_v13 = vpop.eup %6864 }
 0xd54   :  { %v1769_v54 = vmul.f32 %v6865_v13, %v6859_v59 }
 0xd55   :  { %v1971_v22 = vpop.permute.xlu0 %1970 }
 0xd56   :  { %6489 = vmatmul.mubr.msk.f32.vlgmr.msra.gmra.mxu1 %vm1086_vm6, %v1769_v54  ;;  %v5707_v54 = vld [vmem:[%s8917_s12 + $0x38] sm:$0xff] }
 0xd57   :  { %v6867_v57 = vpop.eup %6866  ;;  %6511 = vmatpush3.xpose.msk.msra.mxu1 %vm993_vm4, %v1977_v4  ;;  %6491 = vmatprep.mubr.msk.f32.mxu1 %vm7443_vm3, %v7441_v8 }
 0xd58   :  { %6512 = vmatprep.subr.mxu1 %v7441_v8  ;;  %v1770_v58 = vmul.f32 %v6867_v57, %v6861_v61  ;;  %v5706_v57 = vld [vmem:[%s8917_s12 + $0x30] sm:$0xff] }
 0xd5a   :  { %6492 = vmatmul.mubr.msk.f32.gmra.mxu1 %vm1086_vm6, %v1770_v58 }
 0xd5b   :  { %v6869_v16 = vpop.eup %6868  ;;  %6513 = vmatpush3.xpose.msk.msra.mxu1 %vm993_vm4, %v1975_v14  ;;  %6494 = vmatprep.mubr.msk.f32.mxu1 %vm7443_vm3, %v7441_v8 }
 0xd5c   :  { %6514 = vmatprep.subr.mxu1 %v7441_v8  ;;  %v1771_v17 = vmul.f32 %v6869_v16, %v6863_v0 }
 0xd5e   :  { %6495 = vmatmul.mubr.msk.f32.gmra.mxu1 %vm1086_vm6, %v1771_v17 }
 0xd5f   :  { %6515 = vmatpush3.xpose.msk.msra.mxu1 %vm993_vm4, %v1973_v9  ;;  %6516 = vmatprep.mubr.msk.f32.mxu1 %vm7443_vm3, %v7441_v8 }
 0xd60   :  { %6540 = vmatprep.subr.mxu1 %v7441_v8 }
 0xd62   :  { %6517 = vmatmul.mubr.msk.f32.vlgmr.msra.gmra.mxu1 %vm993_vm4, %v1967_v18 }
 0xd63   :  { %6519 = vmatprep.mubr.msk.f32.mxu1 %vm7443_vm3, %v7441_v8  ;;  %6541 = vmatpush3.msra.mxu1 %v5707_v54  ;;  %v2376_v54 = vld [vmem:[%s8918_s3 + $0x38] sm:$0xff] }
 0xd64   :  { %6542 = vmatprep.subr.mxu1 %v7441_v8 }
 0xd65   :  { %6543 = vmatpush3.msra.mxu1 %v5706_v57  ;;  %v2375_v57 = vld [vmem:[%s8918_s3 + $0x30] sm:$0xff] }
 0xd66   :  { %6520 = vmatmul.mubr.msk.f32.gmra.mxu1 %vm993_vm4, %v1969_v20 }
 0xd67   :  { %6522 = vmatprep.mubr.msk.f32.mxu1 %vm7443_vm3, %v7441_v8 }
 0xd6a   :  { %6523 = vmatmul.mubr.msk.f32.gmra.mxu1 %vm993_vm4, %v1971_v22 }
 0xd6b   :  { %6544 = vmatprep.mubr.msk.f32.mxu1 %vm7443_vm3, %v7441_v8 }
 0xe16   :  { %v1857_v25 = vpop.f32.mrf.mxu1 }
 0xe17   :  { %6502 = vmatmul.mubr.msk.f32.vlgmr.msra.gmra.mxu0 %vm993_vm4, %v1857_v25 }
 0xe18   :  { %v6490_v27 = vpop.f32.mrf.mxu1  ;;  %6504 = vmatprep.mubr.msk.f32.mxu0 %vm7443_vm3, %v7441_v8 }
 0xe1a   :  { %v1862_v28 = vpop.f32.mrf.mxu1 }
 0xe1b   :  { %6505 = vmatmul.mubr.msk.f32.gmra.mxu0 %vm993_vm4, %v1862_v28 }
 0xe1c   :  { %v6493_v29 = vpop.f32.mrf.mxu1  ;;  %6507 = vmatprep.mubr.msk.f32.mxu0 %vm7443_vm3, %v7441_v8 }
 0xe1e   :  { %v1867_v30 = vpop.f32.mrf.mxu1 }
 0xe1f   :  { %6508 = vmatmul.mubr.msk.f32.gmra.mxu0 %vm993_vm4, %v1867_v30 }
 0xe20   :  { %v6496_v31 = vpop.f32.mrf.mxu1  ;;  %6531 = vmatprep.mubr.msk.f32.mxu0 %vm7443_vm3, %v7441_v8 }
 0xe22   :  { %v2056_v32 = vpop.f32.mrf.mxu1 }
 0xe23   :  { %v2057_v33 = vadd.f32 %v2056_v32, %v7877_v11  ;;  %v5711_v32 = vld [vmem:[#allocation14] ss:$0 sm:$0xff] }
 0xe24   :  { %v6518_v34 = vpop.f32.mrf.mxu1 }
 0xe25   :  { %v2070_v35 = vsel %vm1086_vm6, %v2057_v33, -inf }
 0xe26   :  { %2071 = vmax.xlane.f32.xlu1 %v2070_v35  ;;  %v2061_v36 = vpop.f32.mrf.mxu1 }
 0xe27   :  { %v2062_v37 = vadd.f32 %v2061_v36, %v7881_v15 }
 0xe28   :  { %v6521_v38 = vpop.f32.mrf.mxu1 }
 0xe29   :  { %v2073_v39 = vsel %vm1086_vm6, %v2062_v37, -inf }
 0xe2a   :  { %2074 = vmax.xlane.f32.xlu0 %v2073_v39  ;;  %v2066_v40 = vpop.f32.mrf.mxu1 }
 0xe2b   :  { %v2067_v41 = vadd.f32 %v2066_v40, %v7886_v21 }
 0xe2c   :  { %v6524_v42 = vpop.f32.mrf.mxu1 }
 0xe2d   :  { %v2076_v43 = vsel %vm1093_vm7, %v2067_v41, -inf }
 0xe2e   :  { %2077 = vmax.xlane.f32.xlu0 %v2076_v43 }
 0xe37   :  { %2107 = vrot.lane.b32.xlu1 %v7840_v3, %s7447_s22 }
 0xeaf   :  { %v2072_v11 = vpop.xlane.xlu1 %2071 }
 0xeb0   :  { %v2079_v44 = vsub.f32 %v2057_v33, %v2072_v11 }
 0xeb2   :  { %v2082_v49 = vmul.f32 1.442695, %v2079_v44 }
 0xeb3   :  { %v2075_v50 = vpop.xlane.xlu0 %2074  ;;  %v2108_v51 = vpop.permute.xlu1 %2107 }
 0xeb4   :  { %6870 = vpow2.f32 %v2082_v49  ;;  %v2080_v15 = vsub.f32 %v2062_v37, %v2075_v50  ;;  %6526 = vmatpush3.msk.msra.mxu0 %vm1130_vm5, %v2108_v51 }
 0xeb5   :  { %6527 = vmatprep.subr.mxu0 %v7441_v8 }
 0xeb6   :  { %v2084_v52 = vmul.f32 1.442695, %v2080_v15 }
 0xeb7   :  { %v2078_v21 = vpop.xlane.xlu0 %2077 }
 0xeb8   :  { %6872 = vpow2.f32 %v2084_v52  ;;  %v2081_v53 = vsub.f32 %v2067_v41, %v2078_v21 }
 0xeba   :  { %v2086_v55 = vmul.f32 1.442695, %v2081_v53 }
 0xebc   :  { %6874 = vpow2.f32 %v2086_v55 }
 0xec1   :  { %v6871_v56 = vpop.eup %6870 }
 0xec2   :  { %v2088_v3 = vsel %vm1086_vm6, %v6871_v56, 0.0 }
 0xec3   :  { %2089 = vadd.xlane.f32.xlu0 %v2088_v3 }
 0xec5   :  { %v6873_v59 = vpop.eup %6872 }
 0xec6   :  { %v2091_v60 = vsel %vm1086_vm6, %v6873_v59, 0.0 }
 0xec7   :  { %2092 = vadd.xlane.f32.xlu1 %v2091_v60 }
 0xec9   :  { %v6875_v61 = vpop.eup %6874 }
 0xeca   :  { %v2094_v62 = vsel %vm1093_vm7, %v6875_v61, 0.0 }
 0xecb   :  { %2095 = vadd.xlane.f32.xlu0 %v2094_v62 }
 0xed7   :  { %v1949_v0 = vpop.f32.mrf.mxu0 }
 0xed8   :  { %v1963_v1 = vadd.f32 %v1949_v0, %v7988_v19  ;;  %2103 = vrot.lane.b32.xlu1 %v7852_v6, %s7447_s22 }
 0xed9   :  { %v6503_v2 = vpop.f32.mrf.mxu0 }
 0xeda   :  { %v2383_v2 = vld [vmem:[%s8918_s3 + $0x70] sm:$0xff] }
 0xedb   :  { %v1954_v4 = vpop.f32.mrf.mxu0 }
 0xedc   :  { %v1964_v7 = vadd.f32 %v1954_v4, %v7990_v23  ;;  %v2382_v4 = vld [vmem:[%s8918_s3 + $0x68] sm:$0xff] }
 0xedd   :  { %v6506_v9 = vpop.f32.mrf.mxu0 }
 0xede   :  { %v2380_v9 = vld [vmem:[%s8918_s3 + $0x58] sm:$0xff] }
 0xedf   :  { %v1959_v10 = vpop.f32.mrf.mxu0 }
 0xee0   :  { %v1965_v12 = vadd.f32 %v1959_v10, %v7992_v26  ;;  %v2379_v10 = vld [vmem:[%s8918_s3 + $0x50] sm:$0xff] }
 0xee1   :  { %v6509_v13 = vpop.f32.mrf.mxu0  ;;  %2105 = vrot.lane.b32.xlu0 %v7844_v5, %s7447_s22 }
 0xee2   :  { %v2377_v13 = vld [vmem:[%s8918_s3 + $0x40] sm:$0xff] }
 0xf4c   :  { %v2090_v19 = vpop.xlane.xlu0 %2089 }
 0xf4d   :  { %6876 = vrcp.f32 %v2090_v19  ;;  %v2374_v19 = vld [vmem:[%s8918_s3 + $0x28] sm:$0xff] }
 0xf50   :  { %v2093_v6 = vpop.xlane.xlu1 %2092 }
 0xf51   :  { %6878 = vrcp.f32 %v2093_v6  ;;  %v2373_v6 = vld [vmem:[%s8918_s3 + $0x20] sm:$0xff] }
 0xf54   :  { %v2096_v58 = vpop.xlane.xlu0 %2095  ;;  %v2104_v26 = vpop.permute.xlu1 %2103 }
 0xf55   :  { %6880 = vrcp.f32 %v2096_v58  ;;  %v2372_v58 = vld [vmem:[%s8918_s3 + $0x18] sm:$0xff] }
 0xf58   :  { %v2106_v23 = vpop.permute.xlu0 %2105 }
 0xf59   :  { %6528 = vmatpush3.msra.mxu0 %v2106_v23  ;;  %v2371_v23 = vld [vmem:[%s8918_s3 + $0x10] sm:$0xff] }
 0xf5a   :  { %v6877_v14 = vpop.eup %6876  ;;  %6529 = vmatprep.subr.mxu0 %v7441_v8 }
 0xf5b   :  { %v2100_v16 = vmul.f32 %v6877_v14, %v6871_v56  ;;  %6530 = vmatpush3.msra.mxu0 %v2104_v26  ;;  %v2370_v14 = vld [vmem:[%s8918_s3 + $0x8] sm:$0xff]  ;;  %v2369_v26 = vld [vmem:[%s8918_s3] sm:$0xff] }
 0xf5d   :  { %6532 = vmatmul.mubr.msk.f32.vlgmr.msra.gmra.mxu0 %vm1086_vm6, %v2100_v16 }
 0xf5e   :  { %v6879_v5 = vpop.eup %6878  ;;  %6534 = vmatprep.mubr.msk.f32.mxu0 %vm7443_vm3, %v7441_v8 }
 0xf5f   :  { %v2101_v17 = vmul.f32 %v6879_v5, %v6873_v59 }
 0xf61   :  { %6535 = vmatmul.mubr.msk.f32.gmra.mxu0 %vm1086_vm6, %v2101_v17 }
 0xf62   :  { %v6881_v18 = vpop.eup %6880  ;;  %6537 = vmatprep.mubr.msk.f32.mxu0 %vm7443_vm3, %v7441_v8 }
 0xf63   :  { %v2102_v20 = vmul.f32 %v6881_v18, %v6875_v61 }
 0xf65   :  { %6538 = vmatmul.mubr.msk.f32.gmra.mxu0 %vm1086_vm6, %v2102_v20 }
 0xf66   :  { %2470 = vmatprep.mubr.f32.mxu0 %v7441_v8 }
0x101d   :  { %v2188_v22 = vpop.f32.mrf.mxu0 }
0x101e   :  { %6545 = vmatmul.mubr.msk.f32.vlgmr.msra.gmra.mxu1 %vm993_vm4, %v2188_v22 }
0x101f   :  { %v6533_v24 = vpop.f32.mrf.mxu0  ;;  %6547 = vmatprep.mubr.msk.f32.mxu1 %vm7443_vm3, %v7441_v8 }
0x1021   :  { %v2193_v25 = vpop.f32.mrf.mxu0 }
0x1022   :  { %6548 = vmatmul.mubr.msk.f32.gmra.mxu1 %vm993_vm4, %v2193_v25 }
0x1023   :  { %v6536_v27 = vpop.f32.mrf.mxu0  ;;  %6550 = vmatprep.mubr.msk.f32.mxu1 %vm7443_vm3, %v7441_v8 }
0x1025   :  { %v2198_v28 = vpop.f32.mrf.mxu0 }
0x1026   :  { %6551 = vmatmul.mubr.msk.f32.gmra.mxu1 %vm993_vm4, %v2198_v28 }
0x1027   :  { %v6539_v29 = vpop.f32.mrf.mxu0 }
0x1028   :  { %v5712_v29 = vld [vmem:[#allocation16] ss:$0 sm:$0xff] }
0x10de   :  { %v2280_v30 = vpop.f32.mrf.mxu1 }
0x10df   :  { %v2294_v31 = vadd.f32 %v2280_v30, %v1963_v1  ;;  %v2384_v1 = vld [vmem:[%s8918_s3 + $0x78] sm:$0xff] }
0x10e0   :  { %v6546_v33 = vpop.f32.mrf.mxu1  ;;  %2422 = vmatprep.subr.mxu0 %v2384_v1  ;;  %v2549_v1 = vld [vmem:[%s8919_s23 + $0x30] sm:$0xff] }
0x10e1   :  { %v2297_v34 = vadd.f32 %v2294_v31, %v7739_v46  ;;  %2423 = vmatpush1.msra.mxu0 %v2383_v2  ;;  %v5713_v31 = vld [vmem:[#allocation17] ss:$0 sm:$0xff]  ;;  %v2564_v2 = vld [vmem:[%s8919_s23 + $0xa8] sm:$0xff] }
0x10e2   :  { %v2285_v35 = vpop.f32.mrf.mxu1  ;;  %2424 = vmatprep.subr.mxu0 %v2382_v4  ;;  %v2548_v4 = vld [vmem:[%s8919_s23 + $0x28] sm:$0xff] }
0x10e3   :  { %v8102_v36 = vadd.f32 %v5711_v32, %v2297_v34  ;;  %v2295_v37 = vadd.f32 %v2285_v35, %v1964_v7  ;;  %v2381_v7 = vld [vmem:[%s8918_s3 + $0x60] sm:$0xff] }
0x10e4   :  { %v6549_v38 = vpop.f32.mrf.mxu1  ;;  %2425 = vmatpush1.msra.mxu0 %v2381_v7  ;;  %v2563_v7 = vld [vmem:[%s8919_s23 + $0xa0] sm:$0xff] }
0x10e5   :  { %v2298_v39 = vadd.f32 %v2295_v37, %v7741_v47  ;;  %v2312_v40 = vsel %vm357_vm0, %v8102_v36, 0.0  ;;  %2426 = vmatprep.subr.mxu0 %v2380_v9  ;;  %v2547_v9 = vld [vmem:[%s8919_s23 + $0x20] sm:$0xff] }
0x10e6   :  { %2313 = vadd.xlane.f32.xlu1 %v2312_v40  ;;  %v2290_v41 = vpop.f32.mrf.mxu1  ;;  %2427 = vmatpush1.msra.mxu0 %v2379_v10  ;;  %v2562_v10 = vld [vmem:[%s8919_s23 + $0x98] sm:$0xff] }
0x10e7   :  { %v8107_v42 = vadd.f32 %v5711_v32, %v2298_v39  ;;  %v2296_v43 = vadd.f32 %v2290_v41, %v1965_v12  ;;  %v2378_v12 = vld [vmem:[%s8918_s3 + $0x48] sm:$0xff] }
0x10e8   :  { %v6552_v11 = vpop.f32.mrf.mxu1  ;;  %2428 = vmatprep.subr.mxu0 %v2378_v12  ;;  %v2546_v12 = vld [vmem:[%s8919_s23 + $0x18] sm:$0xff] }
0x10e9   :  { %v2299_v44 = vadd.f32 %v2296_v43, %v7743_v48  ;;  %v2315_v46 = vsel %vm357_vm0, %v8107_v42, 0.0  ;;  %2429 = vmatpush1.msra.mxu0 %v2377_v13  ;;  %v2574_v11 = vld [vmem:[%s8919_s23 + $0xf8] sm:$0xff]  ;;  %v2561_v13 = vld [vmem:[%s8919_s23 + $0x90] sm:$0xff] }
0x10ea   :  { %2316 = vadd.xlane.f32.xlu0 %v2315_v46  ;;  %2430 = vmatprep.subr.mxu0 %v2376_v54  ;;  %v2573_v46 = vld [vmem:[%s8919_s23 + $0xf0] sm:$0xff] }
0x10eb   :  { %v8112_v49 = vadd.f32 %v5711_v32, %v2299_v44  ;;  %2431 = vmatpush1.msra.mxu0 %v2375_v57  ;;  %5997 = vmatprep.subr.mxu1 %v2574_v11  ;;  %v2558_v44 = vld [vmem:[%s8919_s23 + $0x78] sm:$0xff]  ;;  %v2545_v54 = vld [vmem:[%s8919_s23 + $0x10] sm:$0xff]  ;;  %v2560_v57 = vld [vmem:[%s8919_s23 + $0x88] sm:$0xff] }
0x10ec   :  { %2432 = vmatprep.subr.mxu0 %v2374_v19  ;;  %5998 = vmatpush3.msra.mxu1 %v2558_v44  ;;  %v2544_v19 = vld [vmem:[%s8919_s23 + $0x8] sm:$0xff] }
0x10ed   :  { %v2318_v47 = vsel %vm812_vm2, %v8112_v49, 0.0  ;;  %2433 = vmatpush1.msra.mxu0 %v2373_v6  ;;  %5999 = vmatprep.subr.mxu1 %v2573_v46  ;;  %v2559_v6 = vld [vmem:[%s8919_s23 + $0x80] sm:$0xff] }
0x10ee   :  { %2319 = vadd.xlane.f32.xlu0 %v2318_v47  ;;  %2434 = vmatprep.subr.mxu0 %v2372_v58  ;;  %v2557_v47 = vld [vmem:[%s8919_s23 + $0x70] sm:$0xff]  ;;  %v2543_v58 = vld [vmem:[%s8919_s23] sm:$0xff] }
0x10ef   :  { %2435 = vmatpush1.msra.mxu0 %v2371_v23  ;;  %6000 = vmatpush3.msra.mxu1 %v2557_v47  ;;  %v2683_v23 = vld [vmem:[%s8920_s26 + $0x78] sm:$0xff] }
0x10f0   :  { %2436 = vmatprep.subr.mxu0 %v2370_v14  ;;  %v2682_v14 = vld [vmem:[%s8920_s26 + $0x70] sm:$0xff] }
0x10f1   :  { %2437 = vmatpush1.msra.mxu0 %v2369_v26  ;;  %v2681_v26 = vld [vmem:[%s8920_s26 + $0x68] sm:$0xff] }
0x10f2   :  { %2721 = vmatprep.subr.mxu0 %v2683_v23 }
0x116f   :  { %v2314_v50 = vpop.xlane.xlu1 %2313 }
0x1170   :  { %v2321_v51 = vmul.f32 0.015625, %v2314_v50  ;;  %v2572_v50 = vld [vmem:[%s8919_s23 + $0xe8] sm:$0xff] }
0x1171   :  { %6001 = vmatprep.subr.mxu1 %v2572_v50 }
0x1172   :  { %v2324_v15 = vsub.f32 %v8102_v36, %v2321_v51  ;;  %v2556_v51 = vld [vmem:[%s8919_s23 + $0x68] sm:$0xff] }
0x1173   :  { %v2317_v52 = vpop.xlane.xlu0 %2316  ;;  %6002 = vmatpush3.msra.mxu1 %v2556_v51 }
0x1174   :  { %v2322_v21 = vmul.f32 0.015625, %v2317_v52  ;;  %v2327_v53 = vmul.f32 %v2324_v15, %v2324_v15  ;;  %v2555_v52 = vld [vmem:[%s8919_s23 + $0x60] sm:$0xff] }
0x1176   :  { %v8118_v48 = vsub.f32 %v8107_v42, %v2322_v21  ;;  %v2330_v55 = vsel %vm357_vm0, %v2327_v53, 0.0  ;;  %v2570_v21 = vld [vmem:[%s8919_s23 + $0xd8] sm:$0xff] }
0x1177   :  { %2331 = vadd.xlane.f32.xlu1 %v2330_v55  ;;  %v2320_v56 = vpop.xlane.xlu0 %2319  ;;  %v2554_v53 = vld [vmem:[%s8919_s23 + $0x58] sm:$0xff]  ;;  %v2553_v55 = vld [vmem:[%s8919_s23 + $0x50] sm:$0xff] }
0x1178   :  { %v2323_v3 = vmul.f32 0.015625, %v2320_v56  ;;  %v2328_v59 = vmul.f32 %v8118_v48, %v8118_v48  ;;  %v2568_v56 = vld [vmem:[%s8919_s23 + $0xc8] sm:$0xff] }
0x117a   :  { %v8124_v60 = vsub.f32 %v8112_v49, %v2323_v3  ;;  %v2333_v61 = vsel %vm357_vm0, %v2328_v59, 0.0  ;;  %v2552_v3 = vld [vmem:[%s8919_s23 + $0x48] sm:$0xff]  ;;  %v2567_v59 = vld [vmem:[%s8919_s23 + $0xc0] sm:$0xff] }
0x117b   :  { %2334 = vadd.xlane.f32.xlu0 %v2333_v61  ;;  %v2566_v61 = vld [vmem:[%s8919_s23 + $0xb8] sm:$0xff] }
0x117c   :  { %v2329_v62 = vmul.f32 %v8124_v60, %v8124_v60 }
0x117e   :  { %v2336_v0 = vsel %vm812_vm2, %v2329_v62, 0.0  ;;  %v2550_v62 = vld [vmem:[%s8919_s23 + $0x38] sm:$0xff] }
0x117f   :  { %2337 = vadd.xlane.f32.xlu1 %v2336_v0  ;;  %v2565_v0 = vld [vmem:[%s8919_s23 + $0xb0] sm:$0xff] }
0x1200   :  { %v2332_v16 = vpop.xlane.xlu1 %2331 }
0x1201   :  { %v2339_v5 = vmul.f32 0.015625, %v2332_v16  ;;  %v2680_v16 = vld [vmem:[%s8920_s26 + $0x60] sm:$0xff] }
0x1203   :  { %v2342_v17 = vadd.f32 1e-05, %v2339_v5  ;;  %v2679_v5 = vld [vmem:[%s8920_s26 + $0x58] sm:$0xff] }
0x1204   :  { %v2335_v18 = vpop.xlane.xlu0 %2334 }
0x1205   :  { %6882 = vrsqrt.f32 %v2342_v17  ;;  %v2340_v20 = vmul.f32 0.015625, %v2335_v18  ;;  %v2678_v17 = vld [vmem:[%s8920_s26 + $0x50] sm:$0xff]  ;;  %v2677_v18 = vld [vmem:[%s8920_s26 + $0x48] sm:$0xff] }
0x1207   :  { %v2343_v22 = vadd.f32 1e-05, %v2340_v20  ;;  %v2385_v20 = vld [vmem:[#allocation19] sm:$0x3] }
0x1208   :  { %v2338_v24 = vpop.xlane.xlu1 %2337 }
0x1209   :  { %6884 = vrsqrt.f32 %v2343_v22  ;;  %v2341_v25 = vmul.f32 0.015625, %v2338_v24  ;;  %v2390_v22 = vrot.slane %v2385_v20, %v7796_v45  ;;  %v2394_v24 = vrot.slane %v2385_v20, %v7829_v63 }
0x120b   :  { %v2344_v27 = vadd.f32 1e-05, %v2341_v25 }
0x120d   :  { %6886 = vrsqrt.f32 %v2344_v27 }
0x1212   :  { %v6883_v28 = vpop.eup %6882 }
0x1213   :  { %v2348_v30 = vmul.f32 %v6883_v28, %v2324_v15  ;;  %v2571_v15 = vld [vmem:[%s8919_s23 + $0xe0] sm:$0xff] }
0x1214   :  { %6003 = vmatprep.subr.mxu1 %v2571_v15 }
0x1215   :  { %v2357_v32 = vmul.f32 %v5712_v29, %v2348_v30  ;;  %6004 = vmatpush3.msra.mxu1 %v2555_v52 }
0x1216   :  { %v6885_v33 = vpop.eup %6884  ;;  %6005 = vmatprep.subr.mxu1 %v2570_v21 }
0x1217   :  { %v2366_v34 = vadd.f32 %v5713_v31, %v2357_v32  ;;  %v2349_v35 = vmul.f32 %v6885_v33, %v8118_v48  ;;  %6006 = vmatpush3.msra.mxu1 %v2554_v53  ;;  %v2569_v48 = vld [vmem:[%s8919_s23 + $0xd0] sm:$0xff] }
0x1218   :  { %6007 = vmatprep.subr.mxu1 %v2569_v48 }
0x1219   :  { %5714 = vmatmul.mubr.msk.f32.vlgmr.msra.gmra.mxu0 %vm357_vm0, %v2366_v34  ;;  %v2358_v37 = vmul.f32 %v5712_v29, %v2349_v35  ;;  %6008 = vmatpush3.msra.mxu1 %v2553_v55 }
0x121a   :  { %v6887_v38 = vpop.eup %6886  ;;  %2476 = vmatprep.mubr.f32.mxu0 %v7441_v8  ;;  %6009 = vmatprep.subr.mxu1 %v2568_v56 }
0x121b   :  { %v2367_v39 = vadd.f32 %v5713_v31, %v2358_v37  ;;  %v2350_v40 = vmul.f32 %v6887_v38, %v8124_v60  ;;  %v2551_v60 = vld [vmem:[%s8919_s23 + $0x40] sm:$0xff]  ;;  %6010 = vmatpush3.msra.mxu1 %v2552_v3  ;;  %2722 = vmatpush1.msra.mxu0 %v2682_v14 }
0x121c   :  { %6011 = vmatprep.subr.mxu1 %v2567_v59  ;;  %2723 = vmatprep.subr.mxu0 %v2681_v26 }
0x121d   :  { %5715 = vmatmul.mubr.msk.f32.gmra.mxu0 %vm357_vm0, %v2367_v39  ;;  %v2359_v41 = vmul.f32 %v5712_v29, %v2350_v40  ;;  %6012 = vmatpush3.msra.mxu1 %v2551_v60 }
0x121e   :  { %2482 = vmatprep.mubr.f32.mxu0 %v7441_v8  ;;  %6013 = vmatprep.subr.mxu1 %v2566_v61 }
0x121f   :  { %v2368_v43 = vadd.f32 %v5713_v31, %v2359_v41  ;;  %6014 = vmatpush3.msra.mxu1 %v2550_v62  ;;  %2724 = vmatpush1.msra.mxu0 %v2680_v16 }
0x1220   :  { %6015 = vmatprep.subr.mxu1 %v2565_v0  ;;  %2725 = vmatprep.subr.mxu0 %v2679_v5 }
0x1221   :  { %5716 = vmatmul.mubr.msk.f32.gmra.mxu0 %vm357_vm0, %v2368_v43  ;;  %6016 = vmatpush3.msra.mxu1 %v2549_v1 }
0x1222   :  { %2769 = vmatprep.mubr.f32.mxu0 %v7441_v8  ;;  %6017 = vmatprep.subr.mxu1 %v2564_v2 }
0x1223   :  { %6018 = vmatpush3.msra.mxu1 %v2548_v4  ;;  %2726 = vmatpush1.msra.mxu0 %v2678_v17 }
0x1224   :  { %6019 = vmatprep.subr.mxu1 %v2563_v7  ;;  %2727 = vmatprep.subr.mxu0 %v2677_v18 }
0x1225   :  { %6020 = vmatpush3.msra.mxu1 %v2547_v9 }
0x1226   :  { %6021 = vmatprep.subr.mxu1 %v2562_v10 }
0x1227   :  { %6022 = vmatpush3.msra.mxu1 %v2546_v12 }
0x1228   :  { %6023 = vmatprep.subr.mxu1 %v2561_v13 }
0x1229   :  { %6024 = vmatpush3.msra.mxu1 %v2545_v54 }
0x122a   :  { %6025 = vmatprep.subr.mxu1 %v2560_v57 }
0x122b   :  { %6026 = vmatpush3.msra.mxu1 %v2544_v19 }
0x122c   :  { %6027 = vmatprep.subr.mxu1 %v2559_v6 }
0x122d   :  { %6028 = vmatpush3.msra.mxu1 %v2543_v58 }
0x12d9   :  { %v2472_v25 = vpop.f32.mrf.mxu0 }
0x12da   :  { %v2473_v27 = vadd.f32 %v2472_v25, %v2390_v22 }
0x12db   :  { %v2474_v28 = vpop.f32.mrf.mxu0 }
0x12dc   :  { %v2495_v29 = vmul.f32 0.044715, %v2473_v27  ;;  %v2475_v30 = vadd.f32 %v2474_v28, %v2394_v24  ;;  %v2489_v23 = vmul.f32 0.5, %v2473_v27 }
0x12dd   :  { %v2478_v31 = vpop.f32.mrf.mxu0 }
0x12de   :  { %v2501_v32 = vmul.f32 %v2495_v29, %v2473_v27  ;;  %v2496_v33 = vmul.f32 0.044715, %v2475_v30  ;;  %v2479_v34 = vadd.f32 %v2478_v31, %v2390_v22  ;;  %v2490_v19 = vmul.f32 0.5, %v2475_v30 }
0x12df   :  { %v2480_v35 = vpop.f32.mrf.mxu0 }
0x12e0   :  { %v2507_v37 = vmul.f32 %v2501_v32, %v2473_v27  ;;  %v2502_v38 = vmul.f32 %v2496_v33, %v2475_v30  ;;  %v2497_v39 = vmul.f32 0.044715, %v2479_v34  ;;  %v2481_v40 = vadd.f32 %v2480_v35, %v2394_v24  ;;  %v2675_v35 = vld [vmem:[%s8920_s26 + $0x38] sm:$0xff] }
0x12e1   :  { %v2484_v41 = vpop.f32.mrf.mxu0 }
0x12e2   :  { %v2513_v43 = vadd.f32 %v2507_v37, %v2473_v27  ;;  %v2503_v11 = vmul.f32 %v2497_v39, %v2479_v34  ;;  %v2498_v44 = vmul.f32 0.044715, %v2481_v40  ;;  %v2485_v46 = vadd.f32 %v2484_v41, %v2390_v22  ;;  %v2674_v37 = vld [vmem:[%s8920_s26 + $0x30] sm:$0xff]  ;;  %v2672_v39 = vld [vmem:[%s8920_s26 + $0x20] sm:$0xff] }
0x12e3   :  { %v2486_v47 = vpop.f32.mrf.mxu0  ;;  %v2508_v50 = vmul.f32 %v2502_v38, %v2475_v30  ;;  %v2492_v5 = vmul.f32 0.5, %v2481_v40  ;;  %v2673_v38 = vld [vmem:[%s8920_s26 + $0x28] sm:$0xff]  ;;  %v2670_v41 = vld [vmem:[%s8920_s26 + $0x10] sm:$0xff] }
0x12e4   :  { %v2519_v51 = vmul.f32 0.7978846, %v2513_v43  ;;  %v2504_v15 = vmul.f32 %v2498_v44, %v2481_v40  ;;  %v2499_v52 = vmul.f32 0.044715, %v2485_v46  ;;  %v2487_v21 = vadd.f32 %v2486_v47, %v2394_v24  ;;  %v2669_v43 = vld [vmem:[%s8920_s26 + $0x8] sm:$0xff] }
0x12e5   :  { %v2514_v53 = vadd.f32 %v2508_v50, %v2475_v30  ;;  %v2509_v48 = vmul.f32 %v2503_v11, %v2479_v34  ;;  %v2491_v24 = vmul.f32 0.5, %v2479_v34  ;;  %v2493_v32 = vmul.f32 0.5, %v2485_v46  ;;  %v2668_v11 = vld [vmem:[%s8920_s26] sm:$0xff]  ;;  %v5717_v50 = vld [vmem:[#allocation20] ss:$0 sm:$0xff] }
0x12e6   :  { %6888 = vtanh.f32 %v2519_v51  ;;  %v2505_v55 = vmul.f32 %v2499_v52, %v2485_v46  ;;  %v2500_v56 = vmul.f32 0.044715, %v2487_v21  ;;  %v2510_v3 = vmul.f32 %v2504_v15, %v2481_v40 }
0x12e7   :  { %v2520_v59 = vmul.f32 0.7978846, %v2514_v53  ;;  %v2515_v60 = vadd.f32 %v2509_v48, %v2479_v34  ;;  %v2494_v29 = vmul.f32 0.5, %v2487_v21  ;;  %v2676_v34 = vld [vmem:[%s8920_s26 + $0x40] sm:$0xff] }
0x12e8   :  { %v2506_v61 = vmul.f32 %v2500_v56, %v2487_v21  ;;  %v2516_v62 = vadd.f32 %v2510_v3, %v2481_v40  ;;  %v2511_v0 = vmul.f32 %v2505_v55, %v2485_v46  ;;  %2728 = vmatpush1.msra.mxu0 %v2676_v34  ;;  %v2671_v40 = vld [vmem:[%s8920_s26 + $0x18] sm:$0xff] }
0x12e9   :  { %6890 = vtanh.f32 %v2520_v59  ;;  %v2521_v1 = vmul.f32 0.7978846, %v2515_v60  ;;  %2729 = vmatprep.subr.mxu0 %v2675_v35 }
0x12ea   :  { %v2522_v2 = vmul.f32 0.7978846, %v2516_v62  ;;  %v2512_v4 = vmul.f32 %v2506_v61, %v2487_v21  ;;  %v2517_v7 = vadd.f32 %v2511_v0, %v2485_v46  ;;  %2730 = vmatpush1.msra.mxu0 %v2674_v37  ;;  %v2873_v62 = vld [vmem:[%s8921_s4 + $0xf8] sm:$0xff] }
0x12eb   :  { %6892 = vtanh.f32 %v2521_v1  ;;  %2731 = vmatprep.subr.mxu0 %v2673_v38  ;;  %v2857_v0 = vld [vmem:[%s8921_s4 + $0x78] sm:$0xff]  ;;  %v2872_v1 = vld [vmem:[%s8921_s4 + $0xf0] sm:$0xff] }
0x12ec   :  { %6894 = vtanh.f32 %v2522_v2  ;;  %v2518_v9 = vadd.f32 %v2512_v4, %v2487_v21  ;;  %v2523_v10 = vmul.f32 0.7978846, %v2517_v7  ;;  %2732 = vmatpush1.msra.mxu0 %v2672_v39  ;;  %v2856_v2 = vld [vmem:[%s8921_s4 + $0x70] sm:$0xff]  ;;  %v2871_v4 = vld [vmem:[%s8921_s4 + $0xe8] sm:$0xff] }
0x12ed   :  { %2733 = vmatprep.subr.mxu0 %v2671_v40  ;;  %v2855_v7 = vld [vmem:[%s8921_s4 + $0x68] sm:$0xff] }
0x12ee   :  { %v2524_v12 = vmul.f32 0.7978846, %v2518_v9  ;;  %6896 = vtanh.f32 %v2523_v10  ;;  %2734 = vmatpush1.msra.mxu0 %v2670_v41  ;;  %v2870_v9 = vld [vmem:[%s8921_s4 + $0xe0] sm:$0xff] }
0x12ef   :  { %2735 = vmatprep.subr.mxu0 %v2669_v43  ;;  %v2854_v10 = vld [vmem:[%s8921_s4 + $0x60] sm:$0xff] }
0x12f0   :  { %6898 = vtanh.f32 %v2524_v12  ;;  %2736 = vmatpush1.msra.mxu0 %v2668_v11  ;;  %v2869_v12 = vld [vmem:[%s8921_s4 + $0xd8] sm:$0xff] }
0x12f1   :  { %6038 = vmatprep.subr.mxu0 %v2873_v62  ;;  %v5730_v62 = vld [vmem:[%s8915_s11 + $0xa0] sm:$0xff] }
0x12f3   :  { %v6889_v13 = vpop.eup %6888 }
0x12f4   :  { %v2531_v57 = vadd.f32 1.0, %v6889_v13  ;;  %v2853_v13 = vld [vmem:[%s8921_s4 + $0x58] sm:$0xff] }
0x12f6   :  { %v6891_v54 = vpop.eup %6890  ;;  %v2537_v16 = vmul.f32 %v2531_v57, %v2489_v23  ;;  %v2852_v57 = vld [vmem:[%s8921_s4 + $0x50] sm:$0xff]  ;;  %v2850_v23 = vld [vmem:[%s8921_s4 + $0x40] sm:$0xff] }
0x12f7   :  { %v2532_v6 = vadd.f32 1.0, %v6891_v54  ;;  %v2868_v54 = vld [vmem:[%s8921_s4 + $0xd0] sm:$0xff] }
0x12f8   :  { %v6893_v58 = vpop.eup %6892 }
0x12f9   :  { %v6895_v14 = vpop.eup %6894  ;;  %v2538_v26 = vmul.f32 %v2532_v6, %v2490_v19  ;;  %v2533_v18 = vadd.f32 1.0, %v6893_v58  ;;  %v2867_v19 = vld [vmem:[%s8921_s4 + $0xc8] sm:$0xff]  ;;  %v2866_v58 = vld [vmem:[%s8921_s4 + $0xc0] sm:$0xff] }
0x12fa   :  { %v2534_v17 = vadd.f32 1.0, %v6895_v14  ;;  %v2851_v6 = vld [vmem:[%s8921_s4 + $0x48] sm:$0xff]  ;;  %v2865_v14 = vld [vmem:[%s8921_s4 + $0xb8] sm:$0xff] }
0x12fb   :  { %v6897_v20 = vpop.eup %6896  ;;  %2639 = vmatprep.mubr.f32.mxu1 %v2538_v26  ;;  %v2539_v28 = vmul.f32 %v2533_v18, %v2491_v24  ;;  %v2849_v26 = vld [vmem:[%s8921_s4 + $0x38] sm:$0xff]  ;;  %v2847_v18 = vld [vmem:[%s8921_s4 + $0x28] sm:$0xff] }
0x12fc   :  { %2640 = vmatmul.mubr.f32.vlgmr.msra.gmra.mxu1 %v2537_v16  ;;  %v2540_v22 = vmul.f32 %v2534_v17, %v2492_v5  ;;  %v2535_v30 = vadd.f32 1.0, %v6897_v20  ;;  %v2864_v16 = vld [vmem:[%s8921_s4 + $0xb0] sm:$0xff]  ;;  %v2863_v17 = vld [vmem:[%s8921_s4 + $0xa8] sm:$0xff]  ;;  %v2862_v20 = vld [vmem:[%s8921_s4 + $0xa0] sm:$0xff] }
0x12fd   :  { %v6899_v25 = vpop.eup %6898  ;;  %v2848_v5 = vld [vmem:[%s8921_s4 + $0x30] sm:$0xff]  ;;  %v2861_v24 = vld [vmem:[%s8921_s4 + $0x98] sm:$0xff] }
0x12fe   :  { %2644 = vmatprep.mubr.f32.mxu1 %v2540_v22  ;;  %v2536_v27 = vadd.f32 1.0, %v6899_v25  ;;  %v2541_v33 = vmul.f32 %v2535_v30, %v2493_v32  ;;  %v2846_v22 = vld [vmem:[%s8921_s4 + $0x20] sm:$0xff]  ;;  %v2845_v25 = vld [vmem:[%s8921_s4 + $0x18] sm:$0xff]  ;;  %v2843_v30 = vld [vmem:[%s8921_s4 + $0x8] sm:$0xff] }
0x12ff   :  { %v2842_v32 = vld [vmem:[%s8921_s4] sm:$0xff] }
0x1300   :  { %2645 = vmatmul.mubr.f32.gmra.mxu1 %v2539_v28  ;;  %v2542_v31 = vmul.f32 %v2536_v27, %v2494_v29  ;;  %v2860_v28 = vld [vmem:[%s8921_s4 + $0x90] sm:$0xff]  ;;  %v2859_v27 = vld [vmem:[%s8921_s4 + $0x88] sm:$0xff] }
0x1301   :  { %v2844_v29 = vld [vmem:[%s8921_s4 + $0x10] sm:$0xff] }
0x1302   :  { %2649 = vmatprep.mubr.f32.mxu1 %v2542_v31  ;;  %v2858_v31 = vld [vmem:[%s8921_s4 + $0x80] sm:$0xff] }
0x1304   :  { %2650 = vmatmul.mubr.f32.gmra.mxu1 %v2541_v33 }
0x1305   :  { %3158 = vmatprep.mubr.f32.mxu1 %v7441_v8 }
0x13bc   :  { %v6029_v44 = vpop.f32.mrf.mxu1 }
0x13be   :  { %v6030_v46 = vpop.f32.mrf.mxu1 }
0x13bf   :  { %v6031_v47 = vadd.f32 %v6030_v46, %v6029_v44 }
0x13c0   :  { %v6032_v51 = vpop.f32.mrf.mxu1 }
0x13c1   :  { %v2655_v15 = vadd.f32 %v6031_v47, %v8102_v36 }
0x13c2   :  { %v6033_v52 = vpop.f32.mrf.mxu1 }
0x13c3   :  { %v8206_v21 = vadd.f32 %v5717_v50, %v2655_v15  ;;  %v6034_v53 = vadd.f32 %v6033_v52, %v6032_v51  ;;  %v5741_v15 = vld [vmem:[%s8915_s11 + $0xf8] sm:$0xff]  ;;  %v5740_v52 = vld [vmem:[%s8915_s11 + $0xf0] sm:$0xff] }
0x13c4   :  { %v6035_v48 = vpop.f32.mrf.mxu1  ;;  %3110 = vmatprep.subr.mxu1 %v5741_v15 }
0x13c5   :  { %v2656_v55 = vadd.f32 %v6034_v53, %v8107_v42  ;;  %5718 = vmatmul.mubr.msk.f32.vlgmr.msra.gmra.mxu0 %vm357_vm0, %v8206_v21  ;;  %v2998_v56 = vsel %vm357_vm0, %v8206_v21, 0.0  ;;  %3111 = vmatpush1.msra.mxu1 %v5740_v52  ;;  %v5739_v53 = vld [vmem:[%s8915_s11 + $0xe8] sm:$0xff] }
0x13c6   :  { %v6036_v3 = vpop.f32.mrf.mxu1  ;;  %2999 = vadd.xlane.f32.xlu0 %v2998_v56  ;;  %2775 = vmatprep.mubr.f32.mxu0 %v7441_v8  ;;  %v5736_v56 = vld [vmem:[%s8915_s11 + $0xd0] sm:$0xff] }
0x13c7   :  { %v8214_v36 = vadd.f32 %v5717_v50, %v2656_v55  ;;  %v6037_v59 = vadd.f32 %v6036_v3, %v6035_v48  ;;  %6039 = vmatpush3.msra.mxu0 %v2857_v0  ;;  %3112 = vmatprep.subr.mxu1 %v5739_v53  ;;  %v5738_v48 = vld [vmem:[%s8915_s11 + $0xe0] sm:$0xff]  ;;  %v5737_v55 = vld [vmem:[%s8915_s11 + $0xd8] sm:$0xff]  ;;  %v5735_v3 = vld [vmem:[%s8915_s11 + $0xc8] sm:$0xff] }
0x13c8   :  { %6040 = vmatprep.subr.mxu0 %v2872_v1  ;;  %3113 = vmatpush1.msra.mxu1 %v5738_v48  ;;  %v5729_v0 = vld [vmem:[%s8915_s11 + $0x98] sm:$0xff]  ;;  %v5728_v1 = vld [vmem:[%s8915_s11 + $0x90] sm:$0xff] }
0x13c9   :  { %v2657_v60 = vadd.f32 %v6037_v59, %v8112_v49  ;;  %5719 = vmatmul.mubr.msk.f32.gmra.mxu0 %vm357_vm0, %v8214_v36  ;;  %v3001_v42 = vsel %vm357_vm0, %v8214_v36, 0.0  ;;  %3114 = vmatprep.subr.mxu1 %v5737_v55  ;;  %v5734_v59 = vld [vmem:[%s8915_s11 + $0xc0] sm:$0xff] }
0x13ca   :  { %3002 = vadd.xlane.f32.xlu1 %v3001_v42  ;;  %2781 = vmatprep.mubr.f32.mxu0 %v7441_v8  ;;  %v5732_v42 = vld [vmem:[%s8915_s11 + $0xb0] sm:$0xff] }
0x13cb   :  { %v8222_v61 = vadd.f32 %v5717_v50, %v2657_v60  ;;  %6041 = vmatpush3.msra.mxu0 %v2856_v2  ;;  %3115 = vmatpush1.msra.mxu1 %v5736_v56  ;;  %v5733_v60 = vld [vmem:[%s8915_s11 + $0xb8] sm:$0xff]  ;;  %v5727_v2 = vld [vmem:[%s8915_s11 + $0x88] sm:$0xff] }
0x13cc   :  { %6042 = vmatprep.subr.mxu0 %v2871_v4  ;;  %3116 = vmatprep.subr.mxu1 %v5735_v3  ;;  %v5726_v4 = vld [vmem:[%s8915_s11 + $0x80] sm:$0xff] }
0x13cd   :  { %5720 = vmatmul.mubr.msk.f32.gmra.mxu0 %vm357_vm0, %v8222_v61  ;;  %v3004_v49 = vsel %vm812_vm2, %v8222_v61, 0.0  ;;  %3117 = vmatpush1.msra.mxu1 %v5734_v59 }
0x13ce   :  { %3005 = vadd.xlane.f32.xlu0 %v3004_v49  ;;  %6043 = vmatpush3.msra.mxu0 %v2855_v7  ;;  %v5731_v49 = vld [vmem:[%s8915_s11 + $0xa8] sm:$0xff] }
0x13cf   :  { %6044 = vmatprep.subr.mxu0 %v2870_v9  ;;  %3118 = vmatprep.subr.mxu1 %v5733_v60  ;;  %v2684_v7 = vld [vmem:[#allocation25] sm:$0x3] }
0x13d0   :  { %6045 = vmatpush3.msra.mxu0 %v2854_v10  ;;  %3119 = vmatpush1.msra.mxu1 %v5732_v42  ;;  %v2689_v9 = vrot.slane %v2684_v7, %v7796_v45  ;;  %v2693_v10 = vrot.slane %v2684_v7, %v7829_v63 }
0x13d1   :  { %6046 = vmatprep.subr.mxu0 %v2869_v12  ;;  %3120 = vmatprep.subr.mxu1 %v5731_v49 }
0x13d2   :  { %6047 = vmatpush3.msra.mxu0 %v2853_v13  ;;  %3121 = vmatpush1.msra.mxu1 %v5730_v62 }
0x13d3   :  { %6048 = vmatprep.subr.mxu0 %v2868_v54  ;;  %3122 = vmatprep.subr.mxu1 %v5729_v0 }
0x13d4   :  { %6049 = vmatpush3.msra.mxu0 %v2852_v57  ;;  %3123 = vmatpush1.msra.mxu1 %v5728_v1 }
0x13d5   :  { %6050 = vmatprep.subr.mxu0 %v2867_v19  ;;  %3124 = vmatprep.subr.mxu1 %v5727_v2 }
0x13d6   :  { %6051 = vmatpush3.msra.mxu0 %v2851_v6  ;;  %3125 = vmatpush1.msra.mxu1 %v5726_v4 }
0x13d7   :  { %6052 = vmatprep.subr.mxu0 %v2866_v58  ;;  %6553 = vmatprep.subr.mxu1 %v7441_v8 }
0x13d8   :  { %6053 = vmatpush3.msra.mxu0 %v2850_v23 }
0x13d9   :  { %6054 = vmatprep.subr.mxu0 %v2865_v14 }
0x13da   :  { %6055 = vmatpush3.msra.mxu0 %v2849_v26 }
0x13db   :  { %6056 = vmatprep.subr.mxu0 %v2864_v16 }
0x13dc   :  { %6057 = vmatpush3.msra.mxu0 %v2848_v5 }
0x13dd   :  { %6058 = vmatprep.subr.mxu0 %v2863_v17 }
0x13de   :  { %6059 = vmatpush3.msra.mxu0 %v2847_v18 }
0x13df   :  { %6060 = vmatprep.subr.mxu0 %v2862_v20 }
0x13e0   :  { %6061 = vmatpush3.msra.mxu0 %v2846_v22 }
0x13e1   :  { %6062 = vmatprep.subr.mxu0 %v2861_v24 }
0x13e2   :  { %6063 = vmatpush3.msra.mxu0 %v2845_v25 }
0x13e3   :  { %6064 = vmatprep.subr.mxu0 %v2860_v28 }
0x13e4   :  { %6065 = vmatpush3.msra.mxu0 %v2844_v29 }
0x13e5   :  { %6066 = vmatprep.subr.mxu0 %v2859_v27 }
0x13e6   :  { %6067 = vmatpush3.msra.mxu0 %v2843_v30 }
0x13e7   :  { %6068 = vmatprep.subr.mxu0 %v2858_v31 }
0x13e8   :  { %6069 = vmatpush3.msra.mxu0 %v2842_v32 }
0x13e9   :  { %6568 = vmatprep.subr.mxu0 %v7441_v8 }
0x144f   :  { %v3000_v33 = vpop.xlane.xlu0 %2999 }
0x1450   :  { %v3007_v34 = vmul.f32 0.015625, %v3000_v33 }
0x1452   :  { %v8262_v35 = vsub.f32 %v8206_v21, %v3007_v34 }
0x1453   :  { %v3003_v37 = vpop.xlane.xlu1 %3002 }
0x1454   :  { %v3008_v38 = vmul.f32 0.015625, %v3003_v37  ;;  %v3013_v39 = vmul.f32 %v8262_v35, %v8262_v35 }
0x1456   :  { %v8267_v40 = vsub.f32 %v8214_v36, %v3008_v38  ;;  %v3016_v41 = vsel %vm357_vm0, %v3013_v39, 0.0 }
0x1457   :  { %3017 = vadd.xlane.f32.xlu1 %v3016_v41  ;;  %v3006_v43 = vpop.xlane.xlu0 %3005 }
0x1458   :  { %v3009_v11 = vmul.f32 0.015625, %v3006_v43  ;;  %v3014_v44 = vmul.f32 %v8267_v40, %v8267_v40 }
0x145a   :  { %v8273_v46 = vsub.f32 %v8222_v61, %v3009_v11  ;;  %v3019_v47 = vsel %vm357_vm0, %v3014_v44, 0.0 }
0x145b   :  { %3020 = vadd.xlane.f32.xlu0 %v3019_v47 }
0x145c   :  { %v3015_v50 = vmul.f32 %v8273_v46, %v8273_v46 }
0x145e   :  { %v3022_v51 = vsel %vm812_vm2, %v3015_v50, 0.0 }
0x145f   :  { %3023 = vadd.xlane.f32.xlu1 %v3022_v51 }
0x1485   :  { %v2771_v12 = vpop.f32.mrf.mxu0 }
0x1486   :  { %v2772_v13 = vadd.f32 %v2771_v12, %v2689_v9 }
0x1487   :  { %v2773_v54 = vpop.f32.mrf.mxu0 }
0x1488   :  { %v2794_v57 = vmul.f32 0.044715, %v2772_v13  ;;  %v2774_v19 = vadd.f32 %v2773_v54, %v2693_v10  ;;  %v2788_v0 = vmul.f32 0.5, %v2772_v13 }
0x1489   :  { %v2777_v6 = vpop.f32.mrf.mxu0 }
0x148a   :  { %v2800_v58 = vmul.f32 %v2794_v57, %v2772_v13  ;;  %v2795_v23 = vmul.f32 0.044715, %v2774_v19  ;;  %v2778_v14 = vadd.f32 %v2777_v6, %v2689_v9  ;;  %v2789_v42 = vmul.f32 0.5, %v2774_v19 }
0x148b   :  { %v2779_v26 = vpop.f32.mrf.mxu0 }
0x148c   :  { %v2806_v16 = vmul.f32 %v2800_v58, %v2772_v13  ;;  %v2801_v5 = vmul.f32 %v2795_v23, %v2774_v19  ;;  %v2796_v17 = vmul.f32 0.044715, %v2778_v14  ;;  %v2780_v18 = vadd.f32 %v2779_v26, %v2693_v10 }
0x148d   :  { %v2783_v20 = vpop.f32.mrf.mxu0  ;;  %v2790_v57 = vmul.f32 0.5, %v2778_v14 }
0x148e   :  { %v2812_v22 = vadd.f32 %v2806_v16, %v2772_v13  ;;  %v2802_v24 = vmul.f32 %v2796_v17, %v2778_v14  ;;  %v2797_v25 = vmul.f32 0.044715, %v2780_v18  ;;  %v2784_v28 = vadd.f32 %v2783_v20, %v2689_v9 }
0x148f   :  { %v2785_v29 = vpop.f32.mrf.mxu0  ;;  %v2807_v27 = vmul.f32 %v2801_v5, %v2774_v19  ;;  %v2791_v7 = vmul.f32 0.5, %v2780_v18 }
0x1490   :  { %v2818_v30 = vmul.f32 0.7978846, %v2812_v22  ;;  %v2803_v31 = vmul.f32 %v2797_v25, %v2780_v18  ;;  %v2798_v32 = vmul.f32 0.044715, %v2784_v28  ;;  %v2786_v33 = vadd.f32 %v2785_v29, %v2693_v10 }
0x1491   :  { %v2813_v34 = vadd.f32 %v2807_v27, %v2774_v19  ;;  %v2808_v37 = vmul.f32 %v2802_v24, %v2778_v14  ;;  %v2792_v13 = vmul.f32 0.5, %v2784_v28 }
0x1492   :  { %6900 = vtanh.f32 %v2818_v30  ;;  %v2804_v38 = vmul.f32 %v2798_v32, %v2784_v28  ;;  %v2799_v39 = vmul.f32 0.044715, %v2786_v33  ;;  %v2809_v41 = vmul.f32 %v2803_v31, %v2780_v18  ;;  %v5725_v32 = vld [vmem:[#allocation11 + $0x1] ss:$0 sm:$0xff] }
0x1493   :  { %v2819_v43 = vmul.f32 0.7978846, %v2813_v34  ;;  %v2814_v11 = vadd.f32 %v2808_v37, %v2778_v14  ;;  %v2793_v23 = vmul.f32 0.5, %v2786_v33 }
0x1494   :  { %v2805_v44 = vmul.f32 %v2799_v39, %v2786_v33  ;;  %v2815_v47 = vadd.f32 %v2809_v41, %v2780_v18  ;;  %v2810_v50 = vmul.f32 %v2804_v38, %v2784_v28 }
0x1495   :  { %6902 = vtanh.f32 %v2819_v43  ;;  %v2820_v51 = vmul.f32 0.7978846, %v2814_v11 }
0x1496   :  { %v2821_v15 = vmul.f32 0.7978846, %v2815_v47  ;;  %v2811_v52 = vmul.f32 %v2805_v44, %v2786_v33  ;;  %v2816_v53 = vadd.f32 %v2810_v50, %v2784_v28  ;;  %v5724_v28 = vld [vmem:[#allocation10 + $0x1] ss:$0 sm:$0xff]  ;;  %v5721_v47 = vld [vmem:[#allocation26] ss:$0 sm:$0xff] }
0x1497   :  { %6904 = vtanh.f32 %v2820_v51 }
0x1498   :  { %6906 = vtanh.f32 %v2821_v15  ;;  %v2817_v48 = vadd.f32 %v2811_v52, %v2786_v33  ;;  %v2822_v55 = vmul.f32 0.7978846, %v2816_v53 }
0x149a   :  { %v2823_v56 = vmul.f32 0.7978846, %v2817_v48  ;;  %6908 = vtanh.f32 %v2822_v55 }
0x149c   :  { %6910 = vtanh.f32 %v2823_v56 }
0x149f   :  { %v6901_v3 = vpop.eup %6900 }
0x14a0   :  { %v2830_v60 = vadd.f32 1.0, %v6901_v3 }
0x14a2   :  { %v6903_v59 = vpop.eup %6902  ;;  %v2836_v4 = vmul.f32 %v2830_v60, %v2788_v0 }
0x14a3   :  { %v2831_v49 = vadd.f32 1.0, %v6903_v59 }
0x14a4   :  { %v6905_v62 = vpop.eup %6904 }
0x14a5   :  { %v6907_v1 = vpop.eup %6906  ;;  %v2837_v2 = vmul.f32 %v2831_v49, %v2789_v42  ;;  %v2832_v10 = vadd.f32 1.0, %v6905_v62 }
0x14a6   :  { %v2833_v9 = vadd.f32 1.0, %v6907_v1 }
0x14a7   :  { %v6909_v12 = vpop.eup %6908  ;;  %2945 = vmatprep.mubr.f32.mxu0 %v2837_v2  ;;  %v2838_v58 = vmul.f32 %v2832_v10, %v2790_v57 }
0x14a8   :  { %2946 = vmatmul.mubr.f32.vlgmr.msra.gmra.mxu0 %v2836_v4  ;;  %v2839_v54 = vmul.f32 %v2833_v9, %v2791_v7  ;;  %v2834_v19 = vadd.f32 1.0, %v6909_v12 }
0x14a9   :  { %v6911_v6 = vpop.eup %6910 }
0x14aa   :  { %2950 = vmatprep.mubr.f32.mxu0 %v2839_v54  ;;  %v2835_v26 = vadd.f32 1.0, %v6911_v6  ;;  %v2840_v5 = vmul.f32 %v2834_v19, %v2792_v13 }
0x14ac   :  { %2951 = vmatmul.mubr.f32.gmra.mxu0 %v2838_v58  ;;  %v2841_v16 = vmul.f32 %v2835_v26, %v2793_v23 }
0x14ae   :  { %2955 = vmatprep.mubr.f32.mxu0 %v2841_v16 }
0x14b0   :  { %2956 = vmatmul.mubr.f32.gmra.mxu0 %v2840_v5 }
0x14b1   :  { %6574 = vmatprep.mubr.msk.f32.mxu0 %vm7443_vm3, %v7441_v8 }
0x14e0   :  { %v3018_v17 = vpop.xlane.xlu1 %3017 }
0x14e1   :  { %v3025_v18 = vmul.f32 0.015625, %v3018_v17 }
0x14e3   :  { %v3028_v20 = vadd.f32 1e-05, %v3025_v18 }
0x14e4   :  { %v3021_v22 = vpop.xlane.xlu0 %3020 }
0x14e5   :  { %6912 = vrsqrt.f32 %v3028_v20  ;;  %v3026_v14 = vmul.f32 0.015625, %v3021_v22 }
0x14e7   :  { %v3029_v24 = vadd.f32 1e-05, %v3026_v14 }
0x14e8   :  { %v3024_v25 = vpop.xlane.xlu1 %3023 }
0x14e9   :  { %6914 = vrsqrt.f32 %v3029_v24  ;;  %v3027_v29 = vmul.f32 0.015625, %v3024_v25  ;;  %v3073_v24 = vld [vmem:[#allocation13 + $0x2] sm:$0x3] }
0x14eb   :  { %v3030_v27 = vadd.f32 1e-05, %v3027_v29 }
0x14ed   :  { %6916 = vrsqrt.f32 %v3030_v27  ;;  %v3078_v27 = vrot.slane %v3073_v24, %v7796_v45 }
0x14f2   :  { %v6913_v30 = vpop.eup %6912 }
0x14f3   :  { %v3034_v31 = vmul.f32 %v6913_v30, %v8262_v35 }
0x14f5   :  { %v3043_v33 = vmul.f32 %v5724_v28, %v3034_v31 }
0x14f6   :  { %v6915_v34 = vpop.eup %6914 }
0x14f7   :  { %v3052_v37 = vadd.f32 %v5725_v32, %v3043_v33  ;;  %v3035_v38 = vmul.f32 %v6915_v34, %v8267_v40  ;;  %v3082_v34 = vrot.slane %v3073_v24, %v7829_v63 }
0x14f9   :  { %5742 = vmatmul.mubr.msk.f32.vlgmr.msra.gmra.mxu1 %vm357_vm0, %v3052_v37  ;;  %v3044_v39 = vmul.f32 %v5724_v28, %v3035_v38 }
0x14fa   :  { %v6917_v41 = vpop.eup %6916  ;;  %3164 = vmatprep.mubr.f32.mxu1 %v7441_v8 }
0x14fb   :  { %v3053_v43 = vadd.f32 %v5725_v32, %v3044_v39  ;;  %v3036_v11 = vmul.f32 %v6917_v41, %v8273_v46 }
0x14fd   :  { %5743 = vmatmul.mubr.msk.f32.gmra.mxu1 %vm357_vm0, %v3053_v43  ;;  %v3045_v44 = vmul.f32 %v5724_v28, %v3036_v11 }
0x14fe   :  { %3170 = vmatprep.mubr.f32.mxu1 %v7441_v8 }
0x14ff   :  { %v3054_v35 = vadd.f32 %v5725_v32, %v3045_v44 }
0x1501   :  { %5744 = vmatmul.mubr.msk.f32.gmra.mxu1 %vm357_vm0, %v3054_v35 }
0x1502   :  { %6559 = vmatprep.mubr.msk.f32.mxu1 %vm7443_vm3, %v7441_v8 }
0x1568   :  { %v6070_v40 = vpop.f32.mrf.mxu0 }
0x156a   :  { %v6071_v50 = vpop.f32.mrf.mxu0 }
0x156b   :  { %v6072_v51 = vadd.f32 %v6071_v50, %v6070_v40 }
0x156c   :  { %v6073_v15 = vpop.f32.mrf.mxu0 }
0x156d   :  { %v2948_v52 = vadd.f32 %v6072_v51, %v5721_v47 }
0x156e   :  { %v6074_v53 = vpop.f32.mrf.mxu0 }
0x156f   :  { %v2964_v48 = vmul.f32 0.044715, %v2948_v52  ;;  %v6075_v46 = vadd.f32 %v6074_v53, %v6073_v15  ;;  %v2961_v23 = vmul.f32 0.5, %v2948_v52 }
0x1570   :  { %v6076_v55 = vpop.f32.mrf.mxu0 }
0x1571   :  { %v2967_v56 = vmul.f32 %v2964_v48, %v2948_v52  ;;  %v2953_v3 = vadd.f32 %v6075_v46, %v5721_v47  ;;  %v8389_v48 = vld [vmem:[%s8916_s18] sm:$0xff] }
0x1572   :  { %v6077_v59 = vpop.f32.mrf.mxu0 }
0x1573   :  { %v2970_v60 = vmul.f32 %v2967_v56, %v2948_v52  ;;  %v2965_v42 = vmul.f32 0.044715, %v2953_v3  ;;  %v6078_v49 = vadd.f32 %v6077_v59, %v6076_v55  ;;  %v2962_v13 = vmul.f32 0.5, %v2953_v3  ;;  %v8394_v59 = vld [vmem:[%s8916_s18 + $0x8] sm:$0xff] }
0x1575   :  { %v2973_v62 = vadd.f32 %v2970_v60, %v2948_v52  ;;  %v2968_v0 = vmul.f32 %v2965_v42, %v2953_v3  ;;  %v2958_v1 = vadd.f32 %v6078_v49, %v5721_v47 }
0x1577   :  { %v2976_v2 = vmul.f32 0.7978846, %v2973_v62  ;;  %v2971_v4 = vmul.f32 %v2968_v0, %v2953_v3  ;;  %v2966_v7 = vmul.f32 0.044715, %v2958_v1  ;;  %v2963_v20 = vmul.f32 0.5, %v2958_v1 }
0x1578   :  { %v8399_v0 = vld [vmem:[%s8916_s18 + $0x10] sm:$0x3] }
0x1579   :  { %6918 = vtanh.f32 %v2976_v2  ;;  %v2974_v9 = vadd.f32 %v2971_v4, %v2953_v3  ;;  %v2969_v10 = vmul.f32 %v2966_v7, %v2958_v1 }
0x157b   :  { %v2977_v12 = vmul.f32 0.7978846, %v2974_v9  ;;  %v2972_v54 = vmul.f32 %v2969_v10, %v2958_v1 }
0x157d   :  { %6920 = vtanh.f32 %v2977_v12  ;;  %v2975_v57 = vadd.f32 %v2972_v54, %v2958_v1 }
0x157f   :  { %v2978_v6 = vmul.f32 0.7978846, %v2975_v57 }
0x1581   :  { %6922 = vtanh.f32 %v2978_v6 }
0x1586   :  { %v6919_v58 = vpop.eup %6918 }
0x1587   :  { %v2982_v26 = vadd.f32 1.0, %v6919_v58 }
0x1589   :  { %v2985_v19 = vmul.f32 %v2982_v26, %v2961_v23 }
0x158a   :  { %v6921_v16 = vpop.eup %6920 }
0x158b   :  { %2988 = vst.msk [vmem:[%s7632_s25] sm:$0xff] %vm357_vm0, %v2985_v19  ;;  %v2983_v5 = vadd.f32 1.0, %v6921_v16 }
0x158d   :  { %v2986_v17 = vmul.f32 %v2983_v5, %v2962_v13 }
0x158e   :  { %v6923_v18 = vpop.eup %6922 }
0x158f   :  { %5722 = vst.msk [vmem:[%s7632_s25 + $0x7] sm:$0xfe] %vm2990_vm8, %v2986_v17  ;;  %v2984_v22 = vadd.f32 1.0, %v6923_v18 }
0x1591   :  { %v2987_v14 = vmul.f32 %v2984_v22, %v2963_v20 }
0x1593   :  { %5723 = vst.msk [vmem:[%s7632_s25 + $0xf] sm:$0x1] %vm2992_vm9, %v2987_v14 }
0x15b9   :  { %v3160_v25 = vpop.f32.mrf.mxu1 }
0x15ba   :  { %v8321_v33 = vadd.f32 %v3160_v25, %v3078_v27 }
0x15bb   :  { %v3162_v29 = vpop.f32.mrf.mxu1 }
0x15bc   :  { %v8341_v43 = vadd.f32 %v3162_v29, %v3082_v34 }
0x15bd   :  { %v3166_v30 = vpop.f32.mrf.mxu1 }
0x15be   :  { %v8317_v28 = vadd.f32 %v3166_v30, %v3078_v27 }
0x15bf   :  { %v3168_v31 = vpop.f32.mrf.mxu1 }
0x15c0   :  { %3182 = vrot.lane.b32.xlu1 %v8317_v28, %s7442_s15  ;;  %v8334_v41 = vadd.f32 %v3168_v31, %v3082_v34 }
0x15c1   :  { %v3172_v32 = vpop.f32.mrf.mxu1 }
0x15c2   :  { %v8324_v37 = vadd.f32 %v3172_v32, %v3078_v27 }
0x15c3   :  { %v3174_v38 = vpop.f32.mrf.mxu1 }
0x15c4   :  { %v8326_v39 = vadd.f32 %v3174_v38, %v3082_v34  ;;  %3184 = vrot.lane.b32.xlu0 %v8324_v37, %s7442_s15  ;;  %3180 = vrot.lane.b32.xlu1 %v8321_v33, %s7442_s15 }
0x15c6   :  { %6569 = vmatpush3.msk.msra.mxu0 %vm1130_vm5, %v8326_v39 }
0x15c7   :  { %6570 = vmatprep.subr.mxu0 %v7441_v8 }
0x15c8   :  { %3414 = vrot.lane.b32.xlu0 %v8317_v28, %s7444_s24  ;;  %3416 = vrot.lane.b32.xlu1 %v8324_v37, %s7444_s24 }
0x15c9   :  { %6571 = vmatpush3.msra.mxu0 %v8334_v41 }
0x15ca   :  { %6572 = vmatprep.subr.mxu0 %v7441_v8 }
0x15cb   :  { %6573 = vmatpush3.msra.mxu0 %v8341_v43 }
0x15cc   :  { %3406 = vrot.lane.b32.xlu0 %v8321_v33, %s7445_s16  ;;  %3412 = vrot.lane.b32.xlu1 %v8321_v33, %s7444_s24 }
0x15cd   :  { %6598 = vmatprep.subr.mxu0 %v7441_v8 }
0x15d0   :  { %3410 = vrot.lane.b32.xlu0 %v8324_v37, %s7445_s16  ;;  %3408 = vrot.lane.b32.xlu1 %v8317_v28, %s7445_s16 }
0x1632   :  { %v3183_v11 = vpop.permute.xlu1 %3182 }
0x1636   :  { %v3185_v44 = vpop.permute.xlu0 %3184  ;;  %v3181_v35 = vpop.permute.xlu1 %3180 }
0x1637   :  { %6554 = vmatpush3.xpose.msk.msra.mxu1 %vm993_vm4, %v3185_v44 }
0x1638   :  { %6555 = vmatprep.subr.mxu1 %v7441_v8 }
0x163a   :  { %v3417_v40 = vpop.permute.xlu1 %3416  ;;  %v3415_v47 = vpop.permute.xlu0 %3414 }
0x163b   :  { %6556 = vmatpush3.xpose.msk.msra.mxu1 %vm993_vm4, %v3183_v11 }
0x163c   :  { %6557 = vmatprep.subr.mxu1 %v7441_v8 }
0x163e   :  { %v3413_v50 = vpop.permute.xlu1 %3412  ;;  %v3407_v51 = vpop.permute.xlu0 %3406 }
0x163f   :  { %6558 = vmatpush3.xpose.msk.msra.mxu1 %vm993_vm4, %v3181_v35 }
0x1640   :  { %6583 = vmatprep.subr.mxu1 %v7441_v8 }
0x1642   :  { %6560 = vmatmul.mubr.msk.f32.vlgmr.msra.gmra.mxu1 %vm993_vm4, %v8321_v33  ;;  %v3409_v15 = vpop.permute.xlu1 %3408  ;;  %v3411_v52 = vpop.permute.xlu0 %3410 }
0x1643   :  { %6584 = vmatpush3.xpose.msk.msra.mxu1 %vm993_vm4, %v3417_v40  ;;  %6562 = vmatprep.mubr.msk.f32.mxu1 %vm7443_vm3, %v7441_v8 }
0x1644   :  { %6585 = vmatprep.subr.mxu1 %v7441_v8 }
0x1646   :  { %6563 = vmatmul.mubr.msk.f32.gmra.mxu1 %vm993_vm4, %v8317_v28 }
0x1647   :  { %6586 = vmatpush3.xpose.msk.msra.mxu1 %vm993_vm4, %v3415_v47  ;;  %6565 = vmatprep.mubr.msk.f32.mxu1 %vm7443_vm3, %v7441_v8 }
0x1648   :  { %6587 = vmatprep.subr.mxu1 %v7441_v8 }
0x164a   :  { %6566 = vmatmul.mubr.msk.f32.gmra.mxu1 %vm993_vm4, %v8324_v37 }
0x164b   :  { %6588 = vmatpush3.xpose.msk.msra.mxu1 %vm993_vm4, %v3413_v50  ;;  %6589 = vmatprep.mubr.msk.f32.mxu1 %vm7443_vm3, %v7441_v8 }
0x164c   :  { %6744 = vmatprep.subr.mxu1 %v7441_v8 }
0x164e   :  { %6590 = vmatmul.mubr.msk.f32.vlgmr.msra.gmra.mxu1 %vm993_vm4, %v3407_v51 }
0x164f   :  { %6592 = vmatprep.mubr.msk.f32.mxu1 %vm7443_vm3, %v7441_v8 }
0x1652   :  { %6593 = vmatmul.mubr.msk.f32.gmra.mxu1 %vm993_vm4, %v3409_v15 }
0x1653   :  { %6595 = vmatprep.mubr.msk.f32.mxu1 %vm7443_vm3, %v7441_v8 }
0x1656   :  { %6596 = vmatmul.mubr.msk.f32.gmra.mxu1 %vm993_vm4, %v3411_v52 }
0x1657   :  { %6610 = vmatprep.mubr.msk.f32.mxu1 %vm7443_vm3, %v7441_v8 }
0x1702   :  { %v3264_v53 = vpop.f32.mrf.mxu1 }
0x1703   :  { %v3265_v46 = vadd.f32 %v8389_v48, %v3264_v53 }
0x1704   :  { %v6561_v55 = vpop.f32.mrf.mxu1 }
0x1705   :  { %v3278_v56 = vsel %vm1086_vm6, %v3265_v46, -inf }
0x1706   :  { %3279 = vmax.xlane.f32.xlu1 %v3278_v56  ;;  %v3269_v3 = vpop.f32.mrf.mxu1 }
0x1707   :  { %v3270_v60 = vadd.f32 %v8394_v59, %v3269_v3 }
0x1708   :  { %v6564_v42 = vpop.f32.mrf.mxu1 }
0x1709   :  { %v3281_v49 = vsel %vm1086_vm6, %v3270_v60, -inf }
0x170a   :  { %3282 = vmax.xlane.f32.xlu0 %v3281_v49  ;;  %v3274_v62 = vpop.f32.mrf.mxu1 }
0x170b   :  { %v3275_v1 = vadd.f32 %v8399_v0, %v3274_v62 }
0x170c   :  { %v6567_v2 = vpop.f32.mrf.mxu1 }
0x170d   :  { %v3284_v4 = vsel %vm1093_vm7, %v3275_v1, -inf }
0x170e   :  { %3285 = vmax.xlane.f32.xlu0 %v3284_v4  ;;  %v3496_v7 = vpop.f32.mrf.mxu1 }
0x170f   :  { %v3497_v9 = vadd.f32 %v8389_v48, %v3496_v7 }
0x1710   :  { %v6591_v10 = vpop.f32.mrf.mxu1 }
0x1711   :  { %v3510_v12 = vsel %vm1086_vm6, %v3497_v9, -inf }
0x1712   :  { %3511 = vmax.xlane.f32.xlu0 %v3510_v12  ;;  %v3501_v54 = vpop.f32.mrf.mxu1 }
0x1713   :  { %v3502_v57 = vadd.f32 %v8394_v59, %v3501_v54 }
0x1714   :  { %v6594_v6 = vpop.f32.mrf.mxu1 }
0x1715   :  { %v3513_v58 = vsel %vm1086_vm6, %v3502_v57, -inf }
0x1716   :  { %3514 = vmax.xlane.f32.xlu1 %v3513_v58  ;;  %v3506_v23 = vpop.f32.mrf.mxu1 }
0x1717   :  { %v3507_v26 = vadd.f32 %v8399_v0, %v3506_v23 }
0x1718   :  { %v6597_v19 = vpop.f32.mrf.mxu1 }
0x1719   :  { %v3516_v16 = vsel %vm1093_vm7, %v3507_v26, -inf  ;;  %v5756_v19 = vld [vmem:[%s8917_s12 + $0x48] sm:$0xff] }
0x171a   :  { %3517 = vmax.xlane.f32.xlu0 %v3516_v16 }
0x1727   :  { %3549 = vrot.lane.b32.xlu1 %v8326_v39, %s7445_s16 }
0x178f   :  { %v3280_v13 = vpop.xlane.xlu1 %3279 }
0x1790   :  { %v3287_v5 = vsub.f32 %v3265_v46, %v3280_v13 }
0x1792   :  { %v3290_v17 = vmul.f32 1.442695, %v3287_v5 }
0x1793   :  { %v3283_v18 = vpop.xlane.xlu0 %3282 }
0x1794   :  { %6924 = vpow2.f32 %v3290_v17  ;;  %v3288_v20 = vsub.f32 %v3270_v60, %v3283_v18  ;;  %v5755_v18 = vld [vmem:[%s8917_s12 + $0x40] sm:$0xff] }
0x1796   :  { %v3292_v22 = vmul.f32 1.442695, %v3288_v20  ;;  %v5768_v20 = vld [vmem:[%s8917_s12 + $0x58] sm:$0xff] }
0x1797   :  { %v3286_v14 = vpop.xlane.xlu0 %3285 }
0x1798   :  { %6926 = vpow2.f32 %v3292_v22  ;;  %v3289_v24 = vsub.f32 %v3275_v1, %v3286_v14  ;;  %v5767_v22 = vld [vmem:[%s8917_s12 + $0x50] sm:$0xff] }
0x179a   :  { %v3294_v25 = vmul.f32 1.442695, %v3289_v24 }
0x179b   :  { %v3512_v29 = vpop.xlane.xlu0 %3511 }
0x179c   :  { %6928 = vpow2.f32 %v3294_v25  ;;  %v3519_v27 = vsub.f32 %v3497_v9, %v3512_v29 }
0x179e   :  { %v3522_v30 = vmul.f32 1.442695, %v3519_v27 }
0x179f   :  { %v3515_v31 = vpop.xlane.xlu1 %3514 }
0x17a0   :  { %6930 = vpow2.f32 %v3522_v30  ;;  %v3520_v32 = vsub.f32 %v3502_v57, %v3515_v31 }
0x17a1   :  { %v6925_v34 = vpop.eup %6924 }
0x17a2   :  { %v3524_v38 = vmul.f32 1.442695, %v3520_v32  ;;  %v3296_v11 = vsel %vm1086_vm6, %v6925_v34, 0.0 }
0x17a3   :  { %v3518_v44 = vpop.xlane.xlu0 %3517  ;;  %3297 = vadd.xlane.f32.xlu1 %v3296_v11  ;;  %v3550_v35 = vpop.permute.xlu1 %3549 }
0x17a4   :  { %6932 = vpow2.f32 %v3524_v38  ;;  %v3521_v40 = vsub.f32 %v3507_v26, %v3518_v44  ;;  %6747 = vmatpush3.msk.msra.mxu1 %vm1130_vm5, %v3550_v35 }
0x17a5   :  { %v6927_v47 = vpop.eup %6926  ;;  %6745 = vmatprep.subr.mxu1 %v7441_v8 }
0x17a6   :  { %v3526_v50 = vmul.f32 1.442695, %v3521_v40  ;;  %v3299_v51 = vsel %vm1086_vm6, %v6927_v47, 0.0 }
0x17a7   :  { %3300 = vadd.xlane.f32.xlu0 %v3299_v51 }
0x17a8   :  { %6934 = vpow2.f32 %v3526_v50 }
0x17a9   :  { %v6929_v15 = vpop.eup %6928 }
0x17aa   :  { %v3302_v52 = vsel %vm1093_vm7, %v6929_v15, 0.0 }
0x17ab   :  { %3303 = vadd.xlane.f32.xlu1 %v3302_v52 }
0x17ad   :  { %v6931_v53 = vpop.eup %6930 }
0x17ae   :  { %v3528_v46 = vsel %vm1086_vm6, %v6931_v53, 0.0 }
0x17af   :  { %3529 = vadd.xlane.f32.xlu0 %v3528_v46 }
0x17b1   :  { %v6933_v55 = vpop.eup %6932 }
0x17b2   :  { %v3531_v56 = vsel %vm1086_vm6, %v6933_v55, 0.0 }
0x17b3   :  { %3532 = vadd.xlane.f32.xlu1 %v3531_v56 }
0x17b5   :  { %v6935_v3 = vpop.eup %6934 }
0x17b6   :  { %v3534_v60 = vsel %vm1093_vm7, %v6935_v3, 0.0 }
0x17b7   :  { %3535 = vadd.xlane.f32.xlu0 %v3534_v60 }
0x17c4   :  { %3545 = vrot.lane.b32.xlu1 %v8341_v43, %s7445_s16 }
0x17c8   :  { %3835 = vrot.lane.b32.xlu1 %v8324_v37, %s7434_s21 }
0x17cc   :  { %3833 = vrot.lane.b32.xlu1 %v8317_v28, %s7434_s21 }
0x17cd   :  { %3547 = vrot.lane.b32.xlu0 %v8334_v41, %s7445_s16 }
0x17d0   :  { %3825 = vrot.lane.b32.xlu1 %v8321_v33, %s7446_s19 }
0x17d1   :  { %3831 = vrot.lane.b32.xlu0 %v8321_v33, %s7434_s21  ;;  %s8923_s21 = sld [smem:[#allocation56_spill]] }
0x17d4   :  { %3829 = vrot.lane.b32.xlu1 %v8324_v37, %s7446_s19 }
0x17d5   :  { %3827 = vrot.lane.b32.xlu0 %v8317_v28, %s7446_s19 }
0x182c   :  { %v3298_v42 = vpop.xlane.xlu1 %3297 }
0x182d   :  { %6936 = vrcp.f32 %v3298_v42 }
0x1830   :  { %v3301_v49 = vpop.xlane.xlu0 %3300 }
0x1831   :  { %6938 = vrcp.f32 %v3301_v49 }
0x1834   :  { %v3304_v62 = vpop.xlane.xlu1 %3303 }
0x1835   :  { %6940 = vrcp.f32 %v3304_v62 }
0x1838   :  { %v3530_v1 = vpop.xlane.xlu0 %3529 }
0x1839   :  { %6942 = vrcp.f32 %v3530_v1 }
0x183a   :  { %v6937_v2 = vpop.eup %6936 }
0x183b   :  { %v3308_v4 = vmul.f32 %v6937_v2, %v6925_v34 }
0x183c   :  { %v3533_v7 = vpop.xlane.xlu1 %3532 }
0x183d   :  { %6944 = vrcp.f32 %v3533_v7  ;;  %6575 = vmatmul.mubr.msk.f32.vlgmr.msra.gmra.mxu0 %vm1086_vm6, %v3308_v4 }
0x183e   :  { %v6939_v9 = vpop.eup %6938  ;;  %6599 = vmatpush3.msk.msra.mxu0 %vm1130_vm5, %v3550_v35  ;;  %6577 = vmatprep.mubr.msk.f32.mxu0 %vm7443_vm3, %v7441_v8 }
0x183f   :  { %v3309_v10 = vmul.f32 %v6939_v9, %v6927_v47  ;;  %6600 = vmatprep.subr.mxu0 %v7441_v8 }
0x1840   :  { %v3536_v12 = vpop.xlane.xlu0 %3535  ;;  %v3546_v23 = vpop.permute.xlu1 %3545 }
0x1841   :  { %6946 = vrcp.f32 %v3536_v12  ;;  %6578 = vmatmul.mubr.msk.f32.gmra.mxu0 %vm1086_vm6, %v3309_v10 }
0x1842   :  { %v6941_v54 = vpop.eup %6940  ;;  %6580 = vmatprep.mubr.msk.f32.mxu0 %vm7443_vm3, %v7441_v8 }
0x1843   :  { %v3310_v57 = vmul.f32 %v6941_v54, %v6929_v15 }
0x1844   :  { %v3548_v6 = vpop.permute.xlu0 %3547  ;;  %v3836_v31 = vpop.permute.xlu1 %3835 }
0x1845   :  { %6581 = vmatmul.mubr.msk.f32.gmra.mxu0 %vm1086_vm6, %v3310_v57  ;;  %6748 = vmatpush3.msra.mxu1 %v3548_v6 }
0x1846   :  { %v6943_v58 = vpop.eup %6942  ;;  %6601 = vmatpush3.msra.mxu0 %v3548_v6  ;;  %6746 = vmatprep.subr.mxu1 %v7441_v8 }
0x1847   :  { %v3540_v26 = vmul.f32 %v6943_v58, %v6931_v53  ;;  %6602 = vmatprep.subr.mxu0 %v7441_v8  ;;  %6749 = vmatpush3.msra.mxu1 %v3546_v23 }
0x1848   :  { %6603 = vmatpush3.msra.mxu0 %v3546_v23  ;;  %6604 = vmatprep.mubr.msk.f32.mxu0 %vm7443_vm3, %v7441_v8  ;;  %v3834_v11 = vpop.permute.xlu1 %3833  ;;  %v3832_v40 = vpop.permute.xlu0 %3831 }
0x1849   :  { %6605 = vmatmul.mubr.msk.f32.vlgmr.msra.gmra.mxu0 %vm1086_vm6, %v3540_v26  ;;  %6626 = vmatprep.subr.mxu0 %v7441_v8 }
0x184a   :  { %v6945_v16 = vpop.eup %6944  ;;  %6607 = vmatprep.mubr.msk.f32.mxu0 %vm7443_vm3, %v7441_v8  ;;  %6627 = vmatpush3.msra.mxu0 %v5756_v19 }
0x184b   :  { %v3541_v13 = vmul.f32 %v6945_v16, %v6933_v55  ;;  %6628 = vmatprep.subr.mxu0 %v7441_v8  ;;  %6613 = vmatprep.subr.mxu1 %v7441_v8 }
0x184c   :  { %6629 = vmatpush3.msra.mxu0 %v5755_v18  ;;  %v3826_v50 = vpop.permute.xlu1 %3825  ;;  %v3828_v51 = vpop.permute.xlu0 %3827 }
0x184d   :  { %6608 = vmatmul.mubr.msk.f32.gmra.mxu0 %vm1086_vm6, %v3541_v13  ;;  %6654 = vmatprep.subr.mxu0 %v7441_v8 }
0x184e   :  { %v6947_v5 = vpop.eup %6946  ;;  %6630 = vmatprep.mubr.msk.f32.mxu0 %vm7443_vm3, %v7441_v8 }
0x184f   :  { %v3542_v17 = vmul.f32 %v6947_v5, %v6935_v3 }
0x1850   :  { %v3830_v15 = vpop.permute.xlu1 %3829 }
0x1851   :  { %6611 = vmatmul.mubr.msk.f32.vlgmr.msra.gmra.mxu1 %vm1086_vm6, %v3542_v17 }
0x1852   :  { %6617 = vmatprep.mubr.msk.f32.mxu1 %vm7443_vm3, %v7441_v8  ;;  %6614 = vmatpush3.msra.mxu1 %v5768_v20 }
0x1853   :  { %6615 = vmatprep.subr.mxu1 %v7441_v8 }
0x1854   :  { %6616 = vmatpush3.msra.mxu1 %v5767_v22 }
0x1855   :  { %6639 = vmatprep.subr.mxu1 %v7441_v8 }
0x18fd   :  { %v3389_v14 = vpop.f32.mrf.mxu0 }
0x18fe   :  { %6631 = vmatmul.mubr.msk.f32.vlgmr.msra.gmra.mxu0 %vm993_vm4, %v3389_v14 }
0x18ff   :  { %v6576_v24 = vpop.f32.mrf.mxu0  ;;  %6633 = vmatprep.mubr.msk.f32.mxu0 %vm7443_vm3, %v7441_v8 }
0x1901   :  { %v3394_v25 = vpop.f32.mrf.mxu0 }
0x1902   :  { %6634 = vmatmul.mubr.msk.f32.gmra.mxu0 %vm993_vm4, %v3394_v25 }
0x1903   :  { %v6579_v29 = vpop.f32.mrf.mxu0  ;;  %6636 = vmatprep.mubr.msk.f32.mxu0 %vm7443_vm3, %v7441_v8 }
0x1905   :  { %v3399_v27 = vpop.f32.mrf.mxu0 }
0x1906   :  { %6637 = vmatmul.mubr.msk.f32.gmra.mxu0 %vm993_vm4, %v3399_v27 }
0x1907   :  { %v6582_v30 = vpop.f32.mrf.mxu0  ;;  %6660 = vmatprep.mubr.msk.f32.mxu0 %vm7443_vm3, %v7441_v8 }
0x1909   :  { %v3630_v32 = vpop.f32.mrf.mxu0 }
0x190a   :  { %6618 = vmatmul.mubr.msk.f32.vlgmr.msra.gmra.mxu1 %vm993_vm4, %v3630_v32 }
0x190b   :  { %6640 = vmatpush3.xpose.msk.msra.mxu1 %vm993_vm4, %v3836_v31  ;;  %v6606_v34 = vpop.f32.mrf.mxu0  ;;  %6620 = vmatprep.mubr.msk.f32.mxu1 %vm7443_vm3, %v7441_v8 }
0x190c   :  { %6641 = vmatprep.subr.mxu1 %v7441_v8 }
0x190d   :  { %v3635_v38 = vpop.f32.mrf.mxu0 }
0x190e   :  { %6621 = vmatmul.mubr.msk.f32.gmra.mxu1 %vm993_vm4, %v3635_v38 }
0x190f   :  { %6642 = vmatpush3.xpose.msk.msra.mxu1 %vm993_vm4, %v3834_v11  ;;  %v6609_v44 = vpop.f32.mrf.mxu0  ;;  %6623 = vmatprep.mubr.msk.f32.mxu1 %vm7443_vm3, %v7441_v8 }
0x1910   :  { %6643 = vmatprep.subr.mxu1 %v7441_v8 }
0x1911   :  { %v3640_v35 = vpop.f32.mrf.mxu1 }
0x1912   :  { %6624 = vmatmul.mubr.msk.f32.gmra.mxu1 %vm993_vm4, %v3640_v35 }
0x1913   :  { %6644 = vmatpush3.xpose.msk.msra.mxu1 %vm993_vm4, %v3832_v40  ;;  %v6612_v47 = vpop.f32.mrf.mxu1  ;;  %6645 = vmatprep.mubr.msk.f32.mxu1 %vm7443_vm3, %v7441_v8 }
0x1914   :  { %6669 = vmatprep.subr.mxu1 %v7441_v8  ;;  %v5786_v47 = vld [vmem:[%s8917_s12 + $0x68] sm:$0xff] }
0x1916   :  { %6646 = vmatmul.mubr.msk.f32.vlgmr.msra.gmra.mxu1 %vm993_vm4, %v3826_v50 }
0x1917   :  { %6648 = vmatprep.mubr.msk.f32.mxu1 %vm7443_vm3, %v7441_v8  ;;  %6670 = vmatpush3.msra.mxu1 %v5786_v47 }
0x1918   :  { %6671 = vmatprep.subr.mxu1 %v7441_v8 }
0x191a   :  { %6649 = vmatmul.mubr.msk.f32.gmra.mxu1 %vm993_vm4, %v3828_v51 }
0x191b   :  { %6651 = vmatprep.mubr.msk.f32.mxu1 %vm7443_vm3, %v7441_v8 }
0x191e   :  { %6652 = vmatmul.mubr.msk.f32.gmra.mxu1 %vm993_vm4, %v3830_v15 }
0x191f   :  { %6673 = vmatprep.mubr.msk.f32.mxu1 %vm7443_vm3, %v7441_v8 }
0x19be   :  { %v3811_v52 = vpop.f32.mrf.mxu0 }
0x19c0   :  { %v6632_v53 = vpop.f32.mrf.mxu0 }
0x19c2   :  { %v3816_v46 = vpop.f32.mrf.mxu0 }
0x19c4   :  { %v6635_v55 = vpop.f32.mrf.mxu0 }
0x19c6   :  { %v3821_v56 = vpop.f32.mrf.mxu0 }
0x19c8   :  { %v6638_v3 = vpop.f32.mrf.mxu0 }
0x19ca   :  { %v3722_v60 = vpop.f32.mrf.mxu1 }
0x19cb   :  { %v8500_v42 = vadd.f32 %v3811_v52, %v3722_v60 }
0x19cc   :  { %v6619_v49 = vpop.f32.mrf.mxu1 }
0x19ce   :  { %v3727_v62 = vpop.f32.mrf.mxu1 }
0x19cf   :  { %v8502_v1 = vadd.f32 %v3816_v46, %v3727_v62 }
0x19d0   :  { %v6622_v2 = vpop.f32.mrf.mxu1 }
0x19d1   :  { %v5785_v2 = vld [vmem:[%s8917_s12 + $0x60] sm:$0xff] }
0x19d2   :  { %v3732_v4 = vpop.f32.mrf.mxu1  ;;  %6672 = vmatpush3.msra.mxu1 %v5785_v2 }
0x19d3   :  { %v8504_v7 = vadd.f32 %v3821_v56, %v3732_v4  ;;  %6697 = vmatprep.subr.mxu1 %v7441_v8 }
0x19d4   :  { %v6625_v9 = vpop.f32.mrf.mxu1 }
0x19d6   :  { %v3915_v10 = vpop.f32.mrf.mxu1 }
0x19d7   :  { %v3916_v12 = vadd.f32 %v8389_v48, %v3915_v10 }
0x19d8   :  { %v6647_v54 = vpop.f32.mrf.mxu1 }
0x19d9   :  { %v3929_v57 = vsel %vm1086_vm6, %v3916_v12, -inf }
0x19da   :  { %3930 = vmax.xlane.f32.xlu0 %v3929_v57  ;;  %v3920_v6 = vpop.f32.mrf.mxu1 }
0x19db   :  { %v3921_v58 = vadd.f32 %v8394_v59, %v3920_v6 }
0x19dc   :  { %v6650_v23 = vpop.f32.mrf.mxu1 }
0x19dd   :  { %v3932_v26 = vsel %vm1086_vm6, %v3921_v58, -inf }
0x19de   :  { %3933 = vmax.xlane.f32.xlu1 %v3932_v26  ;;  %v3925_v19 = vpop.f32.mrf.mxu1 }
0x19df   :  { %v3926_v16 = vadd.f32 %v8399_v0, %v3925_v19 }
0x19e0   :  { %v6653_v13 = vpop.f32.mrf.mxu1 }
0x19e1   :  { %v3935_v5 = vsel %vm1093_vm7, %v3926_v16, -inf }
0x19e2   :  { %3936 = vmax.xlane.f32.xlu0 %v3935_v5 }
0x19ef   :  { %3964 = vrot.lane.b32.xlu1 %v8334_v41, %s7446_s19 }
0x19f3   :  { %3962 = vrot.lane.b32.xlu1 %v8341_v43, %s7446_s19 }
0x19f7   :  { %4166 = vrot.lane.b32.xlu1 %v8324_v37, %s7423_s13 }
0x19f8   :  { %3966 = vrot.lane.b32.xlu0 %v8326_v39, %s7446_s19 }
0x19fb   :  { %4162 = vrot.lane.b32.xlu1 %v8321_v33, %s7423_s13 }
0x1a63   :  { %v3931_v17 = vpop.xlane.xlu0 %3930 }
0x1a64   :  { %v3938_v18 = vsub.f32 %v3916_v12, %v3931_v17 }
0x1a66   :  { %v3941_v20 = vmul.f32 1.442695, %v3938_v18 }
0x1a67   :  { %v3934_v22 = vpop.xlane.xlu1 %3933 }
0x1a68   :  { %6948 = vpow2.f32 %v3941_v20  ;;  %v3939_v14 = vsub.f32 %v3921_v58, %v3934_v22 }
0x1a6a   :  { %v3943_v24 = vmul.f32 1.442695, %v3939_v14 }
0x1a6b   :  { %v3937_v25 = vpop.xlane.xlu0 %3936  ;;  %v3965_v27 = vpop.permute.xlu1 %3964 }
0x1a6c   :  { %6950 = vpow2.f32 %v3943_v24  ;;  %v3940_v29 = vsub.f32 %v3926_v16, %v3937_v25 }
0x1a6e   :  { %v3945_v30 = vmul.f32 1.442695, %v3940_v29 }
0x1a6f   :  { %v3967_v31 = vpop.permute.xlu0 %3966  ;;  %v3963_v32 = vpop.permute.xlu1 %3962 }
0x1a70   :  { %6952 = vpow2.f32 %v3945_v30  ;;  %6655 = vmatpush3.msk.msra.mxu0 %vm1130_vm5, %v3967_v31 }
0x1a71   :  { %6656 = vmatprep.subr.mxu0 %v7441_v8 }
0x1a72   :  { %6657 = vmatpush3.msra.mxu0 %v3965_v27 }
0x1a73   :  { %6658 = vmatprep.subr.mxu0 %v7441_v8  ;;  %v4167_v50 = vpop.permute.xlu1 %4166 }
0x1a74   :  { %6659 = vmatpush3.msra.mxu0 %v3963_v32 }
0x1a75   :  { %v6949_v34 = vpop.eup %6948  ;;  %6682 = vmatprep.subr.mxu0 %v7441_v8 }
0x1a76   :  { %v3947_v38 = vsel %vm1086_vm6, %v6949_v34, 0.0 }
0x1a77   :  { %3948 = vadd.xlane.f32.xlu0 %v3947_v38  ;;  %v4163_v15 = vpop.permute.xlu1 %4162 }
0x1a79   :  { %v6951_v11 = vpop.eup %6950 }
0x1a7a   :  { %v3950_v44 = vsel %vm1086_vm6, %v6951_v11, 0.0 }
0x1a7b   :  { %3951 = vadd.xlane.f32.xlu0 %v3950_v44 }
0x1a7d   :  { %v6953_v35 = vpop.eup %6952 }
0x1a7e   :  { %v3953_v40 = vsel %vm1093_vm7, %v6953_v35, 0.0 }
0x1a7f   :  { %3954 = vadd.xlane.f32.xlu1 %v3953_v40 }
0x1a90   :  { %4158 = vrot.lane.b32.xlu1 %v8317_v28, %s7447_s22 }
0x1a91   :  { %4164 = vrot.lane.b32.xlu0 %v8317_v28, %s7423_s13  ;;  %s8922_s13 = sld [smem:[#allocation54_spill]] }
0x1a95   :  { %4156 = vrot.lane.b32.xlu0 %v8321_v33, %s7447_s22 }
0x1a99   :  { %4160 = vrot.lane.b32.xlu0 %v8324_v37, %s7447_s22 }
0x1b00   :  { %v3949_v51 = vpop.xlane.xlu0 %3948 }
0x1b01   :  { %6954 = vrcp.f32 %v3949_v51 }
0x1b04   :  { %v3952_v52 = vpop.xlane.xlu0 %3951 }
0x1b05   :  { %6956 = vrcp.f32 %v3952_v52 }
0x1b08   :  { %v3955_v53 = vpop.xlane.xlu1 %3954  ;;  %v4165_v55 = vpop.permute.xlu0 %4164 }
0x1b09   :  { %6958 = vrcp.f32 %v3955_v53 }
0x1b0c   :  { %v4157_v60 = vpop.permute.xlu0 %4156  ;;  %v4159_v49 = vpop.permute.xlu1 %4158 }
0x1b0e   :  { %v6955_v46 = vpop.eup %6954 }
0x1b0f   :  { %v3959_v28 = vmul.f32 %v6955_v46, %v6949_v34 }
0x1b10   :  { %v4161_v62 = vpop.permute.xlu0 %4160 }
0x1b11   :  { %6661 = vmatmul.mubr.msk.f32.vlgmr.msra.gmra.mxu0 %vm1086_vm6, %v3959_v28  ;;  %v5801_v28 = vld [vmem:[%s8917_s12 + $0x78] sm:$0xff] }
0x1b12   :  { %v6957_v33 = vpop.eup %6956  ;;  %6683 = vmatpush3.xpose.msk.msra.mxu0 %vm993_vm4, %v4167_v50  ;;  %6663 = vmatprep.mubr.msk.f32.mxu0 %vm7443_vm3, %v7441_v8 }
0x1b13   :  { %6684 = vmatprep.subr.mxu0 %v7441_v8  ;;  %v3960_v37 = vmul.f32 %v6957_v33, %v6951_v11  ;;  %v5800_v33 = vld [vmem:[%s8917_s12 + $0x70] sm:$0xff] }
0x1b15   :  { %6664 = vmatmul.mubr.msk.f32.gmra.mxu0 %vm1086_vm6, %v3960_v37 }
0x1b16   :  { %v6959_v56 = vpop.eup %6958  ;;  %6685 = vmatpush3.xpose.msk.msra.mxu0 %vm993_vm4, %v4165_v55  ;;  %6666 = vmatprep.mubr.msk.f32.mxu0 %vm7443_vm3, %v7441_v8 }
0x1b17   :  { %6686 = vmatprep.subr.mxu0 %v7441_v8  ;;  %v3961_v3 = vmul.f32 %v6959_v56, %v6953_v35 }
0x1b19   :  { %6667 = vmatmul.mubr.msk.f32.gmra.mxu0 %vm1086_vm6, %v3961_v3 }
0x1b1a   :  { %6687 = vmatpush3.xpose.msk.msra.mxu0 %vm993_vm4, %v4163_v15  ;;  %6688 = vmatprep.mubr.msk.f32.mxu0 %vm7443_vm3, %v7441_v8 }
0x1b1b   :  { %6712 = vmatprep.subr.mxu0 %v7441_v8 }
0x1b1d   :  { %6689 = vmatmul.mubr.msk.f32.vlgmr.msra.gmra.mxu0 %vm993_vm4, %v4157_v60 }
0x1b1e   :  { %6691 = vmatprep.mubr.msk.f32.mxu0 %vm7443_vm3, %v7441_v8  ;;  %6713 = vmatpush3.msra.mxu0 %v5801_v28  ;;  %v5815_v28 = vld [vmem:[%s8918_s3 + $0xb8] sm:$0xff] }
0x1b1f   :  { %6714 = vmatprep.subr.mxu0 %v7441_v8 }
0x1b20   :  { %6715 = vmatpush3.msra.mxu0 %v5800_v33  ;;  %v5814_v33 = vld [vmem:[%s8918_s3 + $0xb0] sm:$0xff] }
0x1b21   :  { %6692 = vmatmul.mubr.msk.f32.gmra.mxu0 %vm993_vm4, %v4159_v49 }
0x1b22   :  { %6694 = vmatprep.mubr.msk.f32.mxu0 %vm7443_vm3, %v7441_v8 }
0x1b25   :  { %6695 = vmatmul.mubr.msk.f32.gmra.mxu0 %vm993_vm4, %v4161_v62 }
0x1b26   :  { %6716 = vmatprep.mubr.msk.f32.mxu0 %vm7443_vm3, %v7441_v8 }
0x1bd1   :  { %v4047_v4 = vpop.f32.mrf.mxu0 }
0x1bd2   :  { %6674 = vmatmul.mubr.msk.f32.vlgmr.msra.gmra.mxu1 %vm993_vm4, %v4047_v4 }
0x1bd3   :  { %v6662_v9 = vpop.f32.mrf.mxu0  ;;  %6676 = vmatprep.mubr.msk.f32.mxu1 %vm7443_vm3, %v7441_v8 }
0x1bd5   :  { %v4052_v10 = vpop.f32.mrf.mxu0 }
0x1bd6   :  { %6677 = vmatmul.mubr.msk.f32.gmra.mxu1 %vm993_vm4, %v4052_v10 }
0x1bd7   :  { %v6665_v12 = vpop.f32.mrf.mxu0  ;;  %6679 = vmatprep.mubr.msk.f32.mxu1 %vm7443_vm3, %v7441_v8 }
0x1bd9   :  { %v4057_v54 = vpop.f32.mrf.mxu0 }
0x1bda   :  { %6680 = vmatmul.mubr.msk.f32.gmra.mxu1 %vm993_vm4, %v4057_v54 }
0x1bdb   :  { %v6668_v57 = vpop.f32.mrf.mxu0  ;;  %6703 = vmatprep.mubr.msk.f32.mxu1 %vm7443_vm3, %v7441_v8 }
0x1bdd   :  { %v4246_v6 = vpop.f32.mrf.mxu0 }
0x1bde   :  { %v4247_v58 = vadd.f32 %v8389_v48, %v4246_v6  ;;  %v5805_v6 = vld [vmem:[#allocation14 + $0x1] ss:$0 sm:$0xff] }
0x1bdf   :  { %v6690_v23 = vpop.f32.mrf.mxu0 }
0x1be0   :  { %v4260_v26 = vsel %vm1086_vm6, %v4247_v58, -inf }
0x1be1   :  { %4261 = vmax.xlane.f32.xlu1 %v4260_v26  ;;  %v4251_v19 = vpop.f32.mrf.mxu0 }
0x1be2   :  { %v4252_v16 = vadd.f32 %v8394_v59, %v4251_v19 }
0x1be3   :  { %v6693_v13 = vpop.f32.mrf.mxu0 }
0x1be4   :  { %v4263_v5 = vsel %vm1086_vm6, %v4252_v16, -inf }
0x1be5   :  { %4264 = vmax.xlane.f32.xlu0 %v4263_v5  ;;  %v4256_v17 = vpop.f32.mrf.mxu0 }
0x1be6   :  { %v4257_v18 = vadd.f32 %v8399_v0, %v4256_v17 }
0x1be7   :  { %v6696_v20 = vpop.f32.mrf.mxu0 }
0x1be8   :  { %v4266_v22 = vsel %vm1093_vm7, %v4257_v18, -inf }
0x1be9   :  { %4267 = vmax.xlane.f32.xlu0 %v4266_v22 }
0x1bf2   :  { %4297 = vrot.lane.b32.xlu1 %v8326_v39, %s7447_s22 }
0x1c6a   :  { %v4262_v48 = vpop.xlane.xlu1 %4261 }
0x1c6b   :  { %v4269_v14 = vsub.f32 %v4247_v58, %v4262_v48 }
0x1c6d   :  { %v4272_v24 = vmul.f32 1.442695, %v4269_v14 }
0x1c6e   :  { %v4298_v25 = vpop.permute.xlu1 %4297  ;;  %v4265_v29 = vpop.xlane.xlu0 %4264 }
0x1c6f   :  { %6960 = vpow2.f32 %v4272_v24  ;;  %v4270_v59 = vsub.f32 %v4252_v16, %v4265_v29  ;;  %6698 = vmatpush3.msk.msra.mxu1 %vm1130_vm5, %v4298_v25 }
0x1c70   :  { %6699 = vmatprep.subr.mxu1 %v7441_v8 }
0x1c71   :  { %v4274_v27 = vmul.f32 1.442695, %v4270_v59 }
0x1c72   :  { %v4268_v0 = vpop.xlane.xlu0 %4267 }
0x1c73   :  { %6962 = vpow2.f32 %v4274_v27  ;;  %v4271_v30 = vsub.f32 %v4257_v18, %v4268_v0 }
0x1c75   :  { %v4276_v31 = vmul.f32 1.442695, %v4271_v30 }
0x1c77   :  { %6964 = vpow2.f32 %v4276_v31 }
0x1c7c   :  { %v6961_v32 = vpop.eup %6960 }
0x1c7d   :  { %v4278_v39 = vsel %vm1086_vm6, %v6961_v32, 0.0 }
0x1c7e   :  { %4279 = vadd.xlane.f32.xlu0 %v4278_v39 }
0x1c80   :  { %v6963_v34 = vpop.eup %6962 }
0x1c81   :  { %v4281_v38 = vsel %vm1086_vm6, %v6963_v34, 0.0 }
0x1c82   :  { %4282 = vadd.xlane.f32.xlu1 %v4281_v38 }
0x1c84   :  { %v6965_v11 = vpop.eup %6964 }
0x1c85   :  { %v4284_v44 = vsel %vm1093_vm7, %v6965_v11, 0.0 }
0x1c86   :  { %4285 = vadd.xlane.f32.xlu0 %v4284_v44 }
0x1c92   :  { %v4139_v35 = vpop.f32.mrf.mxu1 }
0x1c93   :  { %v4153_v40 = vadd.f32 %v4139_v35, %v8500_v42  ;;  %4293 = vrot.lane.b32.xlu1 %v8341_v43, %s7447_s22 }
0x1c94   :  { %v6675_v47 = vpop.f32.mrf.mxu1 }
0x1c95   :  { %v5822_v47 = vld [vmem:[%s8918_s3 + $0xf0] sm:$0xff] }
0x1c96   :  { %v4144_v50 = vpop.f32.mrf.mxu1 }
0x1c97   :  { %v4154_v51 = vadd.f32 %v4144_v50, %v8502_v1  ;;  %v5821_v50 = vld [vmem:[%s8918_s3 + $0xe8] sm:$0xff] }
0x1c98   :  { %v6678_v15 = vpop.f32.mrf.mxu1 }
0x1c99   :  { %v5819_v15 = vld [vmem:[%s8918_s3 + $0xd8] sm:$0xff] }
0x1c9a   :  { %v4149_v52 = vpop.f32.mrf.mxu1 }
0x1c9b   :  { %v4155_v53 = vadd.f32 %v4149_v52, %v8504_v7  ;;  %v5818_v52 = vld [vmem:[%s8918_s3 + $0xd0] sm:$0xff] }
0x1c9c   :  { %v6681_v46 = vpop.f32.mrf.mxu1  ;;  %4295 = vrot.lane.b32.xlu0 %v8334_v41, %s7447_s22 }
0x1c9d   :  { %v5816_v46 = vld [vmem:[%s8918_s3 + $0xc0] sm:$0xff] }
0x1d07   :  { %v4280_v42 = vpop.xlane.xlu0 %4279 }
0x1d08   :  { %6966 = vrcp.f32 %v4280_v42  ;;  %v5813_v42 = vld [vmem:[%s8918_s3 + $0xa8] sm:$0xff] }
0x1d0b   :  { %v4283_v43 = vpop.xlane.xlu1 %4282 }
0x1d0c   :  { %6968 = vrcp.f32 %v4283_v43  ;;  %v5812_v43 = vld [vmem:[%s8918_s3 + $0xa0] sm:$0xff] }
0x1d0f   :  { %v4286_v37 = vpop.xlane.xlu0 %4285  ;;  %v4294_v7 = vpop.permute.xlu1 %4293 }
0x1d10   :  { %6970 = vrcp.f32 %v4286_v37  ;;  %v5811_v37 = vld [vmem:[%s8918_s3 + $0x98] sm:$0xff] }
0x1d13   :  { %v4296_v1 = vpop.permute.xlu0 %4295 }
0x1d14   :  { %6700 = vmatpush3.msra.mxu1 %v4296_v1  ;;  %v5810_v1 = vld [vmem:[%s8918_s3 + $0x90] sm:$0xff] }
0x1d15   :  { %v6967_v55 = vpop.eup %6966  ;;  %6701 = vmatprep.subr.mxu1 %v7441_v8 }
0x1d16   :  { %v4290_v56 = vmul.f32 %v6967_v55, %v6961_v32  ;;  %6702 = vmatpush3.msra.mxu1 %v4294_v7  ;;  %v5809_v55 = vld [vmem:[%s8918_s3 + $0x88] sm:$0xff]  ;;  %v5808_v7 = vld [vmem:[%s8918_s3 + $0x80] sm:$0xff] }
0x1d18   :  { %6704 = vmatmul.mubr.msk.f32.vlgmr.msra.gmra.mxu1 %vm1086_vm6, %v4290_v56 }
0x1d19   :  { %v6969_v41 = vpop.eup %6968  ;;  %6706 = vmatprep.mubr.msk.f32.mxu1 %vm7443_vm3, %v7441_v8 }
0x1d1a   :  { %v4291_v3 = vmul.f32 %v6969_v41, %v6963_v34 }
0x1d1c   :  { %6707 = vmatmul.mubr.msk.f32.gmra.mxu1 %vm1086_vm6, %v4291_v3 }
0x1d1d   :  { %v6971_v60 = vpop.eup %6970  ;;  %6709 = vmatprep.mubr.msk.f32.mxu1 %vm7443_vm3, %v7441_v8 }
0x1d1e   :  { %v4292_v49 = vmul.f32 %v6971_v60, %v6965_v11 }
0x1d20   :  { %6710 = vmatmul.mubr.msk.f32.gmra.mxu1 %vm1086_vm6, %v4292_v49 }
0x1d21   :  { %4665 = vmatprep.mubr.f32.mxu1 %v7441_v8 }
0x1dd8   :  { %v4378_v62 = vpop.f32.mrf.mxu1 }
0x1dd9   :  { %6717 = vmatmul.mubr.msk.f32.vlgmr.msra.gmra.mxu0 %vm993_vm4, %v4378_v62 }
0x1dda   :  { %v6705_v2 = vpop.f32.mrf.mxu1  ;;  %6719 = vmatprep.mubr.msk.f32.mxu0 %vm7443_vm3, %v7441_v8 }
0x1ddc   :  { %v4383_v4 = vpop.f32.mrf.mxu1 }
0x1ddd   :  { %6720 = vmatmul.mubr.msk.f32.gmra.mxu0 %vm993_vm4, %v4383_v4 }
0x1dde   :  { %v6708_v9 = vpop.f32.mrf.mxu1  ;;  %6722 = vmatprep.mubr.msk.f32.mxu0 %vm7443_vm3, %v7441_v8 }
0x1de0   :  { %v4388_v10 = vpop.f32.mrf.mxu1 }
0x1de1   :  { %6723 = vmatmul.mubr.msk.f32.gmra.mxu0 %vm993_vm4, %v4388_v10 }
0x1de2   :  { %v6711_v12 = vpop.f32.mrf.mxu1 }
0x1de3   :  { %v5806_v12 = vld [vmem:[#allocation16 + $0x1] ss:$0 sm:$0xff] }
0x1e99   :  { %v4470_v54 = vpop.f32.mrf.mxu0 }
0x1e9a   :  { %v4484_v57 = vadd.f32 %v4470_v54, %v4153_v40  ;;  %v5823_v40 = vld [vmem:[%s8918_s3 + $0xf8] sm:$0xff] }
0x1e9b   :  { %v6718_v58 = vpop.f32.mrf.mxu0  ;;  %4617 = vmatprep.subr.mxu1 %v5823_v40  ;;  %v5833_v40 = vld [vmem:[%s8919_s23 + $0x130] sm:$0xff] }
0x1e9c   :  { %v4487_v23 = vadd.f32 %v4484_v57, %v8206_v21  ;;  %4618 = vmatpush1.msra.mxu1 %v5822_v47  ;;  %v5807_v57 = vld [vmem:[#allocation17 + $0x1] ss:$0 sm:$0xff]  ;;  %v5848_v47 = vld [vmem:[%s8919_s23 + $0x1a8] sm:$0xff] }
0x1e9d   :  { %v4475_v26 = vpop.f32.mrf.mxu0  ;;  %4619 = vmatprep.subr.mxu1 %v5821_v50  ;;  %v5832_v50 = vld [vmem:[%s8919_s23 + $0x128] sm:$0xff] }
0x1e9e   :  { %v8614_v19 = vadd.f32 %v5805_v6, %v4487_v23  ;;  %v4485_v16 = vadd.f32 %v4475_v26, %v4154_v51  ;;  %v5820_v51 = vld [vmem:[%s8918_s3 + $0xe0] sm:$0xff] }
0x1e9f   :  { %v6721_v13 = vpop.f32.mrf.mxu0  ;;  %4620 = vmatpush1.msra.mxu1 %v5820_v51  ;;  %v5847_v51 = vld [vmem:[%s8919_s23 + $0x1a0] sm:$0xff] }
0x1ea0   :  { %v4488_v5 = vadd.f32 %v4485_v16, %v8214_v36  ;;  %v4505_v17 = vsel %vm357_vm0, %v8614_v19, 0.0  ;;  %4621 = vmatprep.subr.mxu1 %v5819_v15  ;;  %v5831_v15 = vld [vmem:[%s8919_s23 + $0x120] sm:$0xff] }
0x1ea1   :  { %4506 = vadd.xlane.f32.xlu1 %v4505_v17  ;;  %v4480_v18 = vpop.f32.mrf.mxu0  ;;  %4622 = vmatpush1.msra.mxu1 %v5818_v52  ;;  %v5846_v52 = vld [vmem:[%s8919_s23 + $0x198] sm:$0xff] }
0x1ea2   :  { %v8619_v20 = vadd.f32 %v5805_v6, %v4488_v5  ;;  %v4486_v22 = vadd.f32 %v4480_v18, %v4155_v53  ;;  %v5817_v53 = vld [vmem:[%s8918_s3 + $0xc8] sm:$0xff] }
0x1ea3   :  { %v6724_v48 = vpop.f32.mrf.mxu0  ;;  %4623 = vmatprep.subr.mxu1 %v5817_v53  ;;  %v5830_v53 = vld [vmem:[%s8919_s23 + $0x118] sm:$0xff] }
0x1ea4   :  { %v4489_v14 = vadd.f32 %v4486_v22, %v8222_v61  ;;  %v4508_v21 = vsel %vm357_vm0, %v8619_v20, 0.0  ;;  %4624 = vmatpush1.msra.mxu1 %v5816_v46  ;;  %v5858_v48 = vld [vmem:[%s8919_s23 + $0x1f8] sm:$0xff]  ;;  %v5845_v46 = vld [vmem:[%s8919_s23 + $0x190] sm:$0xff] }
0x1ea5   :  { %4509 = vadd.xlane.f32.xlu0 %v4508_v21  ;;  %4625 = vmatprep.subr.mxu1 %v5815_v28  ;;  %v5857_v21 = vld [vmem:[%s8919_s23 + $0x1f0] sm:$0xff] }
0x1ea6   :  { %v8624_v24 = vadd.f32 %v5805_v6, %v4489_v14  ;;  %4626 = vmatpush1.msra.mxu1 %v5814_v33  ;;  %6147 = vmatprep.subr.mxu0 %v5858_v48  ;;  %v5842_v14 = vld [vmem:[%s8919_s23 + $0x178] sm:$0xff]  ;;  %v5829_v28 = vld [vmem:[%s8919_s23 + $0x110] sm:$0xff]  ;;  %v5844_v33 = vld [vmem:[%s8919_s23 + $0x188] sm:$0xff] }
0x1ea7   :  { %4627 = vmatprep.subr.mxu1 %v5813_v42  ;;  %6148 = vmatpush3.msra.mxu0 %v5842_v14  ;;  %v5828_v42 = vld [vmem:[%s8919_s23 + $0x108] sm:$0xff] }
0x1ea8   :  { %v4511_v36 = vsel %vm812_vm2, %v8624_v24, 0.0  ;;  %4628 = vmatpush1.msra.mxu1 %v5812_v43  ;;  %6149 = vmatprep.subr.mxu0 %v5857_v21  ;;  %v5843_v43 = vld [vmem:[%s8919_s23 + $0x180] sm:$0xff] }
0x1ea9   :  { %4512 = vadd.xlane.f32.xlu0 %v4511_v36  ;;  %4629 = vmatprep.subr.mxu1 %v5811_v37  ;;  %v5841_v36 = vld [vmem:[%s8919_s23 + $0x170] sm:$0xff]  ;;  %v5827_v37 = vld [vmem:[%s8919_s23 + $0x100] sm:$0xff] }
0x1eaa   :  { %4630 = vmatpush1.msra.mxu1 %v5810_v1  ;;  %6150 = vmatpush3.msra.mxu0 %v5841_v36  ;;  %v4580_v1 = vld [vmem:[#allocation19 + $0x2] sm:$0x3] }
0x1eab   :  { %4631 = vmatprep.subr.mxu1 %v5809_v55  ;;  %v4585_v55 = vrot.slane %v4580_v1, %v7796_v45 }
0x1eac   :  { %4632 = vmatpush1.msra.mxu1 %v5808_v7  ;;  %v4589_v7 = vrot.slane %v4580_v1, %v7829_v63 }
0x1f2a   :  { %v4507_v25 = vpop.xlane.xlu1 %4506 }
0x1f2b   :  { %v4514_v29 = vmul.f32 0.015625, %v4507_v25  ;;  %v5856_v25 = vld [vmem:[%s8919_s23 + $0x1e8] sm:$0xff] }
0x1f2c   :  { %6151 = vmatprep.subr.mxu0 %v5856_v25 }
0x1f2d   :  { %v4517_v59 = vsub.f32 %v8614_v19, %v4514_v29  ;;  %v5840_v29 = vld [vmem:[%s8919_s23 + $0x168] sm:$0xff] }
0x1f2e   :  { %v4510_v27 = vpop.xlane.xlu0 %4509  ;;  %6152 = vmatpush3.msra.mxu0 %v5840_v29 }
0x1f2f   :  { %v4515_v0 = vmul.f32 0.015625, %v4510_v27  ;;  %v4520_v30 = vmul.f32 %v4517_v59, %v4517_v59  ;;  %v5839_v27 = vld [vmem:[%s8919_s23 + $0x160] sm:$0xff] }
0x1f31   :  { %v8630_v61 = vsub.f32 %v8619_v20, %v4515_v0  ;;  %v4523_v31 = vsel %vm357_vm0, %v4520_v30, 0.0  ;;  %v5854_v0 = vld [vmem:[%s8919_s23 + $0x1d8] sm:$0xff] }
0x1f32   :  { %4524 = vadd.xlane.f32.xlu1 %v4523_v31  ;;  %v4513_v32 = vpop.xlane.xlu0 %4512  ;;  %v5838_v30 = vld [vmem:[%s8919_s23 + $0x158] sm:$0xff]  ;;  %v5837_v31 = vld [vmem:[%s8919_s23 + $0x150] sm:$0xff] }
0x1f33   :  { %v4516_v39 = vmul.f32 0.015625, %v4513_v32  ;;  %v4521_v34 = vmul.f32 %v8630_v61, %v8630_v61  ;;  %v5852_v32 = vld [vmem:[%s8919_s23 + $0x1c8] sm:$0xff] }
0x1f35   :  { %v8636_v38 = vsub.f32 %v8624_v24, %v4516_v39  ;;  %v4526_v11 = vsel %vm357_vm0, %v4521_v34, 0.0  ;;  %v5836_v39 = vld [vmem:[%s8919_s23 + $0x148] sm:$0xff]  ;;  %v5851_v34 = vld [vmem:[%s8919_s23 + $0x1c0] sm:$0xff] }
0x1f36   :  { %4527 = vadd.xlane.f32.xlu0 %v4526_v11  ;;  %v5850_v11 = vld [vmem:[%s8919_s23 + $0x1b8] sm:$0xff] }
0x1f37   :  { %v4522_v44 = vmul.f32 %v8636_v38, %v8636_v38 }
0x1f39   :  { %v4529_v35 = vsel %vm812_vm2, %v4522_v44, 0.0  ;;  %v5834_v44 = vld [vmem:[%s8919_s23 + $0x138] sm:$0xff] }
0x1f3a   :  { %4530 = vadd.xlane.f32.xlu1 %v4529_v35  ;;  %v5849_v35 = vld [vmem:[%s8919_s23 + $0x1b0] sm:$0xff] }
0x1fbb   :  { %v4525_v56 = vpop.xlane.xlu1 %4524 }
0x1fbc   :  { %v4532_v41 = vmul.f32 0.015625, %v4525_v56 }
0x1fbe   :  { %v4535_v3 = vadd.f32 1e-05, %v4532_v41 }
0x1fbf   :  { %v4528_v60 = vpop.xlane.xlu0 %4527 }
0x1fc0   :  { %6972 = vrsqrt.f32 %v4535_v3  ;;  %v4533_v49 = vmul.f32 0.015625, %v4528_v60 }
0x1fc2   :  { %v4536_v62 = vadd.f32 1e-05, %v4533_v49 }
0x1fc3   :  { %v4531_v2 = vpop.xlane.xlu1 %4530 }
0x1fc4   :  { %6974 = vrsqrt.f32 %v4536_v62  ;;  %v4534_v4 = vmul.f32 0.015625, %v4531_v2 }
0x1fc6   :  { %v4537_v9 = vadd.f32 1e-05, %v4534_v4 }
0x1fc8   :  { %6976 = vrsqrt.f32 %v4537_v9 }
0x1fcd   :  { %v6973_v10 = vpop.eup %6972 }
0x1fce   :  { %v4541_v54 = vmul.f32 %v6973_v10, %v4517_v59  ;;  %v5855_v59 = vld [vmem:[%s8919_s23 + $0x1e0] sm:$0xff] }
0x1fcf   :  { %6153 = vmatprep.subr.mxu0 %v5855_v59 }
0x1fd0   :  { %v4550_v6 = vmul.f32 %v5806_v12, %v4541_v54  ;;  %6154 = vmatpush3.msra.mxu0 %v5839_v27 }
0x1fd1   :  { %v6975_v58 = vpop.eup %6974  ;;  %6155 = vmatprep.subr.mxu0 %v5854_v0 }
0x1fd2   :  { %v4559_v23 = vadd.f32 %v5807_v57, %v4550_v6  ;;  %v4542_v26 = vmul.f32 %v6975_v58, %v8630_v61  ;;  %6156 = vmatpush3.msra.mxu0 %v5838_v30  ;;  %v5853_v61 = vld [vmem:[%s8919_s23 + $0x1d0] sm:$0xff] }
0x1fd3   :  { %6157 = vmatprep.subr.mxu0 %v5853_v61 }
0x1fd4   :  { %5824 = vmatmul.mubr.msk.f32.vlgmr.msra.gmra.mxu1 %vm357_vm0, %v4559_v23  ;;  %v4551_v16 = vmul.f32 %v5806_v12, %v4542_v26  ;;  %6158 = vmatpush3.msra.mxu0 %v5837_v31 }
0x1fd5   :  { %v6977_v13 = vpop.eup %6976  ;;  %4671 = vmatprep.mubr.f32.mxu1 %v7441_v8  ;;  %6159 = vmatprep.subr.mxu0 %v5852_v32 }
0x1fd6   :  { %v4560_v5 = vadd.f32 %v5807_v57, %v4551_v16  ;;  %v4543_v17 = vmul.f32 %v6977_v13, %v8636_v38  ;;  %v5835_v38 = vld [vmem:[%s8919_s23 + $0x140] sm:$0xff]  ;;  %6160 = vmatpush3.msra.mxu0 %v5836_v39 }
0x1fd7   :  { %6161 = vmatprep.subr.mxu0 %v5851_v34 }
0x1fd8   :  { %5825 = vmatmul.mubr.msk.f32.gmra.mxu1 %vm357_vm0, %v4560_v5  ;;  %v4552_v18 = vmul.f32 %v5806_v12, %v4543_v17  ;;  %6162 = vmatpush3.msra.mxu0 %v5835_v38 }
0x1fd9   :  { %4677 = vmatprep.mubr.f32.mxu1 %v7441_v8  ;;  %6163 = vmatprep.subr.mxu0 %v5850_v11 }
0x1fda   :  { %v4561_v22 = vadd.f32 %v5807_v57, %v4552_v18  ;;  %6164 = vmatpush3.msra.mxu0 %v5834_v44 }
0x1fdb   :  { %6165 = vmatprep.subr.mxu0 %v5849_v35 }
0x1fdc   :  { %5826 = vmatmul.mubr.msk.f32.gmra.mxu1 %vm357_vm0, %v4561_v22  ;;  %6166 = vmatpush3.msra.mxu0 %v5833_v40 }
0x1fdd   :  { %5025 = vmatprep.mubr.f32.mxu1 %v7441_v8  ;;  %6167 = vmatprep.subr.mxu0 %v5848_v47 }
0x1fde   :  { %6168 = vmatpush3.msra.mxu0 %v5832_v50 }
0x1fdf   :  { %6169 = vmatprep.subr.mxu0 %v5847_v51 }
0x1fe0   :  { %6170 = vmatpush3.msra.mxu0 %v5831_v15 }
0x1fe1   :  { %6171 = vmatprep.subr.mxu0 %v5846_v52 }
0x1fe2   :  { %6172 = vmatpush3.msra.mxu0 %v5830_v53 }
0x1fe3   :  { %6173 = vmatprep.subr.mxu0 %v5845_v46 }
0x1fe4   :  { %6174 = vmatpush3.msra.mxu0 %v5829_v28 }
0x1fe5   :  { %6175 = vmatprep.subr.mxu0 %v5844_v33 }
0x1fe6   :  { %6176 = vmatpush3.msra.mxu0 %v5828_v42 }
0x1fe7   :  { %6177 = vmatprep.subr.mxu0 %v5843_v43 }
0x1fe8   :  { %6178 = vmatpush3.msra.mxu0 %v5827_v37 }
0x2094   :  { %v4667_v56 = vpop.f32.mrf.mxu1 }
0x2095   :  { %v4668_v41 = vadd.f32 %v4667_v56, %v4585_v55 }
0x2096   :  { %v4669_v3 = vpop.f32.mrf.mxu1 }
0x2097   :  { %v4690_v60 = vmul.f32 0.044715, %v4668_v41  ;;  %v4670_v49 = vadd.f32 %v4669_v3, %v4589_v7  ;;  %v4684_v53 = vmul.f32 0.5, %v4668_v41 }
0x2098   :  { %v4673_v62 = vpop.f32.mrf.mxu1 }
0x2099   :  { %v4696_v2 = vmul.f32 %v4690_v60, %v4668_v41  ;;  %v4691_v4 = vmul.f32 0.044715, %v4670_v49  ;;  %v4674_v9 = vadd.f32 %v4673_v62, %v4585_v55  ;;  %v4685_v51 = vmul.f32 0.5, %v4670_v49 }
0x209a   :  { %v4675_v10 = vpop.f32.mrf.mxu1 }
0x209b   :  { %v4702_v12 = vmul.f32 %v4696_v2, %v4668_v41  ;;  %v4697_v54 = vmul.f32 %v4691_v4, %v4670_v49  ;;  %v4692_v57 = vmul.f32 0.044715, %v4674_v9  ;;  %v4676_v6 = vadd.f32 %v4675_v10, %v4589_v7 }
0x209c   :  { %v4679_v58 = vpop.f32.mrf.mxu1 }
0x209d   :  { %v4708_v23 = vadd.f32 %v4702_v12, %v4668_v41  ;;  %v4698_v26 = vmul.f32 %v4692_v57, %v4674_v9  ;;  %v4693_v16 = vmul.f32 0.044715, %v4676_v6  ;;  %v4680_v13 = vadd.f32 %v4679_v58, %v4585_v55 }
0x209e   :  { %v4681_v5 = vpop.f32.mrf.mxu1  ;;  %v4703_v17 = vmul.f32 %v4697_v54, %v4670_v49  ;;  %v4687_v42 = vmul.f32 0.5, %v4676_v6 }
0x209f   :  { %v4714_v18 = vmul.f32 0.7978846, %v4708_v23  ;;  %v4699_v22 = vmul.f32 %v4693_v16, %v4676_v6  ;;  %v4694_v48 = vmul.f32 0.044715, %v4680_v13  ;;  %v4682_v14 = vadd.f32 %v4681_v5, %v4589_v7 }
0x20a0   :  { %v4709_v21 = vadd.f32 %v4703_v17, %v4670_v49  ;;  %v4704_v36 = vmul.f32 %v4698_v26, %v4674_v9  ;;  %v4686_v7 = vmul.f32 0.5, %v4674_v9  ;;  %v4688_v41 = vmul.f32 0.5, %v4680_v13 }
0x20a1   :  { %6978 = vtanh.f32 %v4714_v18  ;;  %v4700_v25 = vmul.f32 %v4694_v48, %v4680_v13  ;;  %v4695_v29 = vmul.f32 0.044715, %v4682_v14  ;;  %v4705_v59 = vmul.f32 %v4699_v22, %v4676_v6 }
0x20a2   :  { %v4715_v27 = vmul.f32 0.7978846, %v4709_v21  ;;  %v4710_v0 = vadd.f32 %v4704_v36, %v4674_v9  ;;  %v4689_v60 = vmul.f32 0.5, %v4682_v14 }
0x20a3   :  { %v4701_v30 = vmul.f32 %v4695_v29, %v4682_v14  ;;  %v4711_v61 = vadd.f32 %v4705_v59, %v4676_v6  ;;  %v4706_v31 = vmul.f32 %v4700_v25, %v4680_v13  ;;  %v5859_v6 = vld [vmem:[#allocation20 + $0x1] ss:$0 sm:$0xff] }
0x20a4   :  { %6980 = vtanh.f32 %v4715_v27  ;;  %v4716_v32 = vmul.f32 0.7978846, %v4710_v0 }
0x20a5   :  { %v4717_v39 = vmul.f32 0.7978846, %v4711_v61  ;;  %v4707_v34 = vmul.f32 %v4701_v30, %v4682_v14  ;;  %v4712_v38 = vadd.f32 %v4706_v31, %v4680_v13  ;;  %v5265_v31 = vld [vmem:[%s8922_s13 + $0x78] sm:$0xff] }
0x20a6   :  { %6982 = vtanh.f32 %v4716_v32  ;;  %5297 = vmatprep.subr.mxu0 %v5265_v31  ;;  %v5264_v32 = vld [vmem:[%s8922_s13 + $0x70] sm:$0xff]  ;;  %v5382_v31 = vld [vmem:[%s8923_s21 + $0x60] sm:$0xff] }
0x20a7   :  { %6984 = vtanh.f32 %v4717_v39  ;;  %v4713_v11 = vadd.f32 %v4707_v34, %v4682_v14  ;;  %v4718_v44 = vmul.f32 0.7978846, %v4712_v38  ;;  %v5263_v39 = vld [vmem:[%s8922_s13 + $0x68] sm:$0xff]  ;;  %v5262_v34 = vld [vmem:[%s8922_s13 + $0x60] sm:$0xff]  ;;  %v5261_v38 = vld [vmem:[%s8922_s13 + $0x58] sm:$0xff] }
0x20a9   :  { %v4719_v35 = vmul.f32 0.7978846, %v4713_v11  ;;  %6986 = vtanh.f32 %v4718_v44  ;;  %v5260_v11 = vld [vmem:[%s8922_s13 + $0x50] sm:$0xff]  ;;  %v5259_v44 = vld [vmem:[%s8922_s13 + $0x48] sm:$0xff] }
0x20ab   :  { %6988 = vtanh.f32 %v4719_v35  ;;  %v5258_v35 = vld [vmem:[%s8922_s13 + $0x40] sm:$0xff] }
0x20ae   :  { %v6979_v40 = vpop.eup %6978 }
0x20af   :  { %v4726_v50 = vadd.f32 1.0, %v6979_v40  ;;  %v5257_v40 = vld [vmem:[%s8922_s13 + $0x38] sm:$0xff] }
0x20b1   :  { %v6981_v47 = vpop.eup %6980  ;;  %v4732_v33 = vmul.f32 %v4726_v50, %v4684_v53  ;;  %v5255_v50 = vld [vmem:[%s8922_s13 + $0x28] sm:$0xff] }
0x20b2   :  { %v4727_v15 = vadd.f32 1.0, %v6981_v47  ;;  %v5256_v47 = vld [vmem:[%s8922_s13 + $0x30] sm:$0xff]  ;;  %v5251_v53 = vld [vmem:[%s8922_s13 + $0x8] sm:$0xff] }
0x20b3   :  { %v6983_v52 = vpop.eup %6982 }
0x20b4   :  { %v6985_v46 = vpop.eup %6984  ;;  %v4733_v28 = vmul.f32 %v4727_v15, %v4685_v51  ;;  %v4728_v37 = vadd.f32 1.0, %v6983_v52  ;;  %v5254_v51 = vld [vmem:[%s8922_s13 + $0x20] sm:$0xff]  ;;  %v5253_v15 = vld [vmem:[%s8922_s13 + $0x18] sm:$0xff]  ;;  %v5252_v52 = vld [vmem:[%s8922_s13 + $0x10] sm:$0xff] }
0x20b5   :  { %v4729_v43 = vadd.f32 1.0, %v6985_v46  ;;  %v5250_v46 = vld [vmem:[%s8922_s13] sm:$0xff] }
0x20b6   :  { %v6987_v1 = vpop.eup %6986  ;;  %4835 = vmatprep.mubr.f32.mxu0 %v4733_v28  ;;  %v4734_v3 = vmul.f32 %v4728_v37, %v4686_v7 }
0x20b7   :  { %4836 = vmatmul.mubr.f32.vlgmr.msra.gmra.mxu0 %v4732_v33  ;;  %v4735_v55 = vmul.f32 %v4729_v43, %v4687_v42  ;;  %v4730_v49 = vadd.f32 1.0, %v6987_v1 }
0x20b8   :  { %v6989_v56 = vpop.eup %6988  ;;  %5298 = vmatpush1.msra.mxu0 %v5264_v32  ;;  %v5397_v32 = vld [vmem:[%s8923_s21 + $0xd8] sm:$0xff] }
0x20b9   :  { %4840 = vmatprep.mubr.f32.mxu0 %v4735_v55  ;;  %v4731_v62 = vadd.f32 1.0, %v6989_v56  ;;  %v4736_v4 = vmul.f32 %v4730_v49, %v4688_v41  ;;  %5299 = vmatprep.subr.mxu0 %v5263_v39  ;;  %v5381_v39 = vld [vmem:[%s8923_s21 + $0x58] sm:$0xff] }
0x20ba   :  { %5300 = vmatpush1.msra.mxu0 %v5262_v34  ;;  %v5396_v34 = vld [vmem:[%s8923_s21 + $0xd0] sm:$0xff] }
0x20bb   :  { %4841 = vmatmul.mubr.f32.gmra.mxu0 %v4734_v3  ;;  %v4737_v2 = vmul.f32 %v4731_v62, %v4689_v60  ;;  %5301 = vmatprep.subr.mxu0 %v5261_v38  ;;  %v5380_v38 = vld [vmem:[%s8923_s21 + $0x50] sm:$0xff] }
0x20bc   :  { %5302 = vmatpush1.msra.mxu0 %v5260_v11  ;;  %v5395_v11 = vld [vmem:[%s8923_s21 + $0xc8] sm:$0xff] }
0x20bd   :  { %4845 = vmatprep.mubr.f32.mxu0 %v4737_v2  ;;  %5303 = vmatprep.subr.mxu0 %v5259_v44  ;;  %v8734_v2 = vld [vmem:[#allocation22] ss:$0 sm:$0xff] }
0x20be   :  { %5304 = vmatpush1.msra.mxu0 %v5258_v35  ;;  %v5379_v44 = vld [vmem:[%s8923_s21 + $0x48] sm:$0xff]  ;;  %v5394_v35 = vld [vmem:[%s8923_s21 + $0xc0] sm:$0xff] }
0x20bf   :  { %4846 = vmatmul.mubr.f32.gmra.mxu0 %v4736_v4  ;;  %5305 = vmatprep.subr.mxu0 %v5257_v40  ;;  %v5378_v40 = vld [vmem:[%s8923_s21 + $0x40] sm:$0xff] }
0x20c0   :  { %5345 = vmatprep.mubr.f32.mxu0 %v7441_v8  ;;  %5306 = vmatpush1.msra.mxu0 %v5256_v47  ;;  %v5393_v47 = vld [vmem:[%s8923_s21 + $0xb8] sm:$0xff] }
0x20c1   :  { %5307 = vmatprep.subr.mxu0 %v5255_v50  ;;  %v5377_v50 = vld [vmem:[%s8923_s21 + $0x38] sm:$0xff] }
0x20c2   :  { %5308 = vmatpush1.msra.mxu0 %v5254_v51  ;;  %v5392_v51 = vld [vmem:[%s8923_s21 + $0xb0] sm:$0xff] }
0x20c3   :  { %5309 = vmatprep.subr.mxu0 %v5253_v15  ;;  %v5376_v15 = vld [vmem:[%s8923_s21 + $0x30] sm:$0xff] }
0x20c4   :  { %5310 = vmatpush1.msra.mxu0 %v5252_v52  ;;  %v5391_v52 = vld [vmem:[%s8923_s21 + $0xa8] sm:$0xff] }
0x20c5   :  { %5311 = vmatprep.subr.mxu0 %v5251_v53  ;;  %v5375_v53 = vld [vmem:[%s8923_s21 + $0x28] sm:$0xff] }
0x20c6   :  { %5312 = vmatpush1.msra.mxu0 %v5250_v46  ;;  %v5390_v46 = vld [vmem:[%s8923_s21 + $0xa0] sm:$0xff] }
0x2177   :  { %v6179_v10 = vpop.f32.mrf.mxu0 }
0x2179   :  { %v6180_v12 = vpop.f32.mrf.mxu0 }
0x217a   :  { %v6181_v54 = vadd.f32 %v6180_v12, %v6179_v10  ;;  %v8737_v12 = vld [vmem:[#allocation23] ss:$0 sm:$0xff] }
0x217b   :  { %v6182_v57 = vpop.f32.mrf.mxu0 }
0x217c   :  { %v4851_v9 = vadd.f32 %v6181_v54, %v8614_v19 }
0x217d   :  { %v6183_v58 = vpop.f32.mrf.mxu0 }
0x217e   :  { %v6184_v23 = vadd.f32 %v6183_v58, %v6182_v57  ;;  %v8702_v26 = vadd.f32 %v5859_v6, %v4851_v9  ;;  %v4939_v58 = vld [vmem:[%s8920_s26 + $0x78] sm:$0xff] }
0x217f   :  { %v6185_v16 = vpop.f32.mrf.mxu0  ;;  %4977 = vmatprep.subr.mxu1 %v4939_v58 }
0x2180   :  { %v4852_v5 = vadd.f32 %v6184_v23, %v8619_v20  ;;  %v4867_v61 = vsel %vm357_vm0, %v8702_v26, 0.0  ;;  %v4938_v23 = vld [vmem:[%s8920_s26 + $0x70] sm:$0xff] }
0x2181   :  { %v6186_v13 = vpop.f32.mrf.mxu0  ;;  %4978 = vmatpush1.msra.mxu1 %v4938_v23 }
0x2182   :  { %v6187_v17 = vadd.f32 %v6186_v13, %v6185_v16  ;;  %v4863_v18 = vadd.f32 %v5859_v6, %v4852_v5  ;;  %v4936_v16 = vld [vmem:[%s8920_s26 + $0x60] sm:$0xff]  ;;  %v4935_v5 = vld [vmem:[%s8920_s26 + $0x58] sm:$0xff]  ;;  %v4934_v13 = vld [vmem:[%s8920_s26 + $0x50] sm:$0xff] }
0x2184   :  { %v4853_v22 = vadd.f32 %v6187_v17, %v8624_v24  ;;  %v4870_v48 = vsel %vm357_vm0, %v4863_v18, 0.0  ;;  %v4933_v17 = vld [vmem:[%s8920_s26 + $0x48] sm:$0xff] }
0x2185   :  { %4871 = vadd.xlane.f32.xlu0 %v4870_v48  ;;  %v4930_v48 = vld [vmem:[%s8920_s26 + $0x30] sm:$0xff] }
0x2186   :  { %v4864_v14 = vadd.f32 %v5859_v6, %v4853_v22  ;;  %v4931_v22 = vld [vmem:[%s8920_s26 + $0x38] sm:$0xff] }
0x2188   :  { %v4873_v21 = vsel %vm812_vm2, %v4864_v14, 0.0 }
0x2189   :  { %4874 = vadd.xlane.f32.xlu1 %v4873_v21  ;;  %v4928_v21 = vld [vmem:[%s8920_s26 + $0x20] sm:$0xff] }
0x220e   :  { %v4872_v19 = vpop.xlane.xlu0 %4871 }
0x220f   :  { %v4877_v36 = vmul.f32 0.015625, %v4872_v19  ;;  %v4927_v19 = vld [vmem:[%s8920_s26 + $0x18] sm:$0xff] }
0x2211   :  { %v4880_v25 = vsub.f32 %v4863_v18, %v4877_v36  ;;  %v4932_v18 = vld [vmem:[%s8920_s26 + $0x40] sm:$0xff]  ;;  %v4926_v36 = vld [vmem:[%s8920_s26 + $0x10] sm:$0xff] }
0x2212   :  { %v4875_v29 = vpop.xlane.xlu1 %4874 }
0x2213   :  { %v4878_v20 = vmul.f32 0.015625, %v4875_v29  ;;  %v4883_v59 = vmul.f32 %v4880_v25, %v4880_v25  ;;  %v4924_v29 = vld [vmem:[%s8920_s26] sm:$0xff] }
0x2215   :  { %v4881_v27 = vsub.f32 %v4864_v14, %v4878_v20  ;;  %v4888_v24 = vsel %vm357_vm0, %v4883_v59, 0.0  ;;  %v4929_v14 = vld [vmem:[%s8920_s26 + $0x28] sm:$0xff]  ;;  %v5401_v20 = vld [vmem:[%s8923_s21 + $0xf8] sm:$0xff] }
0x2216   :  { %4889 = vadd.xlane.f32.xlu0 %v4888_v24  ;;  %6229 = vmatprep.subr.mxu0 %v5401_v20  ;;  %v5385_v59 = vld [vmem:[%s8923_s21 + $0x78] sm:$0xff]  ;;  %v5384_v24 = vld [vmem:[%s8923_s21 + $0x70] sm:$0xff]  ;;  %v5111_v20 = vld [vmem:[%s8921_s4 + $0x68] sm:$0xff] }
0x2217   :  { %v4884_v0 = vmul.f32 %v4881_v27, %v4881_v27 }
0x2219   :  { %v4891_v30 = vsel %vm812_vm2, %v4884_v0, 0.0  ;;  %v5399_v0 = vld [vmem:[%s8923_s21 + $0xe8] sm:$0xff] }
0x221a   :  { %4892 = vadd.xlane.f32.xlu1 %v4891_v30  ;;  %4868 = vadd.xlane.f32.xlu0 %v4867_v61  ;;  %v5383_v30 = vld [vmem:[%s8923_s21 + $0x68] sm:$0xff]  ;;  %v5398_v61 = vld [vmem:[%s8923_s21 + $0xe0] sm:$0xff] }
0x229f   :  { %v4890_v28 = vpop.xlane.xlu0 %4889 }
0x22a0   :  { %v4895_v33 = vmul.f32 0.015625, %v4890_v28  ;;  %v5374_v28 = vld [vmem:[%s8923_s21 + $0x20] sm:$0xff] }
0x22a2   :  { %v4898_v42 = vadd.f32 1e-05, %v4895_v33  ;;  %v5389_v33 = vld [vmem:[%s8923_s21 + $0x98] sm:$0xff] }
0x22a3   :  { %v4893_v43 = vpop.xlane.xlu1 %4892  ;;  %v4869_v37 = vpop.xlane.xlu0 %4868 }
0x22a4   :  { %6990 = vrsqrt.f32 %v4898_v42  ;;  %v4896_v1 = vmul.f32 0.015625, %v4893_v43  ;;  %v4876_v55 = vmul.f32 0.015625, %v4869_v37  ;;  %v5373_v42 = vld [vmem:[%s8923_s21 + $0x18] sm:$0xff]  ;;  %v5388_v43 = vld [vmem:[%s8923_s21 + $0x90] sm:$0xff] }
0x22a5   :  { %v5372_v37 = vld [vmem:[%s8923_s21 + $0x10] sm:$0xff] }
0x22a6   :  { %v4899_v7 = vadd.f32 1e-05, %v4896_v1  ;;  %v8729_v56 = vsub.f32 %v8702_v26, %v4876_v55  ;;  %v4937_v26 = vld [vmem:[%s8920_s26 + $0x68] sm:$0xff] }
0x22a7   :  { %4979 = vmatprep.subr.mxu1 %v4937_v26  ;;  %v5387_v1 = vld [vmem:[%s8923_s21 + $0x88] sm:$0xff] }
0x22a8   :  { %6992 = vrsqrt.f32 %v4899_v7  ;;  %v4882_v3 = vmul.f32 %v8729_v56, %v8729_v56  ;;  %4980 = vmatpush1.msra.mxu1 %v4936_v16  ;;  %v5371_v55 = vld [vmem:[%s8923_s21 + $0x8] sm:$0xff]  ;;  %v5386_v7 = vld [vmem:[%s8923_s21 + $0x80] sm:$0xff] }
0x22a9   :  { %4981 = vmatprep.subr.mxu1 %v4935_v5 }
0x22aa   :  { %v4885_v60 = vsel %vm357_vm0, %v4882_v3, 0.0  ;;  %4982 = vmatpush1.msra.mxu1 %v4934_v13  ;;  %v5370_v3 = vld [vmem:[%s8923_s21] sm:$0xff] }
0x22ab   :  { %4886 = vadd.xlane.f32.xlu1 %v4885_v60  ;;  %4983 = vmatprep.subr.mxu1 %v4933_v17 }
0x22ac   :  { %4984 = vmatpush1.msra.mxu1 %v4932_v18 }
0x22ad   :  { %4985 = vmatprep.subr.mxu1 %v4931_v22 }
0x22ae   :  { %4986 = vmatpush1.msra.mxu1 %v4930_v48 }
0x22af   :  { %4987 = vmatprep.subr.mxu1 %v4929_v14 }
0x22b0   :  { %4988 = vmatpush1.msra.mxu1 %v4928_v21  ;;  %v5129_v21 = vld [vmem:[%s8921_s4 + $0xf8] sm:$0xff] }
0x22b1   :  { %v6991_v62 = vpop.eup %6990  ;;  %4989 = vmatprep.subr.mxu1 %v4927_v19  ;;  %v5113_v19 = vld [vmem:[%s8921_s4 + $0x78] sm:$0xff] }
0x22b2   :  { %v4904_v49 = vmul.f32 %v6991_v62, %v4880_v25  ;;  %v4925_v25 = vld [vmem:[%s8920_s26 + $0x8] sm:$0xff]  ;;  %4990 = vmatpush1.msra.mxu1 %v4926_v36  ;;  %v5128_v36 = vld [vmem:[%s8921_s4 + $0xf0] sm:$0xff] }
0x22b3   :  { %4991 = vmatprep.subr.mxu1 %v4925_v25  ;;  %v5112_v25 = vld [vmem:[%s8921_s4 + $0x70] sm:$0xff] }
0x22b4   :  { %v4913_v10 = vmul.f32 %v8734_v2, %v4904_v49  ;;  %4992 = vmatpush1.msra.mxu1 %v4924_v29  ;;  %v5127_v29 = vld [vmem:[%s8921_s4 + $0xe8] sm:$0xff] }
0x22b5   :  { %v6993_v41 = vpop.eup %6992  ;;  %6188 = vmatprep.subr.mxu1 %v5129_v21 }
0x22b6   :  { %v4905_v4 = vmul.f32 %v6993_v41, %v4881_v27  ;;  %v8741_v57 = vadd.f32 %v8737_v12, %v4913_v10  ;;  %v5400_v27 = vld [vmem:[%s8923_s21 + $0xf0] sm:$0xff] }
0x22b8   :  { %v4914_v54 = vmul.f32 %v8734_v2, %v4905_v4 }
0x22ba   :  { %v8744_v6 = vadd.f32 %v8737_v12, %v4914_v54 }
0x22bc   :  { %v5249_v9 = vsel %vm792_vm1, %v8741_v57, %v8744_v6 }
0x22bd   :  { %5869 = vmatmul.mubr.msk.f32.vlgmr.msra.gmra.mxu0 %vm357_vm0, %v5249_v9  ;;  %v5266_v9 = vld [vmem:[%s8924_s28] sm:$0x3] }
0x22be   :  { %6230 = vmatpush3.msra.mxu0 %v5385_v59  ;;  %v5271_v58 = vrot.slane %v5266_v9, %v7796_v45  ;;  %v5126_v59 = vld [vmem:[%s8921_s4 + $0xe0] sm:$0xff] }
0x22bf   :  { %6231 = vmatprep.subr.mxu0 %v5400_v27  ;;  %v5110_v27 = vld [vmem:[%s8921_s4 + $0x60] sm:$0xff] }
0x22c0   :  { %6232 = vmatpush3.msra.mxu0 %v5384_v24  ;;  %v5125_v24 = vld [vmem:[%s8921_s4 + $0xd8] sm:$0xff] }
0x22c1   :  { %6233 = vmatprep.subr.mxu0 %v5399_v0 }
0x22c2   :  { %6234 = vmatpush3.msra.mxu0 %v5383_v30  ;;  %v5109_v30 = vld [vmem:[%s8921_s4 + $0x58] sm:$0xff] }
0x22c3   :  { %6235 = vmatprep.subr.mxu0 %v5398_v61  ;;  %v5124_v61 = vld [vmem:[%s8921_s4 + $0xd0] sm:$0xff] }
0x22c4   :  { %6236 = vmatpush3.msra.mxu0 %v5382_v31 }
0x22c5   :  { %6237 = vmatprep.subr.mxu0 %v5397_v32 }
0x22c6   :  { %6238 = vmatpush3.msra.mxu0 %v5381_v39  ;;  %v5108_v39 = vld [vmem:[%s8921_s4 + $0x50] sm:$0xff] }
0x22c7   :  { %6239 = vmatprep.subr.mxu0 %v5396_v34 }
0x22c8   :  { %6240 = vmatpush3.msra.mxu0 %v5380_v38 }
0x22c9   :  { %6241 = vmatprep.subr.mxu0 %v5395_v11  ;;  %v5123_v11 = vld [vmem:[%s8921_s4 + $0xc8] sm:$0xff] }
0x22ca   :  { %6242 = vmatpush3.msra.mxu0 %v5379_v44 }
0x22cb   :  { %6243 = vmatprep.subr.mxu0 %v5394_v35  ;;  %v5107_v35 = vld [vmem:[%s8921_s4 + $0x48] sm:$0xff] }
0x22cc   :  { %6244 = vmatpush3.msra.mxu0 %v5378_v40 }
0x22cd   :  { %6245 = vmatprep.subr.mxu0 %v5393_v47  ;;  %v5122_v47 = vld [vmem:[%s8921_s4 + $0xc0] sm:$0xff] }
0x22ce   :  { %6246 = vmatpush3.msra.mxu0 %v5377_v50 }
0x22cf   :  { %6247 = vmatprep.subr.mxu0 %v5392_v51  ;;  %v5106_v51 = vld [vmem:[%s8921_s4 + $0x40] sm:$0xff] }
0x22d0   :  { %6248 = vmatpush3.msra.mxu0 %v5376_v15  ;;  %v5121_v15 = vld [vmem:[%s8921_s4 + $0xb8] sm:$0xff] }
0x22d1   :  { %6249 = vmatprep.subr.mxu0 %v5391_v52  ;;  %v5105_v52 = vld [vmem:[%s8921_s4 + $0x38] sm:$0xff] }
0x22d2   :  { %6250 = vmatpush3.msra.mxu0 %v5375_v53  ;;  %v5120_v53 = vld [vmem:[%s8921_s4 + $0xb0] sm:$0xff] }
0x22d3   :  { %6251 = vmatprep.subr.mxu0 %v5390_v46  ;;  %v5104_v46 = vld [vmem:[%s8921_s4 + $0x30] sm:$0xff] }
0x22d4   :  { %6252 = vmatpush3.msra.mxu0 %v5374_v28  ;;  %v5119_v28 = vld [vmem:[%s8921_s4 + $0xa8] sm:$0xff] }
0x22d5   :  { %6253 = vmatprep.subr.mxu0 %v5389_v33  ;;  %v5103_v33 = vld [vmem:[%s8921_s4 + $0x28] sm:$0xff] }
0x22d6   :  { %6254 = vmatpush3.msra.mxu0 %v5373_v42  ;;  %v5118_v42 = vld [vmem:[%s8921_s4 + $0xa0] sm:$0xff] }
0x22d7   :  { %6255 = vmatprep.subr.mxu0 %v5388_v43  ;;  %v5102_v43 = vld [vmem:[%s8921_s4 + $0x20] sm:$0xff] }
0x22d8   :  { %6256 = vmatpush3.msra.mxu0 %v5372_v37  ;;  %v5117_v37 = vld [vmem:[%s8921_s4 + $0x98] sm:$0xff] }
0x22d9   :  { %6257 = vmatprep.subr.mxu0 %v5387_v1  ;;  %v5101_v1 = vld [vmem:[%s8921_s4 + $0x18] sm:$0xff] }
0x22da   :  { %6258 = vmatpush3.msra.mxu0 %v5371_v55  ;;  %v5116_v55 = vld [vmem:[%s8921_s4 + $0x90] sm:$0xff] }
0x22db   :  { %6259 = vmatprep.subr.mxu0 %v5386_v7  ;;  %v5100_v7 = vld [vmem:[%s8921_s4 + $0x10] sm:$0xff] }
0x22dc   :  { %6260 = vmatpush3.msra.mxu0 %v5370_v3  ;;  %v5115_v3 = vld [vmem:[%s8921_s4 + $0x88] sm:$0xff] }
0x2334   :  { %v4887_v60 = vpop.xlane.xlu1 %4886 }
0x2335   :  { %v4894_v62 = vmul.f32 0.015625, %v4887_v60  ;;  %v5099_v60 = vld [vmem:[%s8921_s4 + $0x8] sm:$0xff] }
0x2337   :  { %v4897_v49 = vadd.f32 1e-05, %v4894_v62  ;;  %v5114_v62 = vld [vmem:[%s8921_s4 + $0x80] sm:$0xff] }
0x2339   :  { %6994 = vrsqrt.f32 %v4897_v49  ;;  %v5098_v49 = vld [vmem:[%s8921_s4] sm:$0xff] }
0x2346   :  { %v6995_v41 = vpop.eup %6994 }
0x2347   :  { %v4903_v4 = vmul.f32 %v6995_v41, %v8729_v56  ;;  %v5275_v56 = vrot.slane %v5266_v9, %v7829_v63  ;;  %v4940_v41 = vld [vmem:[#allocation25] sm:$0x3] }
0x2349   :  { %v4912_v10 = vmul.f32 %v8734_v2, %v4903_v4  ;;  %v4945_v4 = vrot.slane %v4940_v41, %v7796_v45 }
0x234b   :  { %v4921_v54 = vadd.f32 %v8737_v12, %v4912_v10  ;;  %v4949_v10 = vrot.slane %v4940_v41, %v7829_v63 }
0x234d   :  { %5862 = vmatmul.mubr.msk.f32.vlgmr.msra.gmra.mxu1 %vm357_vm0, %v4921_v54 }
0x234e   :  { %5031 = vmatprep.mubr.f32.mxu1 %v7441_v8  ;;  %6189 = vmatpush3.msra.mxu1 %v5113_v19 }
0x234f   :  { %6190 = vmatprep.subr.mxu1 %v5128_v36 }
0x2350   :  { %6191 = vmatpush3.msra.mxu1 %v5112_v25 }
0x2351   :  { %5863 = vmatmul.mubr.msk.f32.gmra.mxu1 %vm357_vm0, %v8741_v57  ;;  %6192 = vmatprep.subr.mxu1 %v5127_v29 }
0x2352   :  { %5037 = vmatprep.mubr.f32.mxu1 %v7441_v8  ;;  %6193 = vmatpush3.msra.mxu1 %v5111_v20 }
0x2353   :  { %6194 = vmatprep.subr.mxu1 %v5126_v59 }
0x2354   :  { %6195 = vmatpush3.msra.mxu1 %v5110_v27 }
0x2355   :  { %5864 = vmatmul.mubr.msk.f32.gmra.mxu1 %vm357_vm0, %v8744_v6  ;;  %6196 = vmatprep.subr.mxu1 %v5125_v24 }
0x2356   :  { %6197 = vmatpush3.msra.mxu1 %v5109_v30 }
0x2357   :  { %6198 = vmatprep.subr.mxu1 %v5124_v61 }
0x2358   :  { %6199 = vmatpush3.msra.mxu1 %v5108_v39 }
0x2359   :  { %6200 = vmatprep.subr.mxu1 %v5123_v11 }
0x235a   :  { %6201 = vmatpush3.msra.mxu1 %v5107_v35 }
0x235b   :  { %6202 = vmatprep.subr.mxu1 %v5122_v47 }
0x235c   :  { %6203 = vmatpush3.msra.mxu1 %v5106_v51 }
0x235d   :  { %6204 = vmatprep.subr.mxu1 %v5121_v15 }
0x235e   :  { %6205 = vmatpush3.msra.mxu1 %v5105_v52 }
0x235f   :  { %6206 = vmatprep.subr.mxu1 %v5120_v53 }
0x2360   :  { %6207 = vmatpush3.msra.mxu1 %v5104_v46 }
0x2361   :  { %6208 = vmatprep.subr.mxu1 %v5119_v28 }
0x2362   :  { %6209 = vmatpush3.msra.mxu1 %v5103_v33 }
0x2363   :  { %6210 = vmatprep.subr.mxu1 %v5118_v42 }
0x2364   :  { %6211 = vmatpush3.msra.mxu1 %v5102_v43 }
0x2365   :  { %6212 = vmatprep.subr.mxu1 %v5117_v37 }
0x2366   :  { %6213 = vmatpush3.msra.mxu1 %v5101_v1 }
0x2367   :  { %6214 = vmatprep.subr.mxu1 %v5116_v55 }
0x2368   :  { %6215 = vmatpush3.msra.mxu1 %v5100_v7  ;;  %v5495_v7 = vld [vmem:[%s7622_s14 + $0x38] sm:$0xff] }
0x2369   :  { %6216 = vmatprep.subr.mxu1 %v5115_v3 }
0x236a   :  { %6217 = vmatpush3.msra.mxu1 %v5099_v60 }
0x236b   :  { %6218 = vmatprep.subr.mxu1 %v5114_v62 }
0x236c   :  { %6219 = vmatpush3.msra.mxu1 %v5098_v49  ;;  %v5494_v49 = vld [vmem:[%s7622_s14 + $0x30] sm:$0xff] }
0x236d   :  { %6725 = vmatprep.subr.mxu1 %v7441_v8 }
0x237d   :  { %v5347_v2 = vpop.f32.mrf.mxu0 }
0x237e   :  { %v5348_v12 = vadd.f32 %v5347_v2, %v5271_v58 }
0x237f   :  { %v5349_v23 = vpop.f32.mrf.mxu0 }
0x2380   :  { %v5354_v26 = vmul.f32 0.044715, %v5348_v12  ;;  %v5350_v16 = vadd.f32 %v5349_v23, %v5275_v56  ;;  %v5352_v44 = vmul.f32 0.5, %v5348_v12 }
0x2382   :  { %v5356_v5 = vmul.f32 %v5354_v26, %v5348_v12  ;;  %v5355_v57 = vmul.f32 0.044715, %v5350_v16  ;;  %v5353_v34 = vmul.f32 0.5, %v5350_v16 }
0x2384   :  { %v5358_v13 = vmul.f32 %v5356_v5, %v5348_v12  ;;  %v5357_v17 = vmul.f32 %v5355_v57, %v5350_v16 }
0x2386   :  { %v5360_v6 = vadd.f32 %v5358_v13, %v5348_v12  ;;  %v5359_v18 = vmul.f32 %v5357_v17, %v5350_v16 }
0x2388   :  { %v5361_v22 = vadd.f32 %v5359_v18, %v5350_v16  ;;  %v5362_v48 = vmul.f32 0.7978846, %v5360_v6 }
0x238a   :  { %v5363_v14 = vmul.f32 0.7978846, %v5361_v22  ;;  %6996 = vtanh.f32 %v5362_v48 }
0x238c   :  { %6998 = vtanh.f32 %v5363_v14 }
0x2397   :  { %v6997_v0 = vpop.eup %6996 }
0x2398   :  { %v5366_v32 = vadd.f32 1.0, %v6997_v0 }
0x2399   :  { %v6999_v31 = vpop.eup %6998 }
0x239a   :  { %v5367_v38 = vadd.f32 1.0, %v6999_v31  ;;  %v5368_v50 = vmul.f32 %v5366_v32, %v5352_v44 }
0x239c   :  { %v5369_v40 = vmul.f32 %v5367_v38, %v5353_v34 }
0x239e   :  { %5473 = vmatprep.mubr.f32.mxu0 %v5369_v40 }
0x239f   :  { %5474 = vmatmul.mubr.f32.vlgmr.msra.gmra.mxu0 %v5368_v50 }
0x240d   :  { %v5027_v54 = vpop.f32.mrf.mxu1 }
0x240e   :  { %v5028_v9 = vadd.f32 %v5027_v54, %v4945_v4 }
0x240f   :  { %v5029_v58 = vpop.f32.mrf.mxu1 }
0x2410   :  { %v5050_v56 = vmul.f32 0.044715, %v5028_v9  ;;  %v5030_v2 = vadd.f32 %v5029_v58, %v4949_v10  ;;  %v5044_v28 = vmul.f32 0.5, %v5028_v9  ;;  %v5493_v58 = vld [vmem:[%s7622_s14 + $0x28] sm:$0xff] }
0x2411   :  { %v5033_v12 = vpop.f32.mrf.mxu1 }
0x2412   :  { %v5056_v23 = vmul.f32 %v5050_v56, %v5028_v9  ;;  %v5051_v26 = vmul.f32 0.044715, %v5030_v2  ;;  %v5034_v16 = vadd.f32 %v5033_v12, %v4945_v4  ;;  %v5045_v52 = vmul.f32 0.5, %v5030_v2  ;;  %v5492_v12 = vld [vmem:[%s7622_s14 + $0x20] sm:$0xff] }
0x2413   :  { %v5035_v5 = vpop.f32.mrf.mxu1 }
0x2414   :  { %v5062_v57 = vmul.f32 %v5056_v23, %v5028_v9  ;;  %v5057_v13 = vmul.f32 %v5051_v26, %v5030_v2  ;;  %v5052_v17 = vmul.f32 0.044715, %v5034_v16  ;;  %v5036_v6 = vadd.f32 %v5035_v5, %v4949_v10  ;;  %v5491_v26 = vld [vmem:[%s7622_s14 + $0x18] sm:$0xff]  ;;  %v5489_v5 = vld [vmem:[%s7622_s14 + $0x8] sm:$0xff] }
0x2415   :  { %v5039_v18 = vpop.f32.mrf.mxu1  ;;  %v5046_v62 = vmul.f32 0.5, %v5034_v16 }
0x2416   :  { %v5068_v22 = vadd.f32 %v5062_v57, %v5028_v9  ;;  %v5058_v48 = vmul.f32 %v5052_v17, %v5034_v16  ;;  %v5053_v45 = vmul.f32 0.044715, %v5036_v6  ;;  %v5040_v14 = vadd.f32 %v5039_v18, %v4945_v4  ;;  %v5488_v57 = vld [vmem:[%s7622_s14] sm:$0xff] }
0x2417   :  { %v5041_v63 = vpop.f32.mrf.mxu1  ;;  %v5063_v21 = vmul.f32 %v5057_v13, %v5030_v2  ;;  %v5047_v37 = vmul.f32 0.5, %v5036_v6  ;;  %v5870_v17 = vld [vmem:[%s8925_s6] ss:$0 sm:$0xff] }
0x2418   :  { %v5074_v19 = vmul.f32 0.7978846, %v5068_v22  ;;  %v5059_v36 = vmul.f32 %v5053_v45, %v5036_v6  ;;  %v5054_v25 = vmul.f32 0.044715, %v5040_v14  ;;  %v5042_v29 = vadd.f32 %v5041_v63, %v4949_v10 }
0x2419   :  { %v5069_v20 = vadd.f32 %v5063_v21, %v5030_v2  ;;  %v5064_v59 = vmul.f32 %v5058_v48, %v5034_v16  ;;  %v5048_v2 = vmul.f32 0.5, %v5040_v14 }
0x241a   :  { %7000 = vtanh.f32 %v5074_v19  ;;  %v5060_v27 = vmul.f32 %v5054_v25, %v5040_v14  ;;  %v5055_v24 = vmul.f32 0.044715, %v5042_v29  ;;  %v5065_v0 = vmul.f32 %v5059_v36, %v5036_v6 }
0x241b   :  { %v5075_v30 = vmul.f32 0.7978846, %v5069_v20  ;;  %v5070_v61 = vadd.f32 %v5064_v59, %v5034_v16  ;;  %v5049_v10 = vmul.f32 0.5, %v5042_v29  ;;  %v5490_v16 = vld [vmem:[%s7622_s14 + $0x10] sm:$0xff]  ;;  %s7448_s14 = smov [#allocation28]  }
0x241c   :  { %v5066_v31 = vmul.f32 %v5060_v27, %v5040_v14  ;;  %v5061_v32 = vmul.f32 %v5055_v24, %v5042_v29  ;;  %v5071_v39 = vadd.f32 %v5065_v0, %v5036_v6  ;;  %s5585_s8 = sshll.u32 %s7448_s14, 4  ;;  %s5586_s8 = int_to_ptr.vmem [resolvable:$true] %s5585_s8 }
0x241d   :  { %7002 = vtanh.f32 %v5075_v30  ;;  %v5076_v34 = vmul.f32 0.7978846, %v5070_v61  ;;  %s7343_s1 = scalar_lea.vmem %s5586_s8, 32  ;;  %p7348_p11 = scmp.lt.s32.totalorder %s5586_s8, %s5586_s8 }
0x241e   :  { %v5072_v38 = vadd.f32 %v5066_v31, %v5040_v14  ;;  %v5077_v11 = vmul.f32 0.7978846, %v5071_v39  ;;  %v5067_v44 = vmul.f32 %v5061_v32, %v5042_v29  ;;  %p7344_p10 = scmp.ne.s32.totalorder %s5586_s8, %s7343_s1  ;;  %p7349_p12 = scmp.lt.s32.totalorder %s7343_s1, %s7343_s1 }
0x241f   :  { %7004 = vtanh.f32 %v5076_v34 }
0x2420   :  { %7006 = vtanh.f32 %v5077_v11  ;;  %v5073_v35 = vadd.f32 %v5067_v44, %v5042_v29  ;;  %v5078_v40 = vmul.f32 0.7978846, %v5072_v38  ;;  %p7350_p13 = por %p7349_p12, %p7348_p11 }
0x2422   :  { %v5079_v47 = vmul.f32 0.7978846, %v5073_v35  ;;  %7008 = vtanh.f32 %v5078_v40  ;;  %p7351_p0 = pnand %p7350_p13, %p7344_p10 }
0x2424   :  { %7010 = vtanh.f32 %v5079_v47 }
0x2427   :  { %v7001_v50 = vpop.eup %7000 }
0x2428   :  { %v5086_v15 = vadd.f32 1.0, %v7001_v50 }
0x242a   :  { %v7003_v51 = vpop.eup %7002  ;;  %v5092_v43 = vmul.f32 %v5086_v15, %v5044_v28 }
0x242b   :  { %v5087_v53 = vadd.f32 1.0, %v7003_v51 }
0x242c   :  { %v7005_v46 = vpop.eup %7004 }
0x242d   :  { %v7007_v33 = vpop.eup %7006  ;;  %v5093_v42 = vmul.f32 %v5087_v53, %v5045_v52  ;;  %v5088_v55 = vadd.f32 1.0, %v7005_v46 }
0x242e   :  { %v5089_v1 = vadd.f32 1.0, %v7007_v33 }
0x242f   :  { %v7009_v3 = vpop.eup %7008  ;;  %5201 = vmatprep.mubr.f32.mxu1 %v5093_v42  ;;  %v5094_v4 = vmul.f32 %v5088_v55, %v5046_v62 }
0x2430   :  { %5202 = vmatmul.mubr.f32.vlgmr.msra.gmra.mxu1 %v5092_v43  ;;  %v5095_v60 = vmul.f32 %v5089_v1, %v5047_v37  ;;  %v5090_v9 = vadd.f32 1.0, %v7009_v3 }
0x2431   :  { %v7011_v41 = vpop.eup %7010  ;;  %6726 = vmatpush3.msra.mxu1 %v5495_v7 }
0x2432   :  { %5206 = vmatprep.mubr.f32.mxu1 %v5095_v60  ;;  %v5091_v54 = vadd.f32 1.0, %v7011_v41  ;;  %6727 = vmatprep.subr.mxu1 %v7441_v8  ;;  %v5096_v23 = vmul.f32 %v5090_v9, %v5048_v2  ;;  %v5871_v9 = vld [vmem:[%s7627_s9] ss:$0 sm:$0xff] }
0x2433   :  { %6728 = vmatpush3.msra.mxu1 %v5494_v49 }
0x2434   :  { %5207 = vmatmul.mubr.f32.gmra.mxu1 %v5094_v4  ;;  %v5097_v56 = vmul.f32 %v5091_v54, %v5049_v10  ;;  %6729 = vmatprep.subr.mxu1 %v7441_v8 }
0x2435   :  { %6730 = vmatpush3.msra.mxu1 %v5493_v58 }
0x2436   :  { %5211 = vmatprep.mubr.f32.mxu1 %v5097_v56  ;;  %6731 = vmatprep.subr.mxu1 %v7441_v8 }
0x2437   :  { %6732 = vmatpush3.msra.mxu1 %v5492_v12 }
0x2438   :  { %5212 = vmatmul.mubr.f32.gmra.mxu1 %v5096_v23  ;;  %6733 = vmatprep.subr.mxu1 %v7441_v8 }
0x2439   :  { %6734 = vmatpush3.msra.mxu1 %v5491_v26  ;;  %6741 = vmatprep.mubr.msk.f32.mxu1 %vm7443_vm3, %v7441_v8 }
0x243a   :  { %6735 = vmatprep.subr.mxu1 %v7441_v8 }
0x243b   :  { %6736 = vmatpush3.msra.mxu1 %v5490_v16 }
0x243c   :  { %6737 = vmatprep.subr.mxu1 %v7441_v8 }
0x243d   :  { %6738 = vmatpush3.msra.mxu1 %v5489_v5 }
0x243e   :  { %6739 = vmatprep.subr.mxu1 %v7441_v8  ;;  %v5865_v8 = vld [vmem:[#allocation26] ss:$0 sm:$0xff] }
0x243f   :  { %6740 = vmatpush3.msra.mxu1 %v5488_v57 }
0x245f   :  { %v6261_v13 = vpop.f32.mrf.mxu0 }
0x2461   :  { %v6262_v6 = vpop.f32.mrf.mxu0 }
0x2462   :  { %v6263_v18 = vadd.f32 %v6262_v6, %v6261_v13 }
0x2464   :  { %v5476_v22 = vadd.f32 %v6263_v18, %v5870_v17 }
0x2466   :  { %v5480_v48 = vmul.f32 0.044715, %v5476_v22  ;;  %v5479_v36 = vmul.f32 0.5, %v5476_v22 }
0x2468   :  { %v5481_v45 = vmul.f32 %v5480_v48, %v5476_v22 }
0x246a   :  { %v5482_v14 = vmul.f32 %v5481_v45, %v5476_v22 }
0x246c   :  { %v5483_v63 = vadd.f32 %v5482_v14, %v5476_v22 }
0x246e   :  { %v5484_v21 = vmul.f32 0.7978846, %v5483_v63 }
0x2470   :  { %7012 = vtanh.f32 %v5484_v21 }
0x247d   :  { %v7013_v19 = vpop.eup %7012 }
0x247e   :  { %v5486_v25 = vadd.f32 1.0, %v7013_v19 }
0x2480   :  { %v5487_v29 = vmul.f32 %v5486_v25, %v5479_v36 }
0x2482   :  { %6742 = vmatmul.mubr.msk.f32.vlgmr.msra.gmra.mxu1 %vm357_vm0, %v5487_v29 }
0x24f0   :  { %v6220_v20 = vpop.f32.mrf.mxu1 }
0x24f2   :  { %v6221_v59 = vpop.f32.mrf.mxu1 }
0x24f3   :  { %v6222_v27 = vadd.f32 %v6221_v59, %v6220_v20 }
0x24f4   :  { %v6223_v24 = vpop.f32.mrf.mxu1 }
0x24f5   :  { %v5204_v0 = vadd.f32 %v6222_v27, %v5865_v8 }
0x24f6   :  { %v6224_v30 = vpop.f32.mrf.mxu1 }
0x24f7   :  { %v5220_v61 = vmul.f32 0.044715, %v5204_v0  ;;  %v6225_v31 = vadd.f32 %v6224_v30, %v6223_v24  ;;  %v5217_v1 = vmul.f32 0.5, %v5204_v0 }
0x24f8   :  { %v6226_v32 = vpop.f32.mrf.mxu1 }
0x24f9   :  { %v5223_v39 = vmul.f32 %v5220_v61, %v5204_v0  ;;  %v5209_v34 = vadd.f32 %v6225_v31, %v5865_v8 }
0x24fa   :  { %v6227_v38 = vpop.f32.mrf.mxu1 }
0x24fb   :  { %v5226_v11 = vmul.f32 %v5223_v39, %v5204_v0  ;;  %v5221_v44 = vmul.f32 0.044715, %v5209_v34  ;;  %v6228_v35 = vadd.f32 %v6227_v38, %v6226_v32  ;;  %v5218_v60 = vmul.f32 0.5, %v5209_v34 }
0x24fd   :  { %v5229_v40 = vadd.f32 %v5226_v11, %v5204_v0  ;;  %v5224_v47 = vmul.f32 %v5221_v44, %v5209_v34  ;;  %v5214_v50 = vadd.f32 %v6228_v35, %v5865_v8 }
0x24ff   :  { %v5232_v51 = vmul.f32 0.7978846, %v5229_v40  ;;  %v5227_v15 = vmul.f32 %v5224_v47, %v5209_v34  ;;  %v5222_v52 = vmul.f32 0.044715, %v5214_v50  ;;  %v5219_v4 = vmul.f32 0.5, %v5214_v50 }
0x2501   :  { %7014 = vtanh.f32 %v5232_v51  ;;  %v5230_v53 = vadd.f32 %v5227_v15, %v5209_v34  ;;  %v5225_v46 = vmul.f32 %v5222_v52, %v5214_v50 }
0x2503   :  { %v5233_v28 = vmul.f32 0.7978846, %v5230_v53  ;;  %v5228_v33 = vmul.f32 %v5225_v46, %v5214_v50 }
0x2505   :  { %7016 = vtanh.f32 %v5233_v28  ;;  %v5231_v42 = vadd.f32 %v5228_v33, %v5214_v50 }
0x2507   :  { %v5234_v43 = vmul.f32 0.7978846, %v5231_v42 }
0x2509   :  { %7018 = vtanh.f32 %v5234_v43 }
0x250e   :  { %v7015_v37 = vpop.eup %7014 }
0x250f   :  { %v5238_v55 = vadd.f32 1.0, %v7015_v37 }
0x2511   :  { %v5241_v7 = vmul.f32 %v5238_v55, %v5217_v1 }
0x2512   :  { %v7017_v3 = vpop.eup %7016 }
0x2513   :  { %5866 = vst.msk [vmem:[%s7632_s25 + $0x10] sm:$0xff] %vm357_vm0, %v5241_v7  ;;  %v5239_v62 = vadd.f32 1.0, %v7017_v3 }
0x2515   :  { %v5242_v49 = vmul.f32 %v5239_v62, %v5218_v60 }
0x2516   :  { %v7019_v41 = vpop.eup %7018 }
0x2517   :  { %5867 = vst.msk [vmem:[%s7632_s25 + $0x17] sm:$0xfe] %vm2990_vm8, %v5242_v49  ;;  %v5240_v10 = vadd.f32 1.0, %v7019_v41 }
0x2519   :  { %v5243_v54 = vmul.f32 %v5240_v10, %v5219_v4 }
0x251b   :  { %5868 = vst.msk [vmem:[%s7632_s25 + $0x1f] sm:$0x1] %vm2992_vm9, %v5243_v54 }
0x2542   :  { %v5572_v58 = vpop.f32.mrf.mxu1 }
0x2543   :  { %v5573_v56 = vadd.f32 %v5871_v9, %v5572_v58 }
0x2544   :  { %v6743_v2 = vpop.f32.mrf.mxu1 }
0x2545   :  { %5576 = vst [vmem:[#allocation28] sm:$0x3] %v5573_v56 }
0x2546   :  { %7354 = shalt.err (!%p7351_p0)
}
0x2547   :  { %5588 = dma.vmem_to_hbm [thread:$0]  %s5586_s8, 32, %s7637_s17, [#allocation4]  }
0x2548   :  { %7381 = dma.done.wait [#allocation4], 32  }
0x2549   :  { %7382 = vsyncadd [#allocation4], 4294967264 }
0x254a   :  { %5594 = vsyncpa [#allocation3], 1 }
0x254b   :  { %5595 = vsyncpa [#allocation6], 1 }
0x254c   :  { %5596 = vsyncpa [#allocation9], 1 }
0x254d   :  { %5597 = vsyncpa [#allocation12], 1 }
0x254e   :  { %5598 = vsyncpa [#allocation15], 1 }
0x254f   :  { %5599 = vsyncpa [#allocation18], 1 }
0x2550   :  { %5600 = vsyncpa [#allocation21], 1 }
0x2551   :  { %5601 = vsyncpa [#allocation24], 1 }
0x2552   :  { %5602 = vsyncpa [#allocation27], 1 }
0x2553   :  { %5603 = vsyncpa [#allocation4], 1 }

</bundles_post_ra>
